<compile_context>
chip_gen: v6e
topology: v6e:2x2x1
jax: 0.10.0
libtpu: 0.0.40
codegen_flags: <defaults>
</compile_context>

<pallas_src>
import jax
import jax.numpy as jnp
from jax.experimental import pallas as pl
from jax.experimental.pallas import tpu as pltpu

BN_EPS = 1e-5

_VMEM = pl.BlockSpec(memory_space=pltpu.MemorySpace.VMEM)

NODE_PARAMS = 8   # w1, b1, g1, be1, w2, b2, g2, be2
EDGE_PARAMS = 6   # ew1_s, ew1_p, ew1_o, eb1, ew2, eb2


def _swish(x):
    return x * jax.nn.sigmoid(x)


def _batchnorm_train(x, gamma, beta):
    # PyTorch BatchNorm1d in (default) training mode: per-batch mean, biased var.
    mean = jnp.mean(x, axis=0, keepdims=True)
    var = jnp.mean((x - mean) ** 2, axis=0, keepdims=True)
    return (x - mean) * jax.lax.rsqrt(var + BN_EPS) * gamma + beta


# ---------------- fused kernel (all layers in one pallas_call) ----------------

def _make_fused_kernel(num_layers, has_edges, n_pred):
    per_layer = NODE_PARAMS + (EDGE_PARAMS if has_edges else 0)

    def kernel(*refs):
        idx = 0
        emb_o_ref = refs[idx]
        idx += 1
        if has_edges:
            emb_p_ref, so_idx_ref = refs[idx:idx + 2]
            idx += 2
        layer_refs = []
        for _ in range(num_layers):
            layer_refs.append(refs[idx:idx + per_layer])
            idx += per_layer
        out_refs = refs[idx:]

        emb_o = emb_o_ref[...]
        if has_edges:
            emb_p = emb_p_ref[...]
            n_obj = emb_o.shape[0]
            # Stacked [s; o] one-hot gather matrix, built ONCE (hoisted out of
            # the layer loop).  Exact 0/1 matmul gather, MXU-friendly.
            lane_ids = jax.lax.broadcasted_iota(jnp.int32, (2 * n_pred, n_obj), 1)
            so_onehot = (lane_ids == so_idx_ref[...]).astype(jnp.float32)

        for l in range(num_layers):         # unrolled at trace time
            lr = layer_refs[l]
            w1, b1, g1, be1, w2, b2, g2, be2 = (r[...] for r in lr[:NODE_PARAMS])

            if has_edges:
                ew1s, ew1p, ew1o, eb1, ew2, eb2 = (r[...] for r in lr[NODE_PARAMS:])
                # gcn_edge uses this layer's INPUT emb_o (do before node update).
                # Single gather matmul: rows [0:n_pred] = emb_o[s_idx],
                # rows [n_pred:2*n_pred] = emb_o[o_idx].
                gathered = jnp.dot(so_onehot, emb_o,
                                   preferred_element_type=jnp.float32)
                he = (jnp.dot(gathered[:n_pred], ew1s,
                              preferred_element_type=jnp.float32)
                      + jnp.dot(emb_p, ew1p, preferred_element_type=jnp.float32)
                      + jnp.dot(gathered[n_pred:], ew1o,
                                preferred_element_type=jnp.float32)
                      + eb1)
                he = _swish(he)
                new_p = _swish(
                    jnp.dot(he, ew2, preferred_element_type=jnp.float32) + eb2)

            # gcn_node MLP (Linear -> BN -> swish -> Linear -> BN -> swish)
            h = jnp.dot(emb_o, w1, preferred_element_type=jnp.float32) + b1
            h = _swish(_batchnorm_train(h, g1, be1))
            y = jnp.dot(h, w2, preferred_element_type=jnp.float32) + b2
            emb_o = _swish(_batchnorm_train(y, g2, be2))
            if has_edges:
                emb_p = new_p

        out_refs[0][...] = emb_o
        if has_edges:
            out_refs[1][...] = emb_p

    return kernel


# ---------------- jitted wrapper ----------------

@jax.jit
def gcn_network_forward(layers, embed_objects, embed_predicates, edges):
    has_edges = embed_predicates.shape[0] > 0          # static under jit
    num_layers = len(layers)
    n_obj = embed_objects.shape[0]
    n_pred = embed_predicates.shape[0]
    d_out = layers[-1][0][4].shape[1]                   # node w2: [hidden, d_out]

    inputs = [embed_objects.astype(jnp.float32)]
    if has_edges:
        # Stacked subject/object index column: [s_idx; o_idx], shape (2*n_pred, 1).
        so_idx = jnp.concatenate(
            [edges[:, 0], edges[:, 1]]).astype(jnp.int32).reshape(2 * n_pred, 1)
        inputs += [embed_predicates.astype(jnp.float32), so_idx]

    for node_params, edge_params in layers:
        inputs += list(node_params)
        if has_edges:
            ew1, eb1, ew2, eb2 = edge_params
            d_in = node_params[0].shape[0]
            d_p = ew1.shape[0] - 2 * d_in
            # Split first edge-Linear weight row-wise: concat(s, p, o) @ ew1
            # == s@W_s + p@W_p + o@W_o  (no 96-wide concat needed in-kernel).
            inputs += [ew1[:d_in], ew1[d_in:d_in + d_p], ew1[d_in + d_p:],
                       eb1, ew2, eb2]

    if has_edges:
        out_shape = (jax.ShapeDtypeStruct((n_obj, d_out), jnp.float32),
                     jax.ShapeDtypeStruct((n_pred, d_out), jnp.float32))
        out_specs = (_VMEM, _VMEM)
    else:
        out_shape = jax.ShapeDtypeStruct((n_obj, d_out), jnp.float32)
        out_specs = _VMEM

    result = pl.pallas_call(
        _make_fused_kernel(num_layers, has_edges, n_pred),
        out_shape=out_shape,
        in_specs=[_VMEM] * len(inputs),
        out_specs=out_specs,
    )(*inputs)

    if has_edges:
        return result
    return result, embed_predicates


# ---------------- pure-JAX reference (for correctness check) ----------------

def gcn_network_reference(layers, embed_objects, embed_predicates, edges):
    emb_o, emb_p = embed_objects, embed_predicates
    for node_params, edge_params in layers:
        if emb_p.shape[0] > 0:
            s_vecs = emb_o[edges[:, 0]]
            o_vecs = emb_o[edges[:, 1]]
            edge_input = jnp.concatenate([s_vecs, emb_p, o_vecs], axis=1)
            ew1, eb1, ew2, eb2 = edge_params
            h = _swish(edge_input @ ew1 + eb1)
            new_p = _swish(h @ ew2 + eb2)
        else:
            new_p = emb_p
        w1, b1, g1, be1, w2, b2, g2, be2 = node_params
        h = _swish(_batchnorm_train(emb_o @ w1 + b1, g1, be1))
        new_o = _swish(_batchnorm_train(h @ w2 + b2, g2, be2))
        emb_o, emb_p = new_o, new_p
    return emb_o, emb_p


# ---------------- parameter setup (deterministic, in-script) ----------------

def _init_linear(key, d_in, d_out):
    k_w, k_b = jax.random.split(key)
    bound = 1.0 / (d_in ** 0.5)
    w = jax.random.uniform(k_w, (d_in, d_out), jnp.float32, -bound, bound)
    b = jax.random.uniform(k_b, (1, d_out), jnp.float32, -bound, bound)
    return w, b


def init_gcn_network(key, input_dim, pred_dim, output_dim, hidden_dim, numb_layers):
    layers = []
    d_in, d_p = input_dim, pred_dim
    for _ in range(numb_layers):
        key, k1, k2, k3, k4 = jax.random.split(key, 5)
        # gcn_node MLP: Linear(d_in, hidden) / BN / Linear(hidden, out) / BN
        w1, b1 = _init_linear(k1, d_in, hidden_dim)
        w2, b2 = _init_linear(k2, hidden_dim, output_dim)
        node_params = (w1, b1,
                       jnp.ones((1, hidden_dim), jnp.float32),
                       jnp.zeros((1, hidden_dim), jnp.float32),
                       w2, b2,
                       jnp.ones((1, output_dim), jnp.float32),
                       jnp.zeros((1, output_dim), jnp.float32))
        # gcn_edge MLP: Linear(2*d_in + d_p, hidden) / Linear(hidden, out), no BN
        ew1, eb1 = _init_linear(k3, 2 * d_in + d_p, hidden_dim)
        ew2, eb2 = _init_linear(k4, hidden_dim, output_dim)
        edge_params = (ew1, eb1, ew2, eb2)
        layers.append((node_params, edge_params))
        d_in, d_p = output_dim, output_dim
    return layers


if __name__ == "__main__":
    key = jax.random.PRNGKey(0)
    k_params, k_obj, k_pred, k_edge = jax.random.split(key, 4)

    # small shapes consistent with the module's [n_object, D] / [n_pred, D] inputs
    n_object, n_pred = 16, 8
    gcn_input_dim = gcn_pred_dim = gcn_output_dim = 32
    gcn_hidden_dim = 32
    numb_gcn_layers = 5

    layers = init_gcn_network(k_params, gcn_input_dim, gcn_pred_dim,
                              gcn_output_dim, gcn_hidden_dim, numb_gcn_layers)

    embed_objects = jax.random.normal(k_obj, (n_object, gcn_input_dim), jnp.float32)
    embed_predicates = jax.random.normal(k_pred, (n_pred, gcn_pred_dim), jnp.float32)
    edges = jax.random.randint(k_edge, (n_pred, 2), 0, n_object, jnp.int32)

    out_o, out_p = gcn_network_forward(layers, embed_objects, embed_predicates, edges)
    jax.block_until_ready((out_o, out_p))

    assert out_o.shape == (n_object, gcn_output_dim)
    assert out_p.shape == (n_pred, gcn_output_dim)

    # correctness vs. pure-JAX reference
    ref_o, ref_p = jax.jit(gcn_network_reference)(
        layers, embed_objects, embed_predicates, edges)
    jax.block_until_ready((ref_o, ref_p))
    assert jnp.allclose(out_o, ref_o, atol=5e-3, rtol=5e-3)
    assert jnp.allclose(out_p, ref_p, atol=5e-3, rtol=5e-3)

    print("KERNEL_OK")
</pallas_src>

<mosaic_0001>
module attributes {stable_mosaic.version = 11 : i64} {
  func.func @kernel(%arg0: memref<16x32xf32, #tpu.memory_space<vmem>>, %arg1: memref<8x32xf32, #tpu.memory_space<vmem>>, %arg2: memref<16x1xi32, #tpu.memory_space<vmem>>, %arg3: memref<32x32xf32, #tpu.memory_space<vmem>>, %arg4: memref<1x32xf32, #tpu.memory_space<vmem>>, %arg5: memref<1x32xf32, #tpu.memory_space<vmem>>, %arg6: memref<1x32xf32, #tpu.memory_space<vmem>>, %arg7: memref<32x32xf32, #tpu.memory_space<vmem>>, %arg8: memref<1x32xf32, #tpu.memory_space<vmem>>, %arg9: memref<1x32xf32, #tpu.memory_space<vmem>>, %arg10: memref<1x32xf32, #tpu.memory_space<vmem>>, %arg11: memref<32x32xf32, #tpu.memory_space<vmem>>, %arg12: memref<32x32xf32, #tpu.memory_space<vmem>>, %arg13: memref<32x32xf32, #tpu.memory_space<vmem>>, %arg14: memref<1x32xf32, #tpu.memory_space<vmem>>, %arg15: memref<32x32xf32, #tpu.memory_space<vmem>>, %arg16: memref<1x32xf32, #tpu.memory_space<vmem>>, %arg17: memref<32x32xf32, #tpu.memory_space<vmem>>, %arg18: memref<1x32xf32, #tpu.memory_space<vmem>>, %arg19: memref<1x32xf32, #tpu.memory_space<vmem>>, %arg20: memref<1x32xf32, #tpu.memory_space<vmem>>, %arg21: memref<32x32xf32, #tpu.memory_space<vmem>>, %arg22: memref<1x32xf32, #tpu.memory_space<vmem>>, %arg23: memref<1x32xf32, #tpu.memory_space<vmem>>, %arg24: memref<1x32xf32, #tpu.memory_space<vmem>>, %arg25: memref<32x32xf32, #tpu.memory_space<vmem>>, %arg26: memref<32x32xf32, #tpu.memory_space<vmem>>, %arg27: memref<32x32xf32, #tpu.memory_space<vmem>>, %arg28: memref<1x32xf32, #tpu.memory_space<vmem>>, %arg29: memref<32x32xf32, #tpu.memory_space<vmem>>, %arg30: memref<1x32xf32, #tpu.memory_space<vmem>>, %arg31: memref<32x32xf32, #tpu.memory_space<vmem>>, %arg32: memref<1x32xf32, #tpu.memory_space<vmem>>, %arg33: memref<1x32xf32, #tpu.memory_space<vmem>>, %arg34: memref<1x32xf32, #tpu.memory_space<vmem>>, %arg35: memref<32x32xf32, #tpu.memory_space<vmem>>, %arg36: memref<1x32xf32, #tpu.memory_space<vmem>>, %arg37: memref<1x32xf32, #tpu.memory_space<vmem>>, %arg38: memref<1x32xf32, #tpu.memory_space<vmem>>, %arg39: memref<32x32xf32, #tpu.memory_space<vmem>>, %arg40: memref<32x32xf32, #tpu.memory_space<vmem>>, %arg41: memref<32x32xf32, #tpu.memory_space<vmem>>, %arg42: memref<1x32xf32, #tpu.memory_space<vmem>>, %arg43: memref<32x32xf32, #tpu.memory_space<vmem>>, %arg44: memref<1x32xf32, #tpu.memory_space<vmem>>, %arg45: memref<32x32xf32, #tpu.memory_space<vmem>>, %arg46: memref<1x32xf32, #tpu.memory_space<vmem>>, %arg47: memref<1x32xf32, #tpu.memory_space<vmem>>, %arg48: memref<1x32xf32, #tpu.memory_space<vmem>>, %arg49: memref<32x32xf32, #tpu.memory_space<vmem>>, %arg50: memref<1x32xf32, #tpu.memory_space<vmem>>, %arg51: memref<1x32xf32, #tpu.memory_space<vmem>>, %arg52: memref<1x32xf32, #tpu.memory_space<vmem>>, %arg53: memref<32x32xf32, #tpu.memory_space<vmem>>, %arg54: memref<32x32xf32, #tpu.memory_space<vmem>>, %arg55: memref<32x32xf32, #tpu.memory_space<vmem>>, %arg56: memref<1x32xf32, #tpu.memory_space<vmem>>, %arg57: memref<32x32xf32, #tpu.memory_space<vmem>>, %arg58: memref<1x32xf32, #tpu.memory_space<vmem>>, %arg59: memref<32x32xf32, #tpu.memory_space<vmem>>, %arg60: memref<1x32xf32, #tpu.memory_space<vmem>>, %arg61: memref<1x32xf32, #tpu.memory_space<vmem>>, %arg62: memref<1x32xf32, #tpu.memory_space<vmem>>, %arg63: memref<32x32xf32, #tpu.memory_space<vmem>>, %arg64: memref<1x32xf32, #tpu.memory_space<vmem>>, %arg65: memref<1x32xf32, #tpu.memory_space<vmem>>, %arg66: memref<1x32xf32, #tpu.memory_space<vmem>>, %arg67: memref<32x32xf32, #tpu.memory_space<vmem>>, %arg68: memref<32x32xf32, #tpu.memory_space<vmem>>, %arg69: memref<32x32xf32, #tpu.memory_space<vmem>>, %arg70: memref<1x32xf32, #tpu.memory_space<vmem>>, %arg71: memref<32x32xf32, #tpu.memory_space<vmem>>, %arg72: memref<1x32xf32, #tpu.memory_space<vmem>>, %arg73: memref<16x32xf32, #tpu.memory_space<vmem>>, %arg74: memref<8x32xf32, #tpu.memory_space<vmem>>) attributes {dimension_semantics = [], scalar_prefetch = 0 : i64, scratch_operands = 0 : i64, tpu.core_type = #tpu.core_type<tc>} {
    %c0 = arith.constant 0 : index
    %c0_0 = arith.constant 0 : index
    %0 = vector.load %arg0[%c0, %c0_0] : memref<16x32xf32, #tpu.memory_space<vmem>>, vector<16x32xf32>
    %c0_1 = arith.constant 0 : index
    %c0_2 = arith.constant 0 : index
    %1 = vector.load %arg1[%c0_1, %c0_2] : memref<8x32xf32, #tpu.memory_space<vmem>>, vector<8x32xf32>
    %2 = tpu.iota {dimensions = array<i32: 1>} : vector<16x16xi32>
    %c0_3 = arith.constant 0 : index
    %c0_4 = arith.constant 0 : index
    %3 = vector.load %arg2[%c0_3, %c0_4] : memref<16x1xi32, #tpu.memory_space<vmem>>, vector<16x1xi32>
    %4 = vector.broadcast %3 : vector<16x1xi32> to vector<16x16xi32>
    %5 = arith.cmpi eq, %2, %4 : vector<16x16xi32>
    %6 = arith.extui %5 : vector<16x16xi1> to vector<16x16xi32>
    %7 = arith.sitofp %6 : vector<16x16xi32> to vector<16x16xf32>
    %c0_5 = arith.constant 0 : index
    %c0_6 = arith.constant 0 : index
    %8 = vector.load %arg3[%c0_5, %c0_6] : memref<32x32xf32, #tpu.memory_space<vmem>>, vector<32x32xf32>
    %c0_7 = arith.constant 0 : index
    %c0_8 = arith.constant 0 : index
    %9 = vector.load %arg4[%c0_7, %c0_8] : memref<1x32xf32, #tpu.memory_space<vmem>>, vector<1x32xf32>
    %c0_9 = arith.constant 0 : index
    %c0_10 = arith.constant 0 : index
    %10 = vector.load %arg5[%c0_9, %c0_10] : memref<1x32xf32, #tpu.memory_space<vmem>>, vector<1x32xf32>
    %c0_11 = arith.constant 0 : index
    %c0_12 = arith.constant 0 : index
    %11 = vector.load %arg6[%c0_11, %c0_12] : memref<1x32xf32, #tpu.memory_space<vmem>>, vector<1x32xf32>
    %c0_13 = arith.constant 0 : index
    %c0_14 = arith.constant 0 : index
    %12 = vector.load %arg7[%c0_13, %c0_14] : memref<32x32xf32, #tpu.memory_space<vmem>>, vector<32x32xf32>
    %c0_15 = arith.constant 0 : index
    %c0_16 = arith.constant 0 : index
    %13 = vector.load %arg8[%c0_15, %c0_16] : memref<1x32xf32, #tpu.memory_space<vmem>>, vector<1x32xf32>
    %c0_17 = arith.constant 0 : index
    %c0_18 = arith.constant 0 : index
    %14 = vector.load %arg9[%c0_17, %c0_18] : memref<1x32xf32, #tpu.memory_space<vmem>>, vector<1x32xf32>
    %c0_19 = arith.constant 0 : index
    %c0_20 = arith.constant 0 : index
    %15 = vector.load %arg10[%c0_19, %c0_20] : memref<1x32xf32, #tpu.memory_space<vmem>>, vector<1x32xf32>
    %c0_21 = arith.constant 0 : index
    %c0_22 = arith.constant 0 : index
    %16 = vector.load %arg11[%c0_21, %c0_22] : memref<32x32xf32, #tpu.memory_space<vmem>>, vector<32x32xf32>
    %c0_23 = arith.constant 0 : index
    %c0_24 = arith.constant 0 : index
    %17 = vector.load %arg12[%c0_23, %c0_24] : memref<32x32xf32, #tpu.memory_space<vmem>>, vector<32x32xf32>
    %c0_25 = arith.constant 0 : index
    %c0_26 = arith.constant 0 : index
    %18 = vector.load %arg13[%c0_25, %c0_26] : memref<32x32xf32, #tpu.memory_space<vmem>>, vector<32x32xf32>
    %c0_27 = arith.constant 0 : index
    %c0_28 = arith.constant 0 : index
    %19 = vector.load %arg14[%c0_27, %c0_28] : memref<1x32xf32, #tpu.memory_space<vmem>>, vector<1x32xf32>
    %c0_29 = arith.constant 0 : index
    %c0_30 = arith.constant 0 : index
    %20 = vector.load %arg15[%c0_29, %c0_30] : memref<32x32xf32, #tpu.memory_space<vmem>>, vector<32x32xf32>
    %c0_31 = arith.constant 0 : index
    %c0_32 = arith.constant 0 : index
    %21 = vector.load %arg16[%c0_31, %c0_32] : memref<1x32xf32, #tpu.memory_space<vmem>>, vector<1x32xf32>
    %cst = arith.constant dense<0.000000e+00> : vector<16x32xf32>
    %22 = tpu.matmul %7, %0, %cst {dimension_numbers = #tpu.dot_dimension_numbers<[1], [0], [0], [1], [0, 0, 1, 1], [], []>} : vector<16x16xf32>, vector<16x32xf32>, vector<16x32xf32> -> vector<16x32xf32>
    %23 = vector.extract_strided_slice %22 {offsets = [0, 0], sizes = [8, 32], strides = [1, 1]} : vector<16x32xf32> to vector<8x32xf32>
    %cst_33 = arith.constant dense<0.000000e+00> : vector<8x32xf32>
    %24 = tpu.matmul %23, %16, %cst_33 {dimension_numbers = #tpu.dot_dimension_numbers<[1], [0], [0], [1], [0, 0, 1, 1], [], []>} : vector<8x32xf32>, vector<32x32xf32>, vector<8x32xf32> -> vector<8x32xf32>
    %cst_34 = arith.constant dense<0.000000e+00> : vector<8x32xf32>
    %25 = tpu.matmul %1, %17, %cst_34 {dimension_numbers = #tpu.dot_dimension_numbers<[1], [0], [0], [1], [0, 0, 1, 1], [], []>} : vector<8x32xf32>, vector<32x32xf32>, vector<8x32xf32> -> vector<8x32xf32>
    %26 = arith.addf %24, %25 : vector<8x32xf32>
    %27 = vector.extract_strided_slice %22 {offsets = [8, 0], sizes = [8, 32], strides = [1, 1]} : vector<16x32xf32> to vector<8x32xf32>
    %cst_35 = arith.constant dense<0.000000e+00> : vector<8x32xf32>
    %28 = tpu.matmul %27, %18, %cst_35 {dimension_numbers = #tpu.dot_dimension_numbers<[1], [0], [0], [1], [0, 0, 1, 1], [], []>} : vector<8x32xf32>, vector<32x32xf32>, vector<8x32xf32> -> vector<8x32xf32>
    %29 = arith.addf %26, %28 : vector<8x32xf32>
    %30 = vector.broadcast %19 : vector<1x32xf32> to vector<8x32xf32>
    %31 = arith.addf %29, %30 : vector<8x32xf32>
    %32 = arith.negf %31 : vector<8x32xf32>
    %33 = math.exp %32 : vector<8x32xf32>
    %cst_36 = arith.constant 1.000000e+00 : f32
    %34 = vector.broadcast %cst_36 : f32 to vector<8x32xf32>
    %35 = arith.addf %34, %33 : vector<8x32xf32>
    %36 = arith.divf %34, %35 : vector<8x32xf32>
    %37 = arith.mulf %31, %36 : vector<8x32xf32>
    %cst_37 = arith.constant dense<0.000000e+00> : vector<8x32xf32>
    %38 = tpu.matmul %37, %20, %cst_37 {dimension_numbers = #tpu.dot_dimension_numbers<[1], [0], [0], [1], [0, 0, 1, 1], [], []>} : vector<8x32xf32>, vector<32x32xf32>, vector<8x32xf32> -> vector<8x32xf32>
    %39 = vector.broadcast %21 : vector<1x32xf32> to vector<8x32xf32>
    %40 = arith.addf %38, %39 : vector<8x32xf32>
    %41 = arith.negf %40 : vector<8x32xf32>
    %42 = math.exp %41 : vector<8x32xf32>
    %cst_38 = arith.constant 1.000000e+00 : f32
    %43 = vector.broadcast %cst_38 : f32 to vector<8x32xf32>
    %44 = arith.addf %43, %42 : vector<8x32xf32>
    %45 = arith.divf %43, %44 : vector<8x32xf32>
    %46 = arith.mulf %40, %45 : vector<8x32xf32>
    %cst_39 = arith.constant dense<0.000000e+00> : vector<16x32xf32>
    %47 = tpu.matmul %0, %8, %cst_39 {dimension_numbers = #tpu.dot_dimension_numbers<[1], [0], [0], [1], [0, 0, 1, 1], [], []>} : vector<16x32xf32>, vector<32x32xf32>, vector<16x32xf32> -> vector<16x32xf32>
    %48 = vector.broadcast %9 : vector<1x32xf32> to vector<16x32xf32>
    %49 = arith.addf %47, %48 : vector<16x32xf32>
    %cst_40 = arith.constant dense<0.000000e+00> : vector<32xf32>
    %50 = vector.multi_reduction <add>, %49, %cst_40 [0] : vector<16x32xf32> to vector<32xf32>
    %51 = vector.shape_cast %50 : vector<32xf32> to vector<1x32xf32>
    %cst_41 = arith.constant 1.600000e+01 : f32
    %52 = vector.broadcast %cst_41 : f32 to vector<1x32xf32>
    %53 = arith.divf %51, %52 : vector<1x32xf32>
    %54 = vector.broadcast %53 : vector<1x32xf32> to vector<16x32xf32>
    %55 = arith.subf %49, %54 : vector<16x32xf32>
    %56 = arith.mulf %55, %55 : vector<16x32xf32>
    %cst_42 = arith.constant dense<0.000000e+00> : vector<32xf32>
    %57 = vector.multi_reduction <add>, %56, %cst_42 [0] : vector<16x32xf32> to vector<32xf32>
    %58 = vector.shape_cast %57 : vector<32xf32> to vector<1x32xf32>
    %cst_43 = arith.constant 1.600000e+01 : f32
    %59 = vector.broadcast %cst_43 : f32 to vector<1x32xf32>
    %60 = arith.divf %58, %59 : vector<1x32xf32>
    %61 = vector.broadcast %53 : vector<1x32xf32> to vector<16x32xf32>
    %62 = arith.subf %49, %61 : vector<16x32xf32>
    %cst_44 = arith.constant 9.99999974E-6 : f32
    %63 = vector.broadcast %cst_44 : f32 to vector<1x32xf32>
    %64 = arith.addf %60, %63 : vector<1x32xf32>
    %65 = math.rsqrt %64 : vector<1x32xf32>
    %66 = vector.broadcast %65 : vector<1x32xf32> to vector<16x32xf32>
    %67 = arith.mulf %62, %66 : vector<16x32xf32>
    %68 = vector.broadcast %10 : vector<1x32xf32> to vector<16x32xf32>
    %69 = arith.mulf %67, %68 : vector<16x32xf32>
    %70 = vector.broadcast %11 : vector<1x32xf32> to vector<16x32xf32>
    %71 = arith.addf %69, %70 : vector<16x32xf32>
    %72 = arith.negf %71 : vector<16x32xf32>
    %73 = math.exp %72 : vector<16x32xf32>
    %cst_45 = arith.constant 1.000000e+00 : f32
    %74 = vector.broadcast %cst_45 : f32 to vector<16x32xf32>
    %75 = arith.addf %74, %73 : vector<16x32xf32>
    %76 = arith.divf %74, %75 : vector<16x32xf32>
    %77 = arith.mulf %71, %76 : vector<16x32xf32>
    %cst_46 = arith.constant dense<0.000000e+00> : vector<16x32xf32>
    %78 = tpu.matmul %77, %12, %cst_46 {dimension_numbers = #tpu.dot_dimension_numbers<[1], [0], [0], [1], [0, 0, 1, 1], [], []>} : vector<16x32xf32>, vector<32x32xf32>, vector<16x32xf32> -> vector<16x32xf32>
    %79 = vector.broadcast %13 : vector<1x32xf32> to vector<16x32xf32>
    %80 = arith.addf %78, %79 : vector<16x32xf32>
    %cst_47 = arith.constant dense<0.000000e+00> : vector<32xf32>
    %81 = vector.multi_reduction <add>, %80, %cst_47 [0] : vector<16x32xf32> to vector<32xf32>
    %82 = vector.shape_cast %81 : vector<32xf32> to vector<1x32xf32>
    %cst_48 = arith.constant 1.600000e+01 : f32
    %83 = vector.broadcast %cst_48 : f32 to vector<1x32xf32>
    %84 = arith.divf %82, %83 : vector<1x32xf32>
    %85 = vector.broadcast %84 : vector<1x32xf32> to vector<16x32xf32>
    %86 = arith.subf %80, %85 : vector<16x32xf32>
    %87 = arith.mulf %86, %86 : vector<16x32xf32>
    %cst_49 = arith.constant dense<0.000000e+00> : vector<32xf32>
    %88 = vector.multi_reduction <add>, %87, %cst_49 [0] : vector<16x32xf32> to vector<32xf32>
    %89 = vector.shape_cast %88 : vector<32xf32> to vector<1x32xf32>
    %cst_50 = arith.constant 1.600000e+01 : f32
    %90 = vector.broadcast %cst_50 : f32 to vector<1x32xf32>
    %91 = arith.divf %89, %90 : vector<1x32xf32>
    %92 = vector.broadcast %84 : vector<1x32xf32> to vector<16x32xf32>
    %93 = arith.subf %80, %92 : vector<16x32xf32>
    %cst_51 = arith.constant 9.99999974E-6 : f32
    %94 = vector.broadcast %cst_51 : f32 to vector<1x32xf32>
    %95 = arith.addf %91, %94 : vector<1x32xf32>
    %96 = math.rsqrt %95 : vector<1x32xf32>
    %97 = vector.broadcast %96 : vector<1x32xf32> to vector<16x32xf32>
    %98 = arith.mulf %93, %97 : vector<16x32xf32>
    %99 = vector.broadcast %14 : vector<1x32xf32> to vector<16x32xf32>
    %100 = arith.mulf %98, %99 : vector<16x32xf32>
    %101 = vector.broadcast %15 : vector<1x32xf32> to vector<16x32xf32>
    %102 = arith.addf %100, %101 : vector<16x32xf32>
    %103 = arith.negf %102 : vector<16x32xf32>
    %104 = math.exp %103 : vector<16x32xf32>
    %cst_52 = arith.constant 1.000000e+00 : f32
    %105 = vector.broadcast %cst_52 : f32 to vector<16x32xf32>
    %106 = arith.addf %105, %104 : vector<16x32xf32>
    %107 = arith.divf %105, %106 : vector<16x32xf32>
    %108 = arith.mulf %102, %107 : vector<16x32xf32>
    %c0_53 = arith.constant 0 : index
    %c0_54 = arith.constant 0 : index
    %109 = vector.load %arg17[%c0_53, %c0_54] : memref<32x32xf32, #tpu.memory_space<vmem>>, vector<32x32xf32>
    %c0_55 = arith.constant 0 : index
    %c0_56 = arith.constant 0 : index
    %110 = vector.load %arg18[%c0_55, %c0_56] : memref<1x32xf32, #tpu.memory_space<vmem>>, vector<1x32xf32>
    %c0_57 = arith.constant 0 : index
    %c0_58 = arith.constant 0 : index
    %111 = vector.load %arg19[%c0_57, %c0_58] : memref<1x32xf32, #tpu.memory_space<vmem>>, vector<1x32xf32>
    %c0_59 = arith.constant 0 : index
    %c0_60 = arith.constant 0 : index
    %112 = vector.load %arg20[%c0_59, %c0_60] : memref<1x32xf32, #tpu.memory_space<vmem>>, vector<1x32xf32>
    %c0_61 = arith.constant 0 : index
    %c0_62 = arith.constant 0 : index
    %113 = vector.load %arg21[%c0_61, %c0_62] : memref<32x32xf32, #tpu.memory_space<vmem>>, vector<32x32xf32>
    %c0_63 = arith.constant 0 : index
    %c0_64 = arith.constant 0 : index
    %114 = vector.load %arg22[%c0_63, %c0_64] : memref<1x32xf32, #tpu.memory_space<vmem>>, vector<1x32xf32>
    %c0_65 = arith.constant 0 : index
    %c0_66 = arith.constant 0 : index
    %115 = vector.load %arg23[%c0_65, %c0_66] : memref<1x32xf32, #tpu.memory_space<vmem>>, vector<1x32xf32>
    %c0_67 = arith.constant 0 : index
    %c0_68 = arith.constant 0 : index
    %116 = vector.load %arg24[%c0_67, %c0_68] : memref<1x32xf32, #tpu.memory_space<vmem>>, vector<1x32xf32>
    %c0_69 = arith.constant 0 : index
    %c0_70 = arith.constant 0 : index
    %117 = vector.load %arg25[%c0_69, %c0_70] : memref<32x32xf32, #tpu.memory_space<vmem>>, vector<32x32xf32>
    %c0_71 = arith.constant 0 : index
    %c0_72 = arith.constant 0 : index
    %118 = vector.load %arg26[%c0_71, %c0_72] : memref<32x32xf32, #tpu.memory_space<vmem>>, vector<32x32xf32>
    %c0_73 = arith.constant 0 : index
    %c0_74 = arith.constant 0 : index
    %119 = vector.load %arg27[%c0_73, %c0_74] : memref<32x32xf32, #tpu.memory_space<vmem>>, vector<32x32xf32>
    %c0_75 = arith.constant 0 : index
    %c0_76 = arith.constant 0 : index
    %120 = vector.load %arg28[%c0_75, %c0_76] : memref<1x32xf32, #tpu.memory_space<vmem>>, vector<1x32xf32>
    %c0_77 = arith.constant 0 : index
    %c0_78 = arith.constant 0 : index
    %121 = vector.load %arg29[%c0_77, %c0_78] : memref<32x32xf32, #tpu.memory_space<vmem>>, vector<32x32xf32>
    %c0_79 = arith.constant 0 : index
    %c0_80 = arith.constant 0 : index
    %122 = vector.load %arg30[%c0_79, %c0_80] : memref<1x32xf32, #tpu.memory_space<vmem>>, vector<1x32xf32>
    %cst_81 = arith.constant dense<0.000000e+00> : vector<16x32xf32>
    %123 = tpu.matmul %7, %108, %cst_81 {dimension_numbers = #tpu.dot_dimension_numbers<[1], [0], [0], [1], [0, 0, 1, 1], [], []>} : vector<16x16xf32>, vector<16x32xf32>, vector<16x32xf32> -> vector<16x32xf32>
    %124 = vector.extract_strided_slice %123 {offsets = [0, 0], sizes = [8, 32], strides = [1, 1]} : vector<16x32xf32> to vector<8x32xf32>
    %cst_82 = arith.constant dense<0.000000e+00> : vector<8x32xf32>
    %125 = tpu.matmul %124, %117, %cst_82 {dimension_numbers = #tpu.dot_dimension_numbers<[1], [0], [0], [1], [0, 0, 1, 1], [], []>} : vector<8x32xf32>, vector<32x32xf32>, vector<8x32xf32> -> vector<8x32xf32>
    %cst_83 = arith.constant dense<0.000000e+00> : vector<8x32xf32>
    %126 = tpu.matmul %46, %118, %cst_83 {dimension_numbers = #tpu.dot_dimension_numbers<[1], [0], [0], [1], [0, 0, 1, 1], [], []>} : vector<8x32xf32>, vector<32x32xf32>, vector<8x32xf32> -> vector<8x32xf32>
    %127 = arith.addf %125, %126 : vector<8x32xf32>
    %128 = vector.extract_strided_slice %123 {offsets = [8, 0], sizes = [8, 32], strides = [1, 1]} : vector<16x32xf32> to vector<8x32xf32>
    %cst_84 = arith.constant dense<0.000000e+00> : vector<8x32xf32>
    %129 = tpu.matmul %128, %119, %cst_84 {dimension_numbers = #tpu.dot_dimension_numbers<[1], [0], [0], [1], [0, 0, 1, 1], [], []>} : vector<8x32xf32>, vector<32x32xf32>, vector<8x32xf32> -> vector<8x32xf32>
    %130 = arith.addf %127, %129 : vector<8x32xf32>
    %131 = vector.broadcast %120 : vector<1x32xf32> to vector<8x32xf32>
    %132 = arith.addf %130, %131 : vector<8x32xf32>
    %133 = arith.negf %132 : vector<8x32xf32>
    %134 = math.exp %133 : vector<8x32xf32>
    %cst_85 = arith.constant 1.000000e+00 : f32
    %135 = vector.broadcast %cst_85 : f32 to vector<8x32xf32>
    %136 = arith.addf %135, %134 : vector<8x32xf32>
    %137 = arith.divf %135, %136 : vector<8x32xf32>
    %138 = arith.mulf %132, %137 : vector<8x32xf32>
    %cst_86 = arith.constant dense<0.000000e+00> : vector<8x32xf32>
    %139 = tpu.matmul %138, %121, %cst_86 {dimension_numbers = #tpu.dot_dimension_numbers<[1], [0], [0], [1], [0, 0, 1, 1], [], []>} : vector<8x32xf32>, vector<32x32xf32>, vector<8x32xf32> -> vector<8x32xf32>
    %140 = vector.broadcast %122 : vector<1x32xf32> to vector<8x32xf32>
    %141 = arith.addf %139, %140 : vector<8x32xf32>
    %142 = arith.negf %141 : vector<8x32xf32>
    %143 = math.exp %142 : vector<8x32xf32>
    %cst_87 = arith.constant 1.000000e+00 : f32
    %144 = vector.broadcast %cst_87 : f32 to vector<8x32xf32>
    %145 = arith.addf %144, %143 : vector<8x32xf32>
    %146 = arith.divf %144, %145 : vector<8x32xf32>
    %147 = arith.mulf %141, %146 : vector<8x32xf32>
    %cst_88 = arith.constant dense<0.000000e+00> : vector<16x32xf32>
    %148 = tpu.matmul %108, %109, %cst_88 {dimension_numbers = #tpu.dot_dimension_numbers<[1], [0], [0], [1], [0, 0, 1, 1], [], []>} : vector<16x32xf32>, vector<32x32xf32>, vector<16x32xf32> -> vector<16x32xf32>
    %149 = vector.broadcast %110 : vector<1x32xf32> to vector<16x32xf32>
    %150 = arith.addf %148, %149 : vector<16x32xf32>
    %cst_89 = arith.constant dense<0.000000e+00> : vector<32xf32>
    %151 = vector.multi_reduction <add>, %150, %cst_89 [0] : vector<16x32xf32> to vector<32xf32>
    %152 = vector.shape_cast %151 : vector<32xf32> to vector<1x32xf32>
    %cst_90 = arith.constant 1.600000e+01 : f32
    %153 = vector.broadcast %cst_90 : f32 to vector<1x32xf32>
    %154 = arith.divf %152, %153 : vector<1x32xf32>
    %155 = vector.broadcast %154 : vector<1x32xf32> to vector<16x32xf32>
    %156 = arith.subf %150, %155 : vector<16x32xf32>
    %157 = arith.mulf %156, %156 : vector<16x32xf32>
    %cst_91 = arith.constant dense<0.000000e+00> : vector<32xf32>
    %158 = vector.multi_reduction <add>, %157, %cst_91 [0] : vector<16x32xf32> to vector<32xf32>
    %159 = vector.shape_cast %158 : vector<32xf32> to vector<1x32xf32>
    %cst_92 = arith.constant 1.600000e+01 : f32
    %160 = vector.broadcast %cst_92 : f32 to vector<1x32xf32>
    %161 = arith.divf %159, %160 : vector<1x32xf32>
    %162 = vector.broadcast %154 : vector<1x32xf32> to vector<16x32xf32>
    %163 = arith.subf %150, %162 : vector<16x32xf32>
    %cst_93 = arith.constant 9.99999974E-6 : f32
    %164 = vector.broadcast %cst_93 : f32 to vector<1x32xf32>
    %165 = arith.addf %161, %164 : vector<1x32xf32>
    %166 = math.rsqrt %165 : vector<1x32xf32>
    %167 = vector.broadcast %166 : vector<1x32xf32> to vector<16x32xf32>
    %168 = arith.mulf %163, %167 : vector<16x32xf32>
    %169 = vector.broadcast %111 : vector<1x32xf32> to vector<16x32xf32>
    %170 = arith.mulf %168, %169 : vector<16x32xf32>
    %171 = vector.broadcast %112 : vector<1x32xf32> to vector<16x32xf32>
    %172 = arith.addf %170, %171 : vector<16x32xf32>
    %173 = arith.negf %172 : vector<16x32xf32>
    %174 = math.exp %173 : vector<16x32xf32>
    %cst_94 = arith.constant 1.000000e+00 : f32
    %175 = vector.broadcast %cst_94 : f32 to vector<16x32xf32>
    %176 = arith.addf %175, %174 : vector<16x32xf32>
    %177 = arith.divf %175, %176 : vector<16x32xf32>
    %178 = arith.mulf %172, %177 : vector<16x32xf32>
    %cst_95 = arith.constant dense<0.000000e+00> : vector<16x32xf32>
    %179 = tpu.matmul %178, %113, %cst_95 {dimension_numbers = #tpu.dot_dimension_numbers<[1], [0], [0], [1], [0, 0, 1, 1], [], []>} : vector<16x32xf32>, vector<32x32xf32>, vector<16x32xf32> -> vector<16x32xf32>
    %180 = vector.broadcast %114 : vector<1x32xf32> to vector<16x32xf32>
    %181 = arith.addf %179, %180 : vector<16x32xf32>
    %cst_96 = arith.constant dense<0.000000e+00> : vector<32xf32>
    %182 = vector.multi_reduction <add>, %181, %cst_96 [0] : vector<16x32xf32> to vector<32xf32>
    %183 = vector.shape_cast %182 : vector<32xf32> to vector<1x32xf32>
    %cst_97 = arith.constant 1.600000e+01 : f32
    %184 = vector.broadcast %cst_97 : f32 to vector<1x32xf32>
    %185 = arith.divf %183, %184 : vector<1x32xf32>
    %186 = vector.broadcast %185 : vector<1x32xf32> to vector<16x32xf32>
    %187 = arith.subf %181, %186 : vector<16x32xf32>
    %188 = arith.mulf %187, %187 : vector<16x32xf32>
    %cst_98 = arith.constant dense<0.000000e+00> : vector<32xf32>
    %189 = vector.multi_reduction <add>, %188, %cst_98 [0] : vector<16x32xf32> to vector<32xf32>
    %190 = vector.shape_cast %189 : vector<32xf32> to vector<1x32xf32>
    %cst_99 = arith.constant 1.600000e+01 : f32
    %191 = vector.broadcast %cst_99 : f32 to vector<1x32xf32>
    %192 = arith.divf %190, %191 : vector<1x32xf32>
    %193 = vector.broadcast %185 : vector<1x32xf32> to vector<16x32xf32>
    %194 = arith.subf %181, %193 : vector<16x32xf32>
    %cst_100 = arith.constant 9.99999974E-6 : f32
    %195 = vector.broadcast %cst_100 : f32 to vector<1x32xf32>
    %196 = arith.addf %192, %195 : vector<1x32xf32>
    %197 = math.rsqrt %196 : vector<1x32xf32>
    %198 = vector.broadcast %197 : vector<1x32xf32> to vector<16x32xf32>
    %199 = arith.mulf %194, %198 : vector<16x32xf32>
    %200 = vector.broadcast %115 : vector<1x32xf32> to vector<16x32xf32>
    %201 = arith.mulf %199, %200 : vector<16x32xf32>
    %202 = vector.broadcast %116 : vector<1x32xf32> to vector<16x32xf32>
    %203 = arith.addf %201, %202 : vector<16x32xf32>
    %204 = arith.negf %203 : vector<16x32xf32>
    %205 = math.exp %204 : vector<16x32xf32>
    %cst_101 = arith.constant 1.000000e+00 : f32
    %206 = vector.broadcast %cst_101 : f32 to vector<16x32xf32>
    %207 = arith.addf %206, %205 : vector<16x32xf32>
    %208 = arith.divf %206, %207 : vector<16x32xf32>
    %209 = arith.mulf %203, %208 : vector<16x32xf32>
    %c0_102 = arith.constant 0 : index
    %c0_103 = arith.constant 0 : index
    %210 = vector.load %arg31[%c0_102, %c0_103] : memref<32x32xf32, #tpu.memory_space<vmem>>, vector<32x32xf32>
    %c0_104 = arith.constant 0 : index
    %c0_105 = arith.constant 0 : index
    %211 = vector.load %arg32[%c0_104, %c0_105] : memref<1x32xf32, #tpu.memory_space<vmem>>, vector<1x32xf32>
    %c0_106 = arith.constant 0 : index
    %c0_107 = arith.constant 0 : index
    %212 = vector.load %arg33[%c0_106, %c0_107] : memref<1x32xf32, #tpu.memory_space<vmem>>, vector<1x32xf32>
    %c0_108 = arith.constant 0 : index
    %c0_109 = arith.constant 0 : index
    %213 = vector.load %arg34[%c0_108, %c0_109] : memref<1x32xf32, #tpu.memory_space<vmem>>, vector<1x32xf32>
    %c0_110 = arith.constant 0 : index
    %c0_111 = arith.constant 0 : index
    %214 = vector.load %arg35[%c0_110, %c0_111] : memref<32x32xf32, #tpu.memory_space<vmem>>, vector<32x32xf32>
    %c0_112 = arith.constant 0 : index
    %c0_113 = arith.constant 0 : index
    %215 = vector.load %arg36[%c0_112, %c0_113] : memref<1x32xf32, #tpu.memory_space<vmem>>, vector<1x32xf32>
    %c0_114 = arith.constant 0 : index
    %c0_115 = arith.constant 0 : index
    %216 = vector.load %arg37[%c0_114, %c0_115] : memref<1x32xf32, #tpu.memory_space<vmem>>, vector<1x32xf32>
    %c0_116 = arith.constant 0 : index
    %c0_117 = arith.constant 0 : index
    %217 = vector.load %arg38[%c0_116, %c0_117] : memref<1x32xf32, #tpu.memory_space<vmem>>, vector<1x32xf32>
    %c0_118 = arith.constant 0 : index
    %c0_119 = arith.constant 0 : index
    %218 = vector.load %arg39[%c0_118, %c0_119] : memref<32x32xf32, #tpu.memory_space<vmem>>, vector<32x32xf32>
    %c0_120 = arith.constant 0 : index
    %c0_121 = arith.constant 0 : index
    %219 = vector.load %arg40[%c0_120, %c0_121] : memref<32x32xf32, #tpu.memory_space<vmem>>, vector<32x32xf32>
    %c0_122 = arith.constant 0 : index
    %c0_123 = arith.constant 0 : index
    %220 = vector.load %arg41[%c0_122, %c0_123] : memref<32x32xf32, #tpu.memory_space<vmem>>, vector<32x32xf32>
    %c0_124 = arith.constant 0 : index
    %c0_125 = arith.constant 0 : index
    %221 = vector.load %arg42[%c0_124, %c0_125] : memref<1x32xf32, #tpu.memory_space<vmem>>, vector<1x32xf32>
    %c0_126 = arith.constant 0 : index
    %c0_127 = arith.constant 0 : index
    %222 = vector.load %arg43[%c0_126, %c0_127] : memref<32x32xf32, #tpu.memory_space<vmem>>, vector<32x32xf32>
    %c0_128 = arith.constant 0 : index
    %c0_129 = arith.constant 0 : index
    %223 = vector.load %arg44[%c0_128, %c0_129] : memref<1x32xf32, #tpu.memory_space<vmem>>, vector<1x32xf32>
    %cst_130 = arith.constant dense<0.000000e+00> : vector<16x32xf32>
    %224 = tpu.matmul %7, %209, %cst_130 {dimension_numbers = #tpu.dot_dimension_numbers<[1], [0], [0], [1], [0, 0, 1, 1], [], []>} : vector<16x16xf32>, vector<16x32xf32>, vector<16x32xf32> -> vector<16x32xf32>
    %225 = vector.extract_strided_slice %224 {offsets = [0, 0], sizes = [8, 32], strides = [1, 1]} : vector<16x32xf32> to vector<8x32xf32>
    %cst_131 = arith.constant dense<0.000000e+00> : vector<8x32xf32>
    %226 = tpu.matmul %225, %218, %cst_131 {dimension_numbers = #tpu.dot_dimension_numbers<[1], [0], [0], [1], [0, 0, 1, 1], [], []>} : vector<8x32xf32>, vector<32x32xf32>, vector<8x32xf32> -> vector<8x32xf32>
    %cst_132 = arith.constant dense<0.000000e+00> : vector<8x32xf32>
    %227 = tpu.matmul %147, %219, %cst_132 {dimension_numbers = #tpu.dot_dimension_numbers<[1], [0], [0], [1], [0, 0, 1, 1], [], []>} : vector<8x32xf32>, vector<32x32xf32>, vector<8x32xf32> -> vector<8x32xf32>
    %228 = arith.addf %226, %227 : vector<8x32xf32>
    %229 = vector.extract_strided_slice %224 {offsets = [8, 0], sizes = [8, 32], strides = [1, 1]} : vector<16x32xf32> to vector<8x32xf32>
    %cst_133 = arith.constant dense<0.000000e+00> : vector<8x32xf32>
    %230 = tpu.matmul %229, %220, %cst_133 {dimension_numbers = #tpu.dot_dimension_numbers<[1], [0], [0], [1], [0, 0, 1, 1], [], []>} : vector<8x32xf32>, vector<32x32xf32>, vector<8x32xf32> -> vector<8x32xf32>
    %231 = arith.addf %228, %230 : vector<8x32xf32>
    %232 = vector.broadcast %221 : vector<1x32xf32> to vector<8x32xf32>
    %233 = arith.addf %231, %232 : vector<8x32xf32>
    %234 = arith.negf %233 : vector<8x32xf32>
    %235 = math.exp %234 : vector<8x32xf32>
    %cst_134 = arith.constant 1.000000e+00 : f32
    %236 = vector.broadcast %cst_134 : f32 to vector<8x32xf32>
    %237 = arith.addf %236, %235 : vector<8x32xf32>
    %238 = arith.divf %236, %237 : vector<8x32xf32>
    %239 = arith.mulf %233, %238 : vector<8x32xf32>
    %cst_135 = arith.constant dense<0.000000e+00> : vector<8x32xf32>
    %240 = tpu.matmul %239, %222, %cst_135 {dimension_numbers = #tpu.dot_dimension_numbers<[1], [0], [0], [1], [0, 0, 1, 1], [], []>} : vector<8x32xf32>, vector<32x32xf32>, vector<8x32xf32> -> vector<8x32xf32>
    %241 = vector.broadcast %223 : vector<1x32xf32> to vector<8x32xf32>
    %242 = arith.addf %240, %241 : vector<8x32xf32>
    %243 = arith.negf %242 : vector<8x32xf32>
    %244 = math.exp %243 : vector<8x32xf32>
    %cst_136 = arith.constant 1.000000e+00 : f32
    %245 = vector.broadcast %cst_136 : f32 to vector<8x32xf32>
    %246 = arith.addf %245, %244 : vector<8x32xf32>
    %247 = arith.divf %245, %246 : vector<8x32xf32>
    %248 = arith.mulf %242, %247 : vector<8x32xf32>
    %cst_137 = arith.constant dense<0.000000e+00> : vector<16x32xf32>
    %249 = tpu.matmul %209, %210, %cst_137 {dimension_numbers = #tpu.dot_dimension_numbers<[1], [0], [0], [1], [0, 0, 1, 1], [], []>} : vector<16x32xf32>, vector<32x32xf32>, vector<16x32xf32> -> vector<16x32xf32>
    %250 = vector.broadcast %211 : vector<1x32xf32> to vector<16x32xf32>
    %251 = arith.addf %249, %250 : vector<16x32xf32>
    %cst_138 = arith.constant dense<0.000000e+00> : vector<32xf32>
    %252 = vector.multi_reduction <add>, %251, %cst_138 [0] : vector<16x32xf32> to vector<32xf32>
    %253 = vector.shape_cast %252 : vector<32xf32> to vector<1x32xf32>
    %cst_139 = arith.constant 1.600000e+01 : f32
    %254 = vector.broadcast %cst_139 : f32 to vector<1x32xf32>
    %255 = arith.divf %253, %254 : vector<1x32xf32>
    %256 = vector.broadcast %255 : vector<1x32xf32> to vector<16x32xf32>
    %257 = arith.subf %251, %256 : vector<16x32xf32>
    %258 = arith.mulf %257, %257 : vector<16x32xf32>
    %cst_140 = arith.constant dense<0.000000e+00> : vector<32xf32>
    %259 = vector.multi_reduction <add>, %258, %cst_140 [0] : vector<16x32xf32> to vector<32xf32>
    %260 = vector.shape_cast %259 : vector<32xf32> to vector<1x32xf32>
    %cst_141 = arith.constant 1.600000e+01 : f32
    %261 = vector.broadcast %cst_141 : f32 to vector<1x32xf32>
    %262 = arith.divf %260, %261 : vector<1x32xf32>
    %263 = vector.broadcast %255 : vector<1x32xf32> to vector<16x32xf32>
    %264 = arith.subf %251, %263 : vector<16x32xf32>
    %cst_142 = arith.constant 9.99999974E-6 : f32
    %265 = vector.broadcast %cst_142 : f32 to vector<1x32xf32>
    %266 = arith.addf %262, %265 : vector<1x32xf32>
    %267 = math.rsqrt %266 : vector<1x32xf32>
    %268 = vector.broadcast %267 : vector<1x32xf32> to vector<16x32xf32>
    %269 = arith.mulf %264, %268 : vector<16x32xf32>
    %270 = vector.broadcast %212 : vector<1x32xf32> to vector<16x32xf32>
    %271 = arith.mulf %269, %270 : vector<16x32xf32>
    %272 = vector.broadcast %213 : vector<1x32xf32> to vector<16x32xf32>
    %273 = arith.addf %271, %272 : vector<16x32xf32>
    %274 = arith.negf %273 : vector<16x32xf32>
    %275 = math.exp %274 : vector<16x32xf32>
    %cst_143 = arith.constant 1.000000e+00 : f32
    %276 = vector.broadcast %cst_143 : f32 to vector<16x32xf32>
    %277 = arith.addf %276, %275 : vector<16x32xf32>
    %278 = arith.divf %276, %277 : vector<16x32xf32>
    %279 = arith.mulf %273, %278 : vector<16x32xf32>
    %cst_144 = arith.constant dense<0.000000e+00> : vector<16x32xf32>
    %280 = tpu.matmul %279, %214, %cst_144 {dimension_numbers = #tpu.dot_dimension_numbers<[1], [0], [0], [1], [0, 0, 1, 1], [], []>} : vector<16x32xf32>, vector<32x32xf32>, vector<16x32xf32> -> vector<16x32xf32>
    %281 = vector.broadcast %215 : vector<1x32xf32> to vector<16x32xf32>
    %282 = arith.addf %280, %281 : vector<16x32xf32>
    %cst_145 = arith.constant dense<0.000000e+00> : vector<32xf32>
    %283 = vector.multi_reduction <add>, %282, %cst_145 [0] : vector<16x32xf32> to vector<32xf32>
    %284 = vector.shape_cast %283 : vector<32xf32> to vector<1x32xf32>
    %cst_146 = arith.constant 1.600000e+01 : f32
    %285 = vector.broadcast %cst_146 : f32 to vector<1x32xf32>
    %286 = arith.divf %284, %285 : vector<1x32xf32>
    %287 = vector.broadcast %286 : vector<1x32xf32> to vector<16x32xf32>
    %288 = arith.subf %282, %287 : vector<16x32xf32>
    %289 = arith.mulf %288, %288 : vector<16x32xf32>
    %cst_147 = arith.constant dense<0.000000e+00> : vector<32xf32>
    %290 = vector.multi_reduction <add>, %289, %cst_147 [0] : vector<16x32xf32> to vector<32xf32>
    %291 = vector.shape_cast %290 : vector<32xf32> to vector<1x32xf32>
    %cst_148 = arith.constant 1.600000e+01 : f32
    %292 = vector.broadcast %cst_148 : f32 to vector<1x32xf32>
    %293 = arith.divf %291, %292 : vector<1x32xf32>
    %294 = vector.broadcast %286 : vector<1x32xf32> to vector<16x32xf32>
    %295 = arith.subf %282, %294 : vector<16x32xf32>
    %cst_149 = arith.constant 9.99999974E-6 : f32
    %296 = vector.broadcast %cst_149 : f32 to vector<1x32xf32>
    %297 = arith.addf %293, %296 : vector<1x32xf32>
    %298 = math.rsqrt %297 : vector<1x32xf32>
    %299 = vector.broadcast %298 : vector<1x32xf32> to vector<16x32xf32>
    %300 = arith.mulf %295, %299 : vector<16x32xf32>
    %301 = vector.broadcast %216 : vector<1x32xf32> to vector<16x32xf32>
    %302 = arith.mulf %300, %301 : vector<16x32xf32>
    %303 = vector.broadcast %217 : vector<1x32xf32> to vector<16x32xf32>
    %304 = arith.addf %302, %303 : vector<16x32xf32>
    %305 = arith.negf %304 : vector<16x32xf32>
    %306 = math.exp %305 : vector<16x32xf32>
    %cst_150 = arith.constant 1.000000e+00 : f32
    %307 = vector.broadcast %cst_150 : f32 to vector<16x32xf32>
    %308 = arith.addf %307, %306 : vector<16x32xf32>
    %309 = arith.divf %307, %308 : vector<16x32xf32>
    %310 = arith.mulf %304, %309 : vector<16x32xf32>
    %c0_151 = arith.constant 0 : index
    %c0_152 = arith.constant 0 : index
    %311 = vector.load %arg45[%c0_151, %c0_152] : memref<32x32xf32, #tpu.memory_space<vmem>>, vector<32x32xf32>
    %c0_153 = arith.constant 0 : index
    %c0_154 = arith.constant 0 : index
    %312 = vector.load %arg46[%c0_153, %c0_154] : memref<1x32xf32, #tpu.memory_space<vmem>>, vector<1x32xf32>
    %c0_155 = arith.constant 0 : index
    %c0_156 = arith.constant 0 : index
    %313 = vector.load %arg47[%c0_155, %c0_156] : memref<1x32xf32, #tpu.memory_space<vmem>>, vector<1x32xf32>
    %c0_157 = arith.constant 0 : index
    %c0_158 = arith.constant 0 : index
    %314 = vector.load %arg48[%c0_157, %c0_158] : memref<1x32xf32, #tpu.memory_space<vmem>>, vector<1x32xf32>
    %c0_159 = arith.constant 0 : index
    %c0_160 = arith.constant 0 : index
    %315 = vector.load %arg49[%c0_159, %c0_160] : memref<32x32xf32, #tpu.memory_space<vmem>>, vector<32x32xf32>
    %c0_161 = arith.constant 0 : index
    %c0_162 = arith.constant 0 : index
    %316 = vector.load %arg50[%c0_161, %c0_162] : memref<1x32xf32, #tpu.memory_space<vmem>>, vector<1x32xf32>
    %c0_163 = arith.constant 0 : index
    %c0_164 = arith.constant 0 : index
    %317 = vector.load %arg51[%c0_163, %c0_164] : memref<1x32xf32, #tpu.memory_space<vmem>>, vector<1x32xf32>
    %c0_165 = arith.constant 0 : index
    %c0_166 = arith.constant 0 : index
    %318 = vector.load %arg52[%c0_165, %c0_166] : memref<1x32xf32, #tpu.memory_space<vmem>>, vector<1x32xf32>
    %c0_167 = arith.constant 0 : index
    %c0_168 = arith.constant 0 : index
    %319 = vector.load %arg53[%c0_167, %c0_168] : memref<32x32xf32, #tpu.memory_space<vmem>>, vector<32x32xf32>
    %c0_169 = arith.constant 0 : index
    %c0_170 = arith.constant 0 : index
    %320 = vector.load %arg54[%c0_169, %c0_170] : memref<32x32xf32, #tpu.memory_space<vmem>>, vector<32x32xf32>
    %c0_171 = arith.constant 0 : index
    %c0_172 = arith.constant 0 : index
    %321 = vector.load %arg55[%c0_171, %c0_172] : memref<32x32xf32, #tpu.memory_space<vmem>>, vector<32x32xf32>
    %c0_173 = arith.constant 0 : index
    %c0_174 = arith.constant 0 : index
    %322 = vector.load %arg56[%c0_173, %c0_174] : memref<1x32xf32, #tpu.memory_space<vmem>>, vector<1x32xf32>
    %c0_175 = arith.constant 0 : index
    %c0_176 = arith.constant 0 : index
    %323 = vector.load %arg57[%c0_175, %c0_176] : memref<32x32xf32, #tpu.memory_space<vmem>>, vector<32x32xf32>
    %c0_177 = arith.constant 0 : index
    %c0_178 = arith.constant 0 : index
    %324 = vector.load %arg58[%c0_177, %c0_178] : memref<1x32xf32, #tpu.memory_space<vmem>>, vector<1x32xf32>
    %cst_179 = arith.constant dense<0.000000e+00> : vector<16x32xf32>
    %325 = tpu.matmul %7, %310, %cst_179 {dimension_numbers = #tpu.dot_dimension_numbers<[1], [0], [0], [1], [0, 0, 1, 1], [], []>} : vector<16x16xf32>, vector<16x32xf32>, vector<16x32xf32> -> vector<16x32xf32>
    %326 = vector.extract_strided_slice %325 {offsets = [0, 0], sizes = [8, 32], strides = [1, 1]} : vector<16x32xf32> to vector<8x32xf32>
    %cst_180 = arith.constant dense<0.000000e+00> : vector<8x32xf32>
    %327 = tpu.matmul %326, %319, %cst_180 {dimension_numbers = #tpu.dot_dimension_numbers<[1], [0], [0], [1], [0, 0, 1, 1], [], []>} : vector<8x32xf32>, vector<32x32xf32>, vector<8x32xf32> -> vector<8x32xf32>
    %cst_181 = arith.constant dense<0.000000e+00> : vector<8x32xf32>
    %328 = tpu.matmul %248, %320, %cst_181 {dimension_numbers = #tpu.dot_dimension_numbers<[1], [0], [0], [1], [0, 0, 1, 1], [], []>} : vector<8x32xf32>, vector<32x32xf32>, vector<8x32xf32> -> vector<8x32xf32>
    %329 = arith.addf %327, %328 : vector<8x32xf32>
    %330 = vector.extract_strided_slice %325 {offsets = [8, 0], sizes = [8, 32], strides = [1, 1]} : vector<16x32xf32> to vector<8x32xf32>
    %cst_182 = arith.constant dense<0.000000e+00> : vector<8x32xf32>
    %331 = tpu.matmul %330, %321, %cst_182 {dimension_numbers = #tpu.dot_dimension_numbers<[1], [0], [0], [1], [0, 0, 1, 1], [], []>} : vector<8x32xf32>, vector<32x32xf32>, vector<8x32xf32> -> vector<8x32xf32>
    %332 = arith.addf %329, %331 : vector<8x32xf32>
    %333 = vector.broadcast %322 : vector<1x32xf32> to vector<8x32xf32>
    %334 = arith.addf %332, %333 : vector<8x32xf32>
    %335 = arith.negf %334 : vector<8x32xf32>
    %336 = math.exp %335 : vector<8x32xf32>
    %cst_183 = arith.constant 1.000000e+00 : f32
    %337 = vector.broadcast %cst_183 : f32 to vector<8x32xf32>
    %338 = arith.addf %337, %336 : vector<8x32xf32>
    %339 = arith.divf %337, %338 : vector<8x32xf32>
    %340 = arith.mulf %334, %339 : vector<8x32xf32>
    %cst_184 = arith.constant dense<0.000000e+00> : vector<8x32xf32>
    %341 = tpu.matmul %340, %323, %cst_184 {dimension_numbers = #tpu.dot_dimension_numbers<[1], [0], [0], [1], [0, 0, 1, 1], [], []>} : vector<8x32xf32>, vector<32x32xf32>, vector<8x32xf32> -> vector<8x32xf32>
    %342 = vector.broadcast %324 : vector<1x32xf32> to vector<8x32xf32>
    %343 = arith.addf %341, %342 : vector<8x32xf32>
    %344 = arith.negf %343 : vector<8x32xf32>
    %345 = math.exp %344 : vector<8x32xf32>
    %cst_185 = arith.constant 1.000000e+00 : f32
    %346 = vector.broadcast %cst_185 : f32 to vector<8x32xf32>
    %347 = arith.addf %346, %345 : vector<8x32xf32>
    %348 = arith.divf %346, %347 : vector<8x32xf32>
    %349 = arith.mulf %343, %348 : vector<8x32xf32>
    %cst_186 = arith.constant dense<0.000000e+00> : vector<16x32xf32>
    %350 = tpu.matmul %310, %311, %cst_186 {dimension_numbers = #tpu.dot_dimension_numbers<[1], [0], [0], [1], [0, 0, 1, 1], [], []>} : vector<16x32xf32>, vector<32x32xf32>, vector<16x32xf32> -> vector<16x32xf32>
    %351 = vector.broadcast %312 : vector<1x32xf32> to vector<16x32xf32>
    %352 = arith.addf %350, %351 : vector<16x32xf32>
    %cst_187 = arith.constant dense<0.000000e+00> : vector<32xf32>
    %353 = vector.multi_reduction <add>, %352, %cst_187 [0] : vector<16x32xf32> to vector<32xf32>
    %354 = vector.shape_cast %353 : vector<32xf32> to vector<1x32xf32>
    %cst_188 = arith.constant 1.600000e+01 : f32
    %355 = vector.broadcast %cst_188 : f32 to vector<1x32xf32>
    %356 = arith.divf %354, %355 : vector<1x32xf32>
    %357 = vector.broadcast %356 : vector<1x32xf32> to vector<16x32xf32>
    %358 = arith.subf %352, %357 : vector<16x32xf32>
    %359 = arith.mulf %358, %358 : vector<16x32xf32>
    %cst_189 = arith.constant dense<0.000000e+00> : vector<32xf32>
    %360 = vector.multi_reduction <add>, %359, %cst_189 [0] : vector<16x32xf32> to vector<32xf32>
    %361 = vector.shape_cast %360 : vector<32xf32> to vector<1x32xf32>
    %cst_190 = arith.constant 1.600000e+01 : f32
    %362 = vector.broadcast %cst_190 : f32 to vector<1x32xf32>
    %363 = arith.divf %361, %362 : vector<1x32xf32>
    %364 = vector.broadcast %356 : vector<1x32xf32> to vector<16x32xf32>
    %365 = arith.subf %352, %364 : vector<16x32xf32>
    %cst_191 = arith.constant 9.99999974E-6 : f32
    %366 = vector.broadcast %cst_191 : f32 to vector<1x32xf32>
    %367 = arith.addf %363, %366 : vector<1x32xf32>
    %368 = math.rsqrt %367 : vector<1x32xf32>
    %369 = vector.broadcast %368 : vector<1x32xf32> to vector<16x32xf32>
    %370 = arith.mulf %365, %369 : vector<16x32xf32>
    %371 = vector.broadcast %313 : vector<1x32xf32> to vector<16x32xf32>
    %372 = arith.mulf %370, %371 : vector<16x32xf32>
    %373 = vector.broadcast %314 : vector<1x32xf32> to vector<16x32xf32>
    %374 = arith.addf %372, %373 : vector<16x32xf32>
    %375 = arith.negf %374 : vector<16x32xf32>
    %376 = math.exp %375 : vector<16x32xf32>
    %cst_192 = arith.constant 1.000000e+00 : f32
    %377 = vector.broadcast %cst_192 : f32 to vector<16x32xf32>
    %378 = arith.addf %377, %376 : vector<16x32xf32>
    %379 = arith.divf %377, %378 : vector<16x32xf32>
    %380 = arith.mulf %374, %379 : vector<16x32xf32>
    %cst_193 = arith.constant dense<0.000000e+00> : vector<16x32xf32>
    %381 = tpu.matmul %380, %315, %cst_193 {dimension_numbers = #tpu.dot_dimension_numbers<[1], [0], [0], [1], [0, 0, 1, 1], [], []>} : vector<16x32xf32>, vector<32x32xf32>, vector<16x32xf32> -> vector<16x32xf32>
    %382 = vector.broadcast %316 : vector<1x32xf32> to vector<16x32xf32>
    %383 = arith.addf %381, %382 : vector<16x32xf32>
    %cst_194 = arith.constant dense<0.000000e+00> : vector<32xf32>
    %384 = vector.multi_reduction <add>, %383, %cst_194 [0] : vector<16x32xf32> to vector<32xf32>
    %385 = vector.shape_cast %384 : vector<32xf32> to vector<1x32xf32>
    %cst_195 = arith.constant 1.600000e+01 : f32
    %386 = vector.broadcast %cst_195 : f32 to vector<1x32xf32>
    %387 = arith.divf %385, %386 : vector<1x32xf32>
    %388 = vector.broadcast %387 : vector<1x32xf32> to vector<16x32xf32>
    %389 = arith.subf %383, %388 : vector<16x32xf32>
    %390 = arith.mulf %389, %389 : vector<16x32xf32>
    %cst_196 = arith.constant dense<0.000000e+00> : vector<32xf32>
    %391 = vector.multi_reduction <add>, %390, %cst_196 [0] : vector<16x32xf32> to vector<32xf32>
    %392 = vector.shape_cast %391 : vector<32xf32> to vector<1x32xf32>
    %cst_197 = arith.constant 1.600000e+01 : f32
    %393 = vector.broadcast %cst_197 : f32 to vector<1x32xf32>
    %394 = arith.divf %392, %393 : vector<1x32xf32>
    %395 = vector.broadcast %387 : vector<1x32xf32> to vector<16x32xf32>
    %396 = arith.subf %383, %395 : vector<16x32xf32>
    %cst_198 = arith.constant 9.99999974E-6 : f32
    %397 = vector.broadcast %cst_198 : f32 to vector<1x32xf32>
    %398 = arith.addf %394, %397 : vector<1x32xf32>
    %399 = math.rsqrt %398 : vector<1x32xf32>
    %400 = vector.broadcast %399 : vector<1x32xf32> to vector<16x32xf32>
    %401 = arith.mulf %396, %400 : vector<16x32xf32>
    %402 = vector.broadcast %317 : vector<1x32xf32> to vector<16x32xf32>
    %403 = arith.mulf %401, %402 : vector<16x32xf32>
    %404 = vector.broadcast %318 : vector<1x32xf32> to vector<16x32xf32>
    %405 = arith.addf %403, %404 : vector<16x32xf32>
    %406 = arith.negf %405 : vector<16x32xf32>
    %407 = math.exp %406 : vector<16x32xf32>
    %cst_199 = arith.constant 1.000000e+00 : f32
    %408 = vector.broadcast %cst_199 : f32 to vector<16x32xf32>
    %409 = arith.addf %408, %407 : vector<16x32xf32>
    %410 = arith.divf %408, %409 : vector<16x32xf32>
    %411 = arith.mulf %405, %410 : vector<16x32xf32>
    %c0_200 = arith.constant 0 : index
    %c0_201 = arith.constant 0 : index
    %412 = vector.load %arg59[%c0_200, %c0_201] : memref<32x32xf32, #tpu.memory_space<vmem>>, vector<32x32xf32>
    %c0_202 = arith.constant 0 : index
    %c0_203 = arith.constant 0 : index
    %413 = vector.load %arg60[%c0_202, %c0_203] : memref<1x32xf32, #tpu.memory_space<vmem>>, vector<1x32xf32>
    %c0_204 = arith.constant 0 : index
    %c0_205 = arith.constant 0 : index
    %414 = vector.load %arg61[%c0_204, %c0_205] : memref<1x32xf32, #tpu.memory_space<vmem>>, vector<1x32xf32>
    %c0_206 = arith.constant 0 : index
    %c0_207 = arith.constant 0 : index
    %415 = vector.load %arg62[%c0_206, %c0_207] : memref<1x32xf32, #tpu.memory_space<vmem>>, vector<1x32xf32>
    %c0_208 = arith.constant 0 : index
    %c0_209 = arith.constant 0 : index
    %416 = vector.load %arg63[%c0_208, %c0_209] : memref<32x32xf32, #tpu.memory_space<vmem>>, vector<32x32xf32>
    %c0_210 = arith.constant 0 : index
    %c0_211 = arith.constant 0 : index
    %417 = vector.load %arg64[%c0_210, %c0_211] : memref<1x32xf32, #tpu.memory_space<vmem>>, vector<1x32xf32>
    %c0_212 = arith.constant 0 : index
    %c0_213 = arith.constant 0 : index
    %418 = vector.load %arg65[%c0_212, %c0_213] : memref<1x32xf32, #tpu.memory_space<vmem>>, vector<1x32xf32>
    %c0_214 = arith.constant 0 : index
    %c0_215 = arith.constant 0 : index
    %419 = vector.load %arg66[%c0_214, %c0_215] : memref<1x32xf32, #tpu.memory_space<vmem>>, vector<1x32xf32>
    %c0_216 = arith.constant 0 : index
    %c0_217 = arith.constant 0 : index
    %420 = vector.load %arg67[%c0_216, %c0_217] : memref<32x32xf32, #tpu.memory_space<vmem>>, vector<32x32xf32>
    %c0_218 = arith.constant 0 : index
    %c0_219 = arith.constant 0 : index
    %421 = vector.load %arg68[%c0_218, %c0_219] : memref<32x32xf32, #tpu.memory_space<vmem>>, vector<32x32xf32>
    %c0_220 = arith.constant 0 : index
    %c0_221 = arith.constant 0 : index
    %422 = vector.load %arg69[%c0_220, %c0_221] : memref<32x32xf32, #tpu.memory_space<vmem>>, vector<32x32xf32>
    %c0_222 = arith.constant 0 : index
    %c0_223 = arith.constant 0 : index
    %423 = vector.load %arg70[%c0_222, %c0_223] : memref<1x32xf32, #tpu.memory_space<vmem>>, vector<1x32xf32>
    %c0_224 = arith.constant 0 : index
    %c0_225 = arith.constant 0 : index
    %424 = vector.load %arg71[%c0_224, %c0_225] : memref<32x32xf32, #tpu.memory_space<vmem>>, vector<32x32xf32>
    %c0_226 = arith.constant 0 : index
    %c0_227 = arith.constant 0 : index
    %425 = vector.load %arg72[%c0_226, %c0_227] : memref<1x32xf32, #tpu.memory_space<vmem>>, vector<1x32xf32>
    %cst_228 = arith.constant dense<0.000000e+00> : vector<16x32xf32>
    %426 = tpu.matmul %7, %411, %cst_228 {dimension_numbers = #tpu.dot_dimension_numbers<[1], [0], [0], [1], [0, 0, 1, 1], [], []>} : vector<16x16xf32>, vector<16x32xf32>, vector<16x32xf32> -> vector<16x32xf32>
    %427 = vector.extract_strided_slice %426 {offsets = [0, 0], sizes = [8, 32], strides = [1, 1]} : vector<16x32xf32> to vector<8x32xf32>
    %cst_229 = arith.constant dense<0.000000e+00> : vector<8x32xf32>
    %428 = tpu.matmul %427, %420, %cst_229 {dimension_numbers = #tpu.dot_dimension_numbers<[1], [0], [0], [1], [0, 0, 1, 1], [], []>} : vector<8x32xf32>, vector<32x32xf32>, vector<8x32xf32> -> vector<8x32xf32>
    %cst_230 = arith.constant dense<0.000000e+00> : vector<8x32xf32>
    %429 = tpu.matmul %349, %421, %cst_230 {dimension_numbers = #tpu.dot_dimension_numbers<[1], [0], [0], [1], [0, 0, 1, 1], [], []>} : vector<8x32xf32>, vector<32x32xf32>, vector<8x32xf32> -> vector<8x32xf32>
    %430 = arith.addf %428, %429 : vector<8x32xf32>
    %431 = vector.extract_strided_slice %426 {offsets = [8, 0], sizes = [8, 32], strides = [1, 1]} : vector<16x32xf32> to vector<8x32xf32>
    %cst_231 = arith.constant dense<0.000000e+00> : vector<8x32xf32>
    %432 = tpu.matmul %431, %422, %cst_231 {dimension_numbers = #tpu.dot_dimension_numbers<[1], [0], [0], [1], [0, 0, 1, 1], [], []>} : vector<8x32xf32>, vector<32x32xf32>, vector<8x32xf32> -> vector<8x32xf32>
    %433 = arith.addf %430, %432 : vector<8x32xf32>
    %434 = vector.broadcast %423 : vector<1x32xf32> to vector<8x32xf32>
    %435 = arith.addf %433, %434 : vector<8x32xf32>
    %436 = arith.negf %435 : vector<8x32xf32>
    %437 = math.exp %436 : vector<8x32xf32>
    %cst_232 = arith.constant 1.000000e+00 : f32
    %438 = vector.broadcast %cst_232 : f32 to vector<8x32xf32>
    %439 = arith.addf %438, %437 : vector<8x32xf32>
    %440 = arith.divf %438, %439 : vector<8x32xf32>
    %441 = arith.mulf %435, %440 : vector<8x32xf32>
    %cst_233 = arith.constant dense<0.000000e+00> : vector<8x32xf32>
    %442 = tpu.matmul %441, %424, %cst_233 {dimension_numbers = #tpu.dot_dimension_numbers<[1], [0], [0], [1], [0, 0, 1, 1], [], []>} : vector<8x32xf32>, vector<32x32xf32>, vector<8x32xf32> -> vector<8x32xf32>
    %443 = vector.broadcast %425 : vector<1x32xf32> to vector<8x32xf32>
    %444 = arith.addf %442, %443 : vector<8x32xf32>
    %445 = arith.negf %444 : vector<8x32xf32>
    %446 = math.exp %445 : vector<8x32xf32>
    %cst_234 = arith.constant 1.000000e+00 : f32
    %447 = vector.broadcast %cst_234 : f32 to vector<8x32xf32>
    %448 = arith.addf %447, %446 : vector<8x32xf32>
    %449 = arith.divf %447, %448 : vector<8x32xf32>
    %450 = arith.mulf %444, %449 : vector<8x32xf32>
    %cst_235 = arith.constant dense<0.000000e+00> : vector<16x32xf32>
    %451 = tpu.matmul %411, %412, %cst_235 {dimension_numbers = #tpu.dot_dimension_numbers<[1], [0], [0], [1], [0, 0, 1, 1], [], []>} : vector<16x32xf32>, vector<32x32xf32>, vector<16x32xf32> -> vector<16x32xf32>
    %452 = vector.broadcast %413 : vector<1x32xf32> to vector<16x32xf32>
    %453 = arith.addf %451, %452 : vector<16x32xf32>
    %cst_236 = arith.constant dense<0.000000e+00> : vector<32xf32>
    %454 = vector.multi_reduction <add>, %453, %cst_236 [0] : vector<16x32xf32> to vector<32xf32>
    %455 = vector.shape_cast %454 : vector<32xf32> to vector<1x32xf32>
    %cst_237 = arith.constant 1.600000e+01 : f32
    %456 = vector.broadcast %cst_237 : f32 to vector<1x32xf32>
    %457 = arith.divf %455, %456 : vector<1x32xf32>
    %458 = vector.broadcast %457 : vector<1x32xf32> to vector<16x32xf32>
    %459 = arith.subf %453, %458 : vector<16x32xf32>
    %460 = arith.mulf %459, %459 : vector<16x32xf32>
    %cst_238 = arith.constant dense<0.000000e+00> : vector<32xf32>
    %461 = vector.multi_reduction <add>, %460, %cst_238 [0] : vector<16x32xf32> to vector<32xf32>
    %462 = vector.shape_cast %461 : vector<32xf32> to vector<1x32xf32>
    %cst_239 = arith.constant 1.600000e+01 : f32
    %463 = vector.broadcast %cst_239 : f32 to vector<1x32xf32>
    %464 = arith.divf %462, %463 : vector<1x32xf32>
    %465 = vector.broadcast %457 : vector<1x32xf32> to vector<16x32xf32>
    %466 = arith.subf %453, %465 : vector<16x32xf32>
    %cst_240 = arith.constant 9.99999974E-6 : f32
    %467 = vector.broadcast %cst_240 : f32 to vector<1x32xf32>
    %468 = arith.addf %464, %467 : vector<1x32xf32>
    %469 = math.rsqrt %468 : vector<1x32xf32>
    %470 = vector.broadcast %469 : vector<1x32xf32> to vector<16x32xf32>
    %471 = arith.mulf %466, %470 : vector<16x32xf32>
    %472 = vector.broadcast %414 : vector<1x32xf32> to vector<16x32xf32>
    %473 = arith.mulf %471, %472 : vector<16x32xf32>
    %474 = vector.broadcast %415 : vector<1x32xf32> to vector<16x32xf32>
    %475 = arith.addf %473, %474 : vector<16x32xf32>
    %476 = arith.negf %475 : vector<16x32xf32>
    %477 = math.exp %476 : vector<16x32xf32>
    %cst_241 = arith.constant 1.000000e+00 : f32
    %478 = vector.broadcast %cst_241 : f32 to vector<16x32xf32>
    %479 = arith.addf %478, %477 : vector<16x32xf32>
    %480 = arith.divf %478, %479 : vector<16x32xf32>
    %481 = arith.mulf %475, %480 : vector<16x32xf32>
    %cst_242 = arith.constant dense<0.000000e+00> : vector<16x32xf32>
    %482 = tpu.matmul %481, %416, %cst_242 {dimension_numbers = #tpu.dot_dimension_numbers<[1], [0], [0], [1], [0, 0, 1, 1], [], []>} : vector<16x32xf32>, vector<32x32xf32>, vector<16x32xf32> -> vector<16x32xf32>
    %483 = vector.broadcast %417 : vector<1x32xf32> to vector<16x32xf32>
    %484 = arith.addf %482, %483 : vector<16x32xf32>
    %cst_243 = arith.constant dense<0.000000e+00> : vector<32xf32>
    %485 = vector.multi_reduction <add>, %484, %cst_243 [0] : vector<16x32xf32> to vector<32xf32>
    %486 = vector.shape_cast %485 : vector<32xf32> to vector<1x32xf32>
    %cst_244 = arith.constant 1.600000e+01 : f32
    %487 = vector.broadcast %cst_244 : f32 to vector<1x32xf32>
    %488 = arith.divf %486, %487 : vector<1x32xf32>
    %489 = vector.broadcast %488 : vector<1x32xf32> to vector<16x32xf32>
    %490 = arith.subf %484, %489 : vector<16x32xf32>
    %491 = arith.mulf %490, %490 : vector<16x32xf32>
    %cst_245 = arith.constant dense<0.000000e+00> : vector<32xf32>
    %492 = vector.multi_reduction <add>, %491, %cst_245 [0] : vector<16x32xf32> to vector<32xf32>
    %493 = vector.shape_cast %492 : vector<32xf32> to vector<1x32xf32>
    %cst_246 = arith.constant 1.600000e+01 : f32
    %494 = vector.broadcast %cst_246 : f32 to vector<1x32xf32>
    %495 = arith.divf %493, %494 : vector<1x32xf32>
    %496 = vector.broadcast %488 : vector<1x32xf32> to vector<16x32xf32>
    %497 = arith.subf %484, %496 : vector<16x32xf32>
    %cst_247 = arith.constant 9.99999974E-6 : f32
    %498 = vector.broadcast %cst_247 : f32 to vector<1x32xf32>
    %499 = arith.addf %495, %498 : vector<1x32xf32>
    %500 = math.rsqrt %499 : vector<1x32xf32>
    %501 = vector.broadcast %500 : vector<1x32xf32> to vector<16x32xf32>
    %502 = arith.mulf %497, %501 : vector<16x32xf32>
    %503 = vector.broadcast %418 : vector<1x32xf32> to vector<16x32xf32>
    %504 = arith.mulf %502, %503 : vector<16x32xf32>
    %505 = vector.broadcast %419 : vector<1x32xf32> to vector<16x32xf32>
    %506 = arith.addf %504, %505 : vector<16x32xf32>
    %507 = arith.negf %506 : vector<16x32xf32>
    %508 = math.exp %507 : vector<16x32xf32>
    %cst_248 = arith.constant 1.000000e+00 : f32
    %509 = vector.broadcast %cst_248 : f32 to vector<16x32xf32>
    %510 = arith.addf %509, %508 : vector<16x32xf32>
    %511 = arith.divf %509, %510 : vector<16x32xf32>
    %512 = arith.mulf %506, %511 : vector<16x32xf32>
    %c0_249 = arith.constant 0 : index
    %c0_250 = arith.constant 0 : index
    %513 = vector.load %arg73[%c0_249, %c0_250] : memref<16x32xf32, #tpu.memory_space<vmem>>, vector<16x32xf32>
    tpu.vector_store %arg73[%c0_249, %c0_250], %512 {strides = array<i32>} : memref<16x32xf32, #tpu.memory_space<vmem>>, vector<16x32xf32>,
    %c0_251 = arith.constant 0 : index
    %c0_252 = arith.constant 0 : index
    %514 = vector.load %arg74[%c0_251, %c0_252] : memref<8x32xf32, #tpu.memory_space<vmem>>, vector<8x32xf32>
    tpu.vector_store %arg74[%c0_251, %c0_252], %450 {strides = array<i32>} : memref<8x32xf32, #tpu.memory_space<vmem>>, vector<8x32xf32>,
    return
  }
}

</mosaic_0001>

<bundles_post_ra>
// kernel: gcn_network_forward.1
= control target key start
LH: loop header
LB: loop body
LE: loop exit
PB: predicated region body
PF: predicated region fallthrough
CT: control target
= control target key end

     0   :  { %s5604_s6 = smov 1   ;;  %s5605_s10 = smov 2   ;;  %s6490_s0 = inlined_call_operand.smem [shape: u32[75], index: -1, kind: input, shape index: {}] }
   0x1   :  { %s5712_s5 = sld [smem:[%s6490_s0]]   ;;  %s5606_s14 = smov 3  }
   0x2   :  { %s5717_s9 = sld [smem:[%s6490_s0 + %s5604_s6]]   ;;  %s5607_s18 = smov 4  }
   0x3   :  { %s5722_s13 = sld [smem:[%s6490_s0 + %s5605_s10]]   ;;  %s5608_s22 = smov 5  }
   0x4   :  { %s5727_s17 = sld [smem:[%s6490_s0 + %s5606_s14]]   ;;  %s5609_s26 = smov 6  }
   0x5   :  { %s5732_s21 = sld [smem:[%s6490_s0 + %s5607_s18]]   ;;  %s5610_s30 = smov 7  }
   0x6   :  { %s5737_s25 = sld [smem:[%s6490_s0 + %s5608_s22]]   ;;  %s5611_s4 = smov 8  }
   0x7   :  { %6522 = sst [smem:[#allocation47_spill]] %s5712_s5  ;;  %s5612_s10 = smov 9  }
   0x8   :  { %6523 = sst [smem:[#allocation48_spill]] %s5717_s9  ;;  %s5613_s15 = smov 10  }
   0x9   :  { %6524 = sst [smem:[#allocation49_spill]] %s5722_s13  ;;  %s5614_s20 = smov 11  }
   0xa   :  { %6525 = sst [smem:[#allocation50_spill]] %s5727_s17  ;;  %s5616_s1 = smov 13  }
   0xb   :  { %6526 = sst [smem:[#allocation51_spill]] %s5732_s21  ;;  %s5617_s7 = smov 14  }
   0xc   :  { %6527 = sst [smem:[#allocation52_spill]] %s5737_s25  ;;  %s5619_s22 = smov 16  }
   0xd   :  { %s5742_s29 = sld [smem:[%s6490_s0 + %s5609_s26]]   ;;  %s5615_s26 = smov 12  }
   0xe   :  { %s5747_s3 = sld [smem:[%s6490_s0 + %s5610_s30]]   ;;  %s5620_s28 = smov 17  }
   0xf   :  { %s5752_s8 = sld [smem:[%s6490_s0 + %s5611_s4]]  }
  0x10   :  { %s5757_s14 = sld [smem:[%s6490_s0 + %s5612_s10]]  }
  0x11   :  { %s5762_s19 = sld [smem:[%s6490_s0 + %s5613_s15]]   ;;  %s5618_s15 = smov 15  }
  0x12   :  { %s5767_s24 = sld [smem:[%s6490_s0 + %s5614_s20]]  }
  0x13   :  { %6528 = sst [smem:[#allocation53_spill]] %s5742_s29 }
  0x14   :  { %6529 = sst [smem:[#allocation54_spill]] %s5747_s3 }
  0x15   :  { %6530 = sst [smem:[#allocation55_spill]] %s5752_s8 }
  0x16   :  { %6531 = sst [smem:[#allocation56_spill]] %s5757_s14 }
  0x17   :  { %6532 = sst [smem:[#allocation57_spill]] %s5762_s19 }
  0x18   :  { %6533 = sst [smem:[#allocation58_spill]] %s5767_s24 }
  0x19   :  { %s5772_s30 = sld [smem:[%s6490_s0 + %s5615_s26]]  }
  0x1a   :  { %s5777_s6 = sld [smem:[%s6490_s0 + %s5616_s1]]  }
  0x1b   :  { %s5782_s12 = sld [smem:[%s6490_s0 + %s5617_s7]]   ;;  %s5621_s7 = smov 18  }
  0x1c   :  { %s5787_s20 = sld [smem:[%s6490_s0 + %s5618_s15]]   ;;  %s5622_s15 = smov 19  }
  0x1d   :  { %s5792_s27 = sld [smem:[%s6490_s0 + %s5619_s22]]   ;;  %s5623_s22 = smov 20  }
  0x1e   :  { %s5797_s4 = sld [smem:[%s6490_s0 + %s5620_s28]]   ;;  %s5624_s28 = smov 21  }
  0x1f   :  { %6534 = sst [smem:[#allocation59_spill]] %s5772_s30 }
  0x20   :  { %6535 = sst [smem:[#allocation60_spill]] %s5777_s6 }
  0x21   :  { %6536 = sst [smem:[#allocation61_spill]] %s5782_s12 }
  0x22   :  { %6537 = sst [smem:[#allocation62_spill]] %s5787_s20 }
  0x23   :  { %6538 = sst [smem:[#allocation63_spill]] %s5792_s27 }
  0x24   :  { %6539 = sst [smem:[#allocation64_spill]] %s5797_s4 }
  0x25   :  { %s5802_s19 = sld [smem:[%s6490_s0 + %s5621_s7]]   ;;  %s5625_s7 = smov 22  }
  0x26   :  { %s5807_s14 = sld [smem:[%s6490_s0 + %s5622_s15]]   ;;  %s5626_s15 = smov 23  }
  0x27   :  { %s5812_s8 = sld [smem:[%s6490_s0 + %s5623_s22]]   ;;  %s5627_s22 = smov 24  }
  0x28   :  { %s5817_s4 = sld [smem:[%s6490_s0 + %s5624_s28]]   ;;  %s5628_s28 = smov 25  }
  0x2b   :  { %6540 = sst [smem:[#allocation65_spill]] %s5802_s19 }
  0x2c   :  { %6541 = sst [smem:[#allocation66_spill]] %s5807_s14 }
  0x2d   :  { %6542 = sst [smem:[#allocation67_spill]] %s5812_s8 }
  0x2e   :  { %6543 = sst [smem:[#allocation68_spill]] %s5817_s4 }
  0x2f   :  { %s5822_s19 = sld [smem:[%s6490_s0 + %s5625_s7]]   ;;  %s5629_s7 = smov 26  }
  0x30   :  { %s5827_s14 = sld [smem:[%s6490_s0 + %s5626_s15]]   ;;  %s5630_s15 = smov 27  }
  0x31   :  { %s5832_s8 = sld [smem:[%s6490_s0 + %s5627_s22]]   ;;  %s5631_s22 = smov 28  }
  0x32   :  { %s5837_s4 = sld [smem:[%s6490_s0 + %s5628_s28]]   ;;  %s5632_s28 = smov 29  }
  0x35   :  { %6544 = sst [smem:[#allocation69_spill]] %s5822_s19 }
  0x36   :  { %6545 = sst [smem:[#allocation70_spill]] %s5827_s14 }
  0x37   :  { %6546 = sst [smem:[#allocation71_spill]] %s5832_s8 }
  0x38   :  { %6547 = sst [smem:[#allocation72_spill]] %s5837_s4 }
  0x39   :  { %s5842_s19 = sld [smem:[%s6490_s0 + %s5629_s7]]   ;;  %s5633_s7 = smov 30  }
  0x3a   :  { %s5847_s14 = sld [smem:[%s6490_s0 + %s5630_s15]]   ;;  %s5634_s15 = smov 31  }
  0x3b   :  { %s5852_s8 = sld [smem:[%s6490_s0 + %s5631_s22]]   ;;  %s5635_s22 = smov 32  }
  0x3c   :  { %s5857_s4 = sld [smem:[%s6490_s0 + %s5632_s28]]   ;;  %s5636_s28 = smov 33  }
  0x3d   :  { %s5862_s27 = sld [smem:[%s6490_s0 + %s5633_s7]]   ;;  %s5637_s7 = smov 34  }
  0x3f   :  { %6548 = sst [smem:[#allocation73_spill]] %s5842_s19 }
  0x40   :  { %6549 = sst [smem:[#allocation74_spill]] %s5847_s14 }
  0x41   :  { %6550 = sst [smem:[#allocation75_spill]] %s5852_s8 }
  0x42   :  { %6551 = sst [smem:[#allocation76_spill]] %s5857_s4 }
  0x43   :  { %6552 = sst [smem:[#allocation77_spill]] %s5862_s27 }
  0x44   :  { %s5867_s14 = sld [smem:[%s6490_s0 + %s5634_s15]]   ;;  %s5638_s15 = smov 35  }
  0x45   :  { %s5872_s8 = sld [smem:[%s6490_s0 + %s5635_s22]]   ;;  %s5639_s22 = smov 36  }
  0x46   :  { %s5877_s4 = sld [smem:[%s6490_s0 + %s5636_s28]]   ;;  %s5640_s28 = smov 37  }
  0x47   :  { %s5882_s27 = sld [smem:[%s6490_s0 + %s5637_s7]]   ;;  %s5641_s7 = smov 38  }
  0x4a   :  { %6553 = sst [smem:[#allocation78_spill]] %s5867_s14 }
  0x4b   :  { %6554 = sst [smem:[#allocation79_spill]] %s5872_s8 }
  0x4c   :  { %6555 = sst [smem:[#allocation80_spill]] %s5877_s4 }
  0x4d   :  { %6556 = sst [smem:[#allocation81_spill]] %s5882_s27 }
  0x4e   :  { %s5887_s14 = sld [smem:[%s6490_s0 + %s5638_s15]]   ;;  %s5642_s15 = smov 39  }
  0x4f   :  { %s5892_s8 = sld [smem:[%s6490_s0 + %s5639_s22]]   ;;  %s5643_s22 = smov 40  }
  0x50   :  { %s5897_s4 = sld [smem:[%s6490_s0 + %s5640_s28]]   ;;  %s5644_s28 = smov 41  }
  0x51   :  { %s5902_s27 = sld [smem:[%s6490_s0 + %s5641_s7]]   ;;  %s5645_s7 = smov 42  }
  0x52   :  { %s5922_s19 = sld [smem:[%s6490_s0 + %s5645_s7]]   ;;  %s5649_s7 = smov 46  }
  0x53   :  { %s5942_s29 = sld [smem:[%s6490_s0 + %s5649_s7]]   ;;  %s5653_s7 = smov 50  }
  0x54   :  { %6557 = sst [smem:[#allocation82_spill]] %s5887_s14 }
  0x55   :  { %6558 = sst [smem:[#allocation83_spill]] %s5892_s8 }
  0x56   :  { %6559 = sst [smem:[#allocation84_spill]] %s5897_s4 }
  0x57   :  { %s5907_s14 = sld [smem:[%s6490_s0 + %s5642_s15]]   ;;  %s5646_s15 = smov 43  }
  0x58   :  { %s5912_s8 = sld [smem:[%s6490_s0 + %s5643_s22]]   ;;  %s5647_s22 = smov 44  }
  0x59   :  { %s5917_s4 = sld [smem:[%s6490_s0 + %s5644_s28]]   ;;  %s5648_s28 = smov 45  }
  0x5a   :  { %s5962_s21 = sld [smem:[%s6490_s0 + %s5653_s7]]   ;;  %s5657_s7 = smov 54  }
  0x5b   :  { %s5982_s20 = sld [smem:[%s6490_s0 + %s5657_s7]]   ;;  %s5661_s7 = smov 58  }
  0x5d   :  { %6560 = sst [smem:[#allocation85_spill]] %s5907_s14 }
  0x5e   :  { %6561 = sst [smem:[#allocation86_spill]] %s5912_s8 }
  0x5f   :  { %6562 = sst [smem:[#allocation87_spill]] %s5917_s4 }
  0x60   :  { %s5927_s14 = sld [smem:[%s6490_s0 + %s5646_s15]]   ;;  %s5650_s15 = smov 47  }
  0x61   :  { %s5932_s8 = sld [smem:[%s6490_s0 + %s5647_s22]]   ;;  %s5651_s22 = smov 48  }
  0x62   :  { %s5937_s4 = sld [smem:[%s6490_s0 + %s5648_s28]]   ;;  %s5652_s28 = smov 49  }
  0x63   :  { %s5952_s25 = sld [smem:[%s6490_s0 + %s5651_s22]]   ;;  %s5655_s22 = smov 52  }
  0x64   :  { %s5972_s3 = sld [smem:[%s6490_s0 + %s5655_s22]]   ;;  %s5659_s22 = smov 56  }
  0x65   :  { %6567 = sst [smem:[#allocation92_spill]] %s5982_s20 }
  0x66   :  { %6563 = sst [smem:[#allocation88_spill]] %s5927_s14 }
  0x67   :  { %s5947_s14 = sld [smem:[%s6490_s0 + %s5650_s15]]   ;;  %s5654_s15 = smov 51  }
  0x68   :  { %6564 = sst [smem:[#allocation89_spill]] %s5937_s4 }
  0x69   :  { %s5957_s4 = sld [smem:[%s6490_s0 + %s5652_s28]]   ;;  %s5656_s28 = smov 53  }
  0x6a   :  { %s5967_s12 = sld [smem:[%s6490_s0 + %s5654_s15]]   ;;  %s5658_s15 = smov 55  }
  0x6b   :  { %s5987_s17 = sld [smem:[%s6490_s0 + %s5658_s15]]   ;;  %s5662_s15 = smov 59  }
  0x6c   :  { %s5992_s24 = sld [smem:[%s6490_s0 + %s5659_s22]]   ;;  %s5663_s22 = smov 60  }
  0x6d   :  { %s6002_s20 = sld [smem:[%s6490_s0 + %s5661_s7]]   ;;  %s5665_s7 = smov 62  }
  0x6e   :  { %s6012_s6 = sld [smem:[%s6490_s0 + %s5663_s22]]   ;;  %s5667_s22 = smov 64  }
  0x6f   :  { %6565 = sst [smem:[#allocation90_spill]] %s5957_s4 }
  0x70   :  { %s5977_s4 = sld [smem:[%s6490_s0 + %s5656_s28]]   ;;  %s5660_s28 = smov 57  }
  0x71   :  { %6568 = sst [smem:[#allocation93_spill]] %s5987_s17 }
  0x72   :  { %s6007_s17 = sld [smem:[%s6490_s0 + %s5662_s15]]   ;;  %s5666_s15 = smov 63  }
  0x73   :  { %6570 = sst [smem:[#allocation95_spill]] %s6002_s20 }
  0x74   :  { %s6022_s9 = sld [smem:[%s6490_s0 + %s5665_s7]]   ;;  %s5669_s7 = smov 66  }
  0x75   :  { %s6032_s30 = sld [smem:[%s6490_s0 + %s5667_s22]]   ;;  %s5671_s22 = smov 68  }
  0x76   :  { %6566 = sst [smem:[#allocation91_spill]] %s5977_s4 }
  0x77   :  { %s5997_s4 = sld [smem:[%s6490_s0 + %s5660_s28]]   ;;  %s5664_s28 = smov 61  }
  0x78   :  { %6571 = sst [smem:[#allocation96_spill]] %s6007_s17 }
  0x79   :  { %s6027_s17 = sld [smem:[%s6490_s0 + %s5666_s15]]   ;;  %s5670_s15 = smov 67  }
  0x7a   :  { %s6042_s13 = sld [smem:[%s6490_s0 + %s5669_s7]]   ;;  %s5673_s7 = smov 70  }
  0x7b   :  { %6574 = sst [smem:[#allocation99_spill]] %s6032_s30 }
  0x7c   :  { %s6052_s30 = sld [smem:[%s6490_s0 + %s5671_s22]]   ;;  %s5675_s22 = smov 72  }
  0x7d   :  { %6569 = sst [smem:[#allocation94_spill]] %s5997_s4 }
  0x7e   :  { %s6017_s4 = sld [smem:[%s6490_s0 + %s5664_s28]]   ;;  %s5668_s28 = smov 65  }
  0x7f   :  { %6573 = sst [smem:[#allocation98_spill]] %s6027_s17 }
  0x80   :  { %s6037_s5 = sld [smem:[%s6490_s0 + %s5668_s28]]   ;;  %s5672_s28 = smov 69  }
  0x81   :  { %6575 = sst [smem:[#allocation100_spill]] %s6042_s13 }
  0x82   :  { %s6047_s17 = sld [smem:[%s6490_s0 + %s5670_s15]]   ;;  %s5674_s15 = smov 71  }
  0x83   :  { %6577 = sst [smem:[#allocation102_spill]] %s6052_s30 }
  0x84   :  { %6572 = sst [smem:[#allocation97_spill]] %s6017_s4 }
  0x85   :  { %s6057_s4 = sld [smem:[%s6490_s0 + %s5672_s28]]   ;;  %s5676_s28 = smov 73  }
  0x86   :  { %s6062_s13 = sld [smem:[%s6490_s0 + %s5673_s7]]   ;;  %s5677_s7 = smov 74  }
  0x87   :  { %s6072_s30 = sld [smem:[%s6490_s0 + %s5675_s22]]  }
  0x88   :  { %6576 = sst [smem:[#allocation101_spill]] %s6047_s17 }
  0x89   :  { %s6067_s17 = sld [smem:[%s6490_s0 + %s5674_s15]]  }
  0x8a   :  { %s6082_s20 = sld [smem:[%s6490_s0 + %s5677_s7]]  }
  0x8b   :  { %6578 = sst [smem:[#allocation103_spill]] %s6057_s4 }
  0x8c   :  { %s6077_s4 = sld [smem:[%s6490_s0 + %s5676_s28]]  }
  0x8d   :  { %155 = vsyncpa [#allocation3], 0 }
  0x8e   :  { %156 = vsyncpa [#allocation6], 0 }
  0x8f   :  { %157 = vsyncpa [#allocation9], 0 }
  0x90   :  { %158 = vsyncpa [#allocation12], 0 }
  0x91   :  { %159 = vsyncpa [#allocation15], 0 }
  0x92   :  { %160 = vsyncpa [#allocation18], 0 }
  0x93   :  { %161 = vsyncpa [#allocation21], 0 }
  0x94   :  { %162 = vsyncpa [#allocation24], 0 }
  0x95   :  { %163 = vsyncpa [#allocation27], 0 }
  0x96   :  { %164 = vsyncpa [#allocation30], 0 }
  0x97   :  { %165 = vsyncpa [#allocation4], 0 }
  0x98   :  { %166 = vsyncpa [#allocation34], 0  ;;  %s5678_s15 = smov [#allocation5]   ;;  %s5679_s18 = smov [#allocation8]  }
  0x99   :  { %s265_s16 = sshll.u32 %s5678_s15, 4  ;;  %s289_s22 = sshll.u32 %s5679_s18, 4  ;;  %s266_s16 = int_to_ptr.vmem [resolvable:$true] %s265_s16  ;;  %s290_s22 = int_to_ptr.vmem [resolvable:$true] %s289_s22 }
  0x9a   :  { %s5168_s0 = scalar_lea.vmem %s266_s16, 16  ;;  %s5172_s23 = scalar_lea.vmem %s266_s16, 32 }
  0x9b   :  { %p5169_p0 = scmp.ne.s32.totalorder %s266_s16, %s5168_s0  ;;  %p5173_p1 = scmp.lt.s32.totalorder %s266_s16, %s266_s16 }
  0x9c   :  { %p5174_p2 = scmp.lt.s32.totalorder %s5172_s23, %s5168_s0 }
  0x9e   :  { %p5175_p3 = por %p5174_p2, %p5173_p1 }
  0xa0   :  { %p5176_p4 = pnand %p5175_p3, %p5169_p0 }
  0xa2   :  { %5179 = shalt.err (!%p5176_p4)
}
  0xa3   :  { %268 = dma.hbm_to_vmem [thread:$0]  %s5922_s19, 16, %s266_s16, [#allocation6]  }
  0xa4   :  { %s5188_s26 = scalar_lea.vmem %s290_s22, 16  ;;  %s5192_s28 = scalar_lea.vmem %s290_s22, 32 }
  0xa5   :  { %p5189_p5 = scmp.ne.s32.totalorder %s290_s22, %s5188_s26  ;;  %p5193_p6 = scmp.lt.s32.totalorder %s290_s22, %s290_s22 }
  0xa6   :  { %p5194_p7 = scmp.lt.s32.totalorder %s5192_s28, %s5188_s26 }
  0xa8   :  { %p5195_p8 = por %p5194_p7, %p5193_p6 }
  0xaa   :  { %p5196_p9 = pnand %p5195_p8, %p5189_p5 }
  0xac   :  { %5199 = shalt.err (!%p5196_p9)
}
  0xad   :  { %292 = dma.hbm_to_vmem [thread:$0]  %s5942_s29, 16, %s290_s22, [#allocation9]  }
  0xae   :  { %s5680_s1 = smov [#allocation11]   ;;  %s5681_s7 = smov [#allocation14]  }
  0xaf   :  { %s309_s2 = sshll.u32 %s5680_s1, 4  ;;  %s331_s10 = sshll.u32 %s5681_s7, 4  ;;  %s310_s2 = int_to_ptr.vmem [resolvable:$true] %s309_s2  ;;  %s332_s10 = int_to_ptr.vmem [resolvable:$true] %s331_s10 }
  0xb0   :  { %s5208_s11 = scalar_lea.vmem %s310_s2, 16  ;;  %s5212_s15 = scalar_lea.vmem %s310_s2, 32 }
  0xb1   :  { %p5209_p10 = scmp.ne.s32.totalorder %s310_s2, %s5208_s11  ;;  %p5213_p11 = scmp.lt.s32.totalorder %s310_s2, %s310_s2 }
  0xb2   :  { %p5214_p12 = scmp.lt.s32.totalorder %s5212_s15, %s5208_s11 }
  0xb4   :  { %p5215_p13 = por %p5214_p12, %p5213_p11 }
  0xb6   :  { %p5216_p0 = pnand %p5215_p13, %p5209_p10 }
  0xb8   :  { %5219 = shalt.err (!%p5216_p0)
}
  0xb9   :  { %312 = dma.hbm_to_vmem [thread:$0]  %s5952_s25, 16, %s310_s2, [#allocation12]  }
  0xba   :  { %s5228_s19 = scalar_lea.vmem %s332_s10, 16  ;;  %s5232_s16 = scalar_lea.vmem %s332_s10, 32 }
  0xbb   :  { %p5229_p1 = scmp.ne.s32.totalorder %s332_s10, %s5228_s19  ;;  %p5233_p2 = scmp.lt.s32.totalorder %s332_s10, %s332_s10 }
  0xbc   :  { %p5234_p3 = scmp.lt.s32.totalorder %s5232_s16, %s5228_s19 }
  0xbe   :  { %p5235_p4 = por %p5234_p3, %p5233_p2 }
  0xc0   :  { %p5236_p5 = pnand %p5235_p4, %p5229_p1 }
  0xc2   :  { %5239 = shalt.err (!%p5236_p5)
}
  0xc3   :  { %334 = dma.hbm_to_vmem [thread:$0]  %s5967_s12, 16, %s332_s10, [#allocation15]  }
  0xc4   :  { %s5682_s29 = smov [#allocation17]   ;;  %s5683_s22 = smov [#allocation20]  }
  0xc5   :  { %s357_s18 = sshll.u32 %s5682_s29, 4  ;;  %s381_s0 = sshll.u32 %s5683_s22, 4  ;;  %s358_s18 = int_to_ptr.vmem [resolvable:$true] %s357_s18  ;;  %s382_s0 = int_to_ptr.vmem [resolvable:$true] %s381_s0 }
  0xc6   :  { %s5248_s23 = scalar_lea.vmem %s358_s18, 16  ;;  %s5252_s26 = scalar_lea.vmem %s358_s18, 32 }
  0xc7   :  { %p5249_p6 = scmp.ne.s32.totalorder %s358_s18, %s5248_s23  ;;  %p5253_p7 = scmp.lt.s32.totalorder %s358_s18, %s358_s18 }
  0xc8   :  { %p5254_p8 = scmp.lt.s32.totalorder %s5252_s26, %s5248_s23 }
  0xca   :  { %p5255_p9 = por %p5254_p8, %p5253_p7 }
  0xcc   :  { %p5256_p10 = pnand %p5255_p9, %p5249_p6 }
  0xce   :  { %5259 = shalt.err (!%p5256_p10)
}
  0xcf   :  { %360 = dma.hbm_to_vmem [thread:$0]  %s5992_s24, 16, %s358_s18, [#allocation18]  }
  0xd0   :  { %s5268_s25 = scalar_lea.vmem %s382_s0, 16  ;;  %s5272_s28 = scalar_lea.vmem %s382_s0, 32 }
  0xd1   :  { %p5269_p11 = scmp.ne.s32.totalorder %s382_s0, %s5268_s25  ;;  %p5273_p12 = scmp.lt.s32.totalorder %s382_s0, %s382_s0 }
  0xd2   :  { %p5274_p13 = scmp.lt.s32.totalorder %s5272_s28, %s5268_s25 }
  0xd4   :  { %p5275_p0 = por %p5274_p13, %p5273_p12 }
  0xd6   :  { %p5276_p1 = pnand %p5275_p0, %p5269_p11 }
  0xd8   :  { %5279 = shalt.err (!%p5276_p1)
}
  0xd9   :  { %384 = dma.hbm_to_vmem [thread:$0]  %s6012_s6, 16, %s382_s0, [#allocation21]  }
  0xda   :  { %s5684_s12 = smov [#allocation23]   ;;  %s5685_s2 = smov [#allocation26]  }
  0xdb   :  { %s401_s1 = sshll.u32 %s5684_s12, 4  ;;  %s423_s7 = sshll.u32 %s5685_s2, 4  ;;  %s402_s1 = int_to_ptr.vmem [resolvable:$true] %s401_s1  ;;  %s424_s7 = int_to_ptr.vmem [resolvable:$true] %s423_s7 }
  0xdc   :  { %s5288_s10 = scalar_lea.vmem %s402_s1, 16  ;;  %s5292_s11 = scalar_lea.vmem %s402_s1, 32 }
  0xdd   :  { %p5289_p2 = scmp.ne.s32.totalorder %s402_s1, %s5288_s10  ;;  %p5293_p3 = scmp.lt.s32.totalorder %s402_s1, %s402_s1 }
  0xde   :  { %p5294_p4 = scmp.lt.s32.totalorder %s5292_s11, %s5288_s10 }
  0xe0   :  { %p5295_p5 = por %p5294_p4, %p5293_p3 }
  0xe2   :  { %p5296_p6 = pnand %p5295_p5, %p5289_p2 }
  0xe4   :  { %5299 = shalt.err (!%p5296_p6)
}
  0xe5   :  { %404 = dma.hbm_to_vmem [thread:$0]  %s6022_s9, 16, %s402_s1, [#allocation24]  }
  0xe6   :  { %s5308_s24 = scalar_lea.vmem %s424_s7, 16  ;;  %s5312_s15 = scalar_lea.vmem %s424_s7, 32 }
  0xe7   :  { %p5309_p7 = scmp.ne.s32.totalorder %s424_s7, %s5308_s24  ;;  %p5313_p8 = scmp.lt.s32.totalorder %s424_s7, %s424_s7 }
  0xe8   :  { %p5314_p9 = scmp.lt.s32.totalorder %s5312_s15, %s5308_s24 }
  0xea   :  { %p5315_p10 = por %p5314_p9, %p5313_p8 }
  0xec   :  { %p5316_p11 = pnand %p5315_p10, %p5309_p7 }
  0xee   :  { %5319 = shalt.err (!%p5316_p11)
}
  0xef   :  { %426 = dma.hbm_to_vmem [thread:$0]  %s6037_s5, 16, %s424_s7, [#allocation27]  }
  0xf0   :  { %s5686_s6 = smov [#allocation29]   ;;  %s5687_s16 = smov [#allocation2]  }
  0xf1   :  { %s449_s19 = sshll.u32 %s5686_s6, 4  ;;  %s249_s29 = sshll.u32 %s5687_s16, 4  ;;  %s450_s19 = int_to_ptr.vmem [resolvable:$true] %s449_s19  ;;  %s250_s29 = int_to_ptr.vmem [resolvable:$true] %s249_s29 }
  0xf2   :  { %s5328_s18 = scalar_lea.vmem %s450_s19, 16  ;;  %s5332_s22 = scalar_lea.vmem %s450_s19, 32 }
  0xf3   :  { %p5329_p12 = scmp.ne.s32.totalorder %s450_s19, %s5328_s18  ;;  %p5333_p13 = scmp.lt.s32.totalorder %s450_s19, %s450_s19 }
  0xf4   :  { %p5334_p0 = scmp.lt.s32.totalorder %s5332_s22, %s5328_s18 }
  0xf6   :  { %p5335_p1 = por %p5334_p0, %p5333_p13 }
  0xf8   :  { %p5336_p2 = pnand %p5335_p1, %p5329_p12 }
  0xfa   :  { %5339 = shalt.err (!%p5336_p2)
}
  0xfb   :  { %452 = dma.hbm_to_vmem [thread:$0]  %s6062_s13, 16, %s450_s19, [#allocation30]  }
  0xfc   :  { %s5348_s9 = scalar_lea.vmem %s250_s29, 16  ;;  %s5352_s0 = scalar_lea.vmem %s250_s29, 32 }
  0xfd   :  { %p5349_p3 = scmp.ne.s32.totalorder %s250_s29, %s5348_s9  ;;  %p5353_p4 = scmp.lt.s32.totalorder %s250_s29, %s250_s29 }
  0xfe   :  { %p5354_p5 = scmp.lt.s32.totalorder %s5352_s0, %s5348_s9 }
 0x100   :  { %p5355_p6 = por %p5354_p5, %p5353_p4 }
 0x102   :  { %p5356_p7 = pnand %p5355_p6, %p5349_p3 }
 0x104   :  { %5359 = shalt.err (!%p5356_p7)
}
 0x105   :  { %252 = dma.hbm_to_vmem [thread:$0]  %s5902_s27, 16, %s250_s29, [#allocation3]  }
 0x106   :  { %s5688_s5 = smov [#allocation7]   ;;  %s5689_s26 = smov [#allocation10]  }
 0x107   :  { %s277_s23 = sshll.u32 %s5688_s5, 4  ;;  %s299_s25 = sshll.u32 %s5689_s26, 4  ;;  %s278_s23 = int_to_ptr.vmem [resolvable:$true] %s277_s23  ;;  %s300_s25 = int_to_ptr.vmem [resolvable:$true] %s299_s25 }
 0x108   :  { %s5368_s28 = scalar_lea.vmem %s278_s23, 16  ;;  %s5372_s12 = scalar_lea.vmem %s278_s23, 32 }
 0x109   :  { %p5369_p8 = scmp.ne.s32.totalorder %s278_s23, %s5368_s28  ;;  %p5373_p9 = scmp.lt.s32.totalorder %s278_s23, %s278_s23 }
 0x10a   :  { %p5374_p10 = scmp.lt.s32.totalorder %s5372_s12, %s5368_s28 }
 0x10c   :  { %p5375_p11 = por %p5374_p10, %p5373_p9 }
 0x10e   :  { %p5376_p12 = pnand %p5375_p11, %p5369_p8 }
 0x110   :  { %5379 = shalt.err (!%p5376_p12)
}
 0x111   :  { %280 = dma.hbm_to_vmem [thread:$0]  %s5932_s8, 16, %s278_s23, [#allocation6]  }
 0x112   :  { %s5388_s13 = scalar_lea.vmem %s300_s25, 16  ;;  %s5392_s1 = scalar_lea.vmem %s300_s25, 32 }
 0x113   :  { %p5389_p13 = scmp.ne.s32.totalorder %s300_s25, %s5388_s13  ;;  %p5393_p0 = scmp.lt.s32.totalorder %s300_s25, %s300_s25 }
 0x114   :  { %p5394_p1 = scmp.lt.s32.totalorder %s5392_s1, %s5388_s13 }
 0x116   :  { %p5395_p2 = por %p5394_p1, %p5393_p0 }
 0x118   :  { %p5396_p3 = pnand %p5395_p2, %p5389_p13 }
 0x11a   :  { %5399 = shalt.err (!%p5396_p3)
}
 0x11b   :  { %302 = dma.hbm_to_vmem [thread:$0]  %s5947_s14, 16, %s300_s25, [#allocation9]  }
 0x11c   :  { %s5690_s27 = smov [#allocation13]   ;;  %s5691_s7 = smov [#allocation16]  }
 0x11d   :  { %s321_s2 = sshll.u32 %s5690_s27, 4  ;;  %s341_s10 = sshll.u32 %s5691_s7, 4  ;;  %s322_s2 = int_to_ptr.vmem [resolvable:$true] %s321_s2  ;;  %s342_s10 = int_to_ptr.vmem [resolvable:$true] %s341_s10 }
 0x11e   :  { %s5408_s11 = scalar_lea.vmem %s322_s2, 16  ;;  %s5412_s24 = scalar_lea.vmem %s322_s2, 32 }
 0x11f   :  { %p5409_p4 = scmp.ne.s32.totalorder %s322_s2, %s5408_s11  ;;  %p5413_p5 = scmp.lt.s32.totalorder %s322_s2, %s322_s2 }
 0x120   :  { %p5414_p6 = scmp.lt.s32.totalorder %s5412_s24, %s5408_s11 }
 0x122   :  { %p5415_p7 = por %p5414_p6, %p5413_p5 }
 0x124   :  { %p5416_p8 = pnand %p5415_p7, %p5409_p4 }
 0x126   :  { %5419 = shalt.err (!%p5416_p8)
}
 0x127   :  { %324 = dma.hbm_to_vmem [thread:$0]  %s5962_s21, 16, %s322_s2, [#allocation12]  }
 0x128   :  { %s5428_s8 = scalar_lea.vmem %s342_s10, 16  ;;  %s5432_s15 = scalar_lea.vmem %s342_s10, 32 }
 0x129   :  { %p5429_p9 = scmp.ne.s32.totalorder %s342_s10, %s5428_s8  ;;  %p5433_p10 = scmp.lt.s32.totalorder %s342_s10, %s342_s10 }
 0x12a   :  { %p5434_p11 = scmp.lt.s32.totalorder %s5432_s15, %s5428_s8 }
 0x12c   :  { %p5435_p12 = por %p5434_p11, %p5433_p10 }
 0x12e   :  { %p5436_p13 = pnand %p5435_p12, %p5429_p9 }
 0x130   :  { %5439 = shalt.err (!%p5436_p13)
}
 0x131   :  { %344 = dma.hbm_to_vmem [thread:$0]  %s5972_s3, 16, %s342_s10, [#allocation15]  }
 0x132   :  { %s5692_s14 = smov [#allocation19]   ;;  %s5693_s19 = smov [#allocation22]  }
 0x133   :  { %s369_s6 = sshll.u32 %s5692_s14, 4  ;;  %s391_s16 = sshll.u32 %s5693_s19, 4  ;;  %s370_s6 = int_to_ptr.vmem [resolvable:$true] %s369_s6  ;;  %s392_s16 = int_to_ptr.vmem [resolvable:$true] %s391_s16 }
 0x134   :  { %s5448_s29 = scalar_lea.vmem %s370_s6, 16  ;;  %s5452_s18 = scalar_lea.vmem %s370_s6, 32 }
 0x135   :  { %p5449_p0 = scmp.ne.s32.totalorder %s370_s6, %s5448_s29  ;;  %p5453_p1 = scmp.lt.s32.totalorder %s370_s6, %s370_s6 }
 0x136   :  { %p5454_p2 = scmp.lt.s32.totalorder %s5452_s18, %s5448_s29 }
 0x138   :  { %p5455_p3 = por %p5454_p2, %p5453_p1 }
 0x13a   :  { %p5456_p4 = pnand %p5455_p3, %p5449_p0 }
 0x13c   :  { %5459 = shalt.err (!%p5456_p4)
}
 0x13d   :  { %s6579_s21 = sld [smem:[#allocation95_spill]]  ;;  %s5468_s22 = scalar_lea.vmem %s392_s16, 16 }
 0x13e   :  { %p5469_p5 = scmp.ne.s32.totalorder %s392_s16, %s5468_s22  ;;  %s5472_s9 = scalar_lea.vmem %s392_s16, 32 }
 0x13f   :  { %p5473_p6 = scmp.lt.s32.totalorder %s392_s16, %s392_s16  ;;  %p5474_p7 = scmp.lt.s32.totalorder %s5472_s9, %s5468_s22 }
 0x141   :  { %p5475_p8 = por %p5474_p7, %p5473_p6 }
 0x143   :  { %372 = dma.hbm_to_vmem [thread:$0]  %s6579_s21, 16, %s370_s6, [#allocation18]  }
 0x144   :  { %p5476_p9 = pnand %p5475_p8, %p5469_p5 }
 0x146   :  { %5479 = shalt.err (!%p5476_p9)
}
 0x147   :  { %s6580_s3 = sld [smem:[#allocation97_spill]]  ;;  %s5694_s0 = smov [#allocation25]  }
 0x148   :  { %s413_s5 = sshll.u32 %s5694_s0, 4  ;;  %s5695_s23 = smov [#allocation28]   ;;  %s414_s5 = int_to_ptr.vmem [resolvable:$true] %s413_s5 }
 0x149   :  { %s433_s26 = sshll.u32 %s5695_s23, 4  ;;  %s5488_s25 = scalar_lea.vmem %s414_s5, 16  ;;  %s434_s26 = int_to_ptr.vmem [resolvable:$true] %s433_s26 }
 0x14a   :  { %p5489_p10 = scmp.ne.s32.totalorder %s414_s5, %s5488_s25  ;;  %s5492_s28 = scalar_lea.vmem %s414_s5, 32 }
 0x14b   :  { %p5493_p11 = scmp.lt.s32.totalorder %s414_s5, %s414_s5  ;;  %p5494_p12 = scmp.lt.s32.totalorder %s5492_s28, %s5488_s25 }
 0x14d   :  { %394 = dma.hbm_to_vmem [thread:$0]  %s6580_s3, 16, %s392_s16, [#allocation21]  }
 0x14e   :  { %p5495_p13 = por %p5494_p12, %p5493_p11 }
 0x150   :  { %p5496_p0 = pnand %p5495_p13, %p5489_p10 }
 0x152   :  { %5499 = shalt.err (!%p5496_p0)
}
 0x153   :  { %s6581_s12 = sld [smem:[#allocation99_spill]]  ;;  %s5508_s13 = scalar_lea.vmem %s434_s26, 16 }
 0x154   :  { %p5509_p1 = scmp.ne.s32.totalorder %s434_s26, %s5508_s13  ;;  %s5512_s1 = scalar_lea.vmem %s434_s26, 32 }
 0x155   :  { %p5513_p2 = scmp.lt.s32.totalorder %s434_s26, %s434_s26  ;;  %p5514_p3 = scmp.lt.s32.totalorder %s5512_s1, %s5508_s13 }
 0x157   :  { %p5515_p4 = por %p5514_p3, %p5513_p2 }
 0x159   :  { %416 = dma.hbm_to_vmem [thread:$0]  %s6581_s12, 16, %s414_s5, [#allocation24]  }
 0x15a   :  { %p5516_p5 = pnand %p5515_p4, %p5509_p1 }
 0x15c   :  { %5519 = shalt.err (!%p5516_p5)
}
 0x15d   :  { %s6582_s27 = sld [smem:[#allocation100_spill]]  ;;  %s5696_s2 = smov [#allocation31]  }
 0x15e   :  { %s461_s7 = sshll.u32 %s5696_s2, 4  ;;  %s462_s7 = int_to_ptr.vmem [resolvable:$true] %s461_s7 }
 0x15f   :  { %s5528_s10 = scalar_lea.vmem %s462_s7, 16  ;;  %s5532_s11 = scalar_lea.vmem %s462_s7, 32 }
 0x160   :  { %p5529_p6 = scmp.ne.s32.totalorder %s462_s7, %s5528_s10  ;;  %p5533_p7 = scmp.lt.s32.totalorder %s462_s7, %s462_s7 }
 0x161   :  { %p5534_p8 = scmp.lt.s32.totalorder %s5532_s11, %s5528_s10 }
 0x163   :  { %436 = dma.hbm_to_vmem [thread:$0]  %s6582_s27, 16, %s434_s26, [#allocation27]  }
 0x164   :  { %p5535_p9 = por %p5534_p8, %p5533_p7 }
 0x166   :  { %p5536_p10 = pnand %p5535_p9, %p5529_p6 }
 0x168   :  { %5539 = shalt.err (!%p5536_p10)
}
 0x169   :  { %464 = dma.hbm_to_vmem [thread:$0]  %s6072_s30, 16, %s462_s7, [#allocation30]  }
 0x16a   :  { %5580 = dma.done.wait [#allocation3], 16  }
 0x16b   :  { %5581 = vsyncadd [#allocation3], 4294967280 }
 0x16c   :  { %5582 = dma.done.wait [#allocation6], 32  }
 0x16d   :  { %5583 = vsyncadd [#allocation6], 4294967264 }
 0x16e   :  { %5584 = dma.done.wait [#allocation9], 32  }
 0x16f   :  { %5585 = vsyncadd [#allocation9], 4294967264 }
 0x170   :  { %5586 = dma.done.wait [#allocation12], 32  }
 0x171   :  { %5587 = vsyncadd [#allocation12], 4294967264 }
 0x172   :  { %5588 = dma.done.wait [#allocation15], 32  }
 0x173   :  { %5589 = vsyncadd [#allocation15], 4294967264 }
 0x174   :  { %5590 = dma.done.wait [#allocation18], 32  }
 0x175   :  { %5591 = vsyncadd [#allocation18], 4294967264 }
 0x176   :  { %5592 = dma.done.wait [#allocation21], 32  }
 0x177   :  { %5593 = vsyncadd [#allocation21], 4294967264 }
 0x178   :  { %5594 = dma.done.wait [#allocation24], 32  }
 0x179   :  { %5595 = vsyncadd [#allocation24], 4294967264 }
 0x17a   :  { %5596 = dma.done.wait [#allocation27], 32  }
 0x17b   :  { %5597 = vsyncadd [#allocation27], 4294967264 }
 0x17c   :  { %5598 = dma.done.wait [#allocation30], 32  }
 0x17d   :  { %5599 = vsyncadd [#allocation30], 4294967264  ;;  %s6583_s30 = sld [smem:[#allocation49_spill]]  ;;  %v5697_v0 = vmov 0   ;;  %v5698_v1 = vmov 0.0   ;;  %vm5699_vm0 = vmmov 0   ;;  %v525_v15 = vlaneseq }
 0x17e   :  { %s6584_s24 = sld [smem:[#allocation47_spill]]  ;;  %5019 = vset.pattern.permute.xlu0 %v5697_v0  ;;  %4561 = vmatprep.subr.mxu1 %v5698_v1  ;;  %vm655_vm1 = vcmask 261120   ;;  %vm573_vm2 = vcmask 130048  }
 0x17f   :  { %s6585_s8 = sld [smem:[#allocation59_spill]]  ;;  %4569 = vmatprep.mubr.msk.f32.mxu1 %vm5699_vm0, %v5698_v1  ;;  %v526_v16 = vand.u32 127, %v525_v15 }
 0x180   :  { %s6586_s15 = sld [smem:[#allocation48_spill]] }
 0x181   :  { %s6587_s14 = sld [smem:[#allocation60_spill]] }
 0x182   :  { %s6588_s6 = sld [smem:[#allocation58_spill]] }
 0x183   :  { %v527_v2 = vld [vmem:[%s6583_s30] sm:$0xff]  ;;  %v528_v5 = vld [vmem:[%s6583_s30 + $0x8] sm:$0xff]  ;;  %s6589_s19 = sld [smem:[#allocation50_spill]] }
 0x184   :  { %v6106_v3 = vld [vmem:[%s6584_s24 + $0x8] sm:$0xff]  ;;  %530 = vperm.xlu0 %5019, %v527_v2   ;;  %v6110_v4 = vld [vmem:[%s6584_s24] sm:$0xff]  ;;  %s6590_s16 = sld [smem:[#allocation62_spill]] }
 0x185   :  { %4554 = vmatprep.subr.mxu0 %v6106_v3  ;;  %v562_v6 = vld [vmem:[%s6585_s8 + $0x18] sm:$0xff]  ;;  %v561_v7 = vld [vmem:[%s6585_s8 + $0x10] sm:$0xff]  ;;  %v560_v8 = vld [vmem:[%s6585_s8 + $0x8] sm:$0xff]  ;;  %s6591_s29 = sld [smem:[#allocation54_spill]] }
 0x186   :  { %4555 = vmatpush3.msra.mxu0 %v6106_v3  ;;  %4562 = vmatpush3.msra.mxu1 %v562_v6  ;;  %v559_v9 = vld [vmem:[%s6585_s8] sm:$0xff]  ;;  %s6592_s18 = sld [smem:[#allocation61_spill]] }
 0x187   :  { %4556 = vmatprep.subr.mxu0 %v6110_v4  ;;  %4563 = vmatprep.subr.mxu1 %v5698_v1  ;;  %v524_v10 = vld [vmem:[%s6586_s15] sm:$0xff]  ;;  %v566_v11 = vld [vmem:[%s6587_s14 + $0x18] sm:$0xff]  ;;  %v565_v12 = vld [vmem:[%s6587_s14 + $0x10] sm:$0xff]  ;;  %s6593_s21 = sld [smem:[#allocation51_spill]] }
 0x188   :  { %4557 = vmatpush3.msra.mxu0 %v6110_v4  ;;  %533 = vperm.xlu0 %5019, %v528_v5   ;;  %v564_v13 = vld [vmem:[%s6587_s14 + $0x8] sm:$0xff]  ;;  %v563_v14 = vld [vmem:[%s6587_s14] sm:$0xff]  ;;  %v558_v20 = vld [vmem:[%s6588_s6 + $0x18] sm:$0xff]  ;;  %s6594_s22 = sld [smem:[#allocation52_spill]] }
 0x189   :  { %4564 = vmatpush3.msra.mxu1 %v561_v7  ;;  %4572 = vmatprep.subr.mxu0 %v5698_v1  ;;  %v557_v22 = vld [vmem:[%s6588_s6 + $0x10] sm:$0xff]  ;;  %v556_v23 = vld [vmem:[%s6588_s6 + $0x8] sm:$0xff]  ;;  %v544_v24 = vld [vmem:[%s6589_s19 + $0x18] sm:$0xff]  ;;  %s6595_s9 = sld [smem:[#allocation53_spill]] }
 0x18a   :  { %4565 = vmatprep.subr.mxu1 %v5698_v1  ;;  %v555_v25 = vld [vmem:[%s6588_s6] sm:$0xff]  ;;  %v543_v29 = vld [vmem:[%s6589_s19 + $0x10] sm:$0xff]  ;;  %v542_v31 = vld [vmem:[%s6589_s19 + $0x8] sm:$0xff]  ;;  %s6596_s3 = sld [smem:[#allocation73_spill]] }
 0x18b   :  { %4566 = vmatpush3.msra.mxu1 %v560_v8  ;;  %v541_v32 = vld [vmem:[%s6589_s19] sm:$0xff]  ;;  %v571_v33 = vld [vmem:[%s6590_s16 + $0x18] sm:$0xff]  ;;  %v570_v34 = vld [vmem:[%s6590_s16 + $0x10] sm:$0xff]  ;;  %s6597_s0 = sld [smem:[#allocation63_spill]] }
 0x18c   :  { %4567 = vmatprep.subr.mxu1 %v5698_v1  ;;  %v569_v35 = vld [vmem:[%s6590_s16 + $0x8] sm:$0xff]  ;;  %v568_v36 = vld [vmem:[%s6590_s16] sm:$0xff]  ;;  %v551_v37 = vld [vmem:[%s6591_s29 + $0x18] sm:$0xff]  ;;  %s6598_s5 = sld [smem:[#allocation55_spill]] }
 0x18d   :  { %4568 = vmatpush3.msra.mxu1 %v559_v9  ;;  %v4259_v42 = vld [vmem:[%s6592_s18] ss:$0 sm:$0xff]  ;;  %v549_v15 = vld [vmem:[%s6591_s29 + $0x8] sm:$0xff]  ;;  %s6599_s23 = sld [smem:[#allocation74_spill]] }
 0x18e   :  { %4570 = vmatmul.mubr.msk.f32.vlgmr.msra.gmra.mxu1 %vm655_vm1, %v524_v10  ;;  %4583 = vmatprep.subr.mxu1 %v5698_v1  ;;  %v4264_v45 = vld [vmem:[%s6593_s21] ss:$0 sm:$0xff]  ;;  %s6600_s26 = sld [smem:[#allocation56_spill]] }
 0x18f   :  { %4584 = vmatpush3.msra.mxu1 %v566_v11  ;;  %4591 = vmatprep.mubr.msk.f32.mxu1 %vm5699_vm0, %v5698_v1  ;;  %s6601_s25 = sld [smem:[#allocation57_spill]] }
 0x190   :  { %4585 = vmatprep.subr.mxu1 %v5698_v1  ;;  %s6602_s28 = sld [smem:[#allocation72_spill]] }
 0x191   :  { %4586 = vmatpush3.msra.mxu1 %v565_v12  ;;  %s6603_s12 = sld [smem:[#allocation64_spill]] }
 0x192   :  { %4587 = vmatprep.subr.mxu1 %v5698_v1  ;;  %s6604_s13 = sld [smem:[#allocation76_spill]] }
 0x193   :  { %4588 = vmatpush3.msra.mxu1 %v564_v13  ;;  %v550_v13 = vld [vmem:[%s6591_s29 + $0x10] sm:$0xff]  ;;  %s6605_s1 = sld [smem:[#allocation68_spill]] }
 0x194   :  { %4589 = vmatprep.subr.mxu1 %v5698_v1  ;;  %s6606_s27 = sld [smem:[#allocation75_spill]] }
 0x195   :  { %4590 = vmatpush3.msra.mxu1 %v563_v14  ;;  %s6607_s2 = sld [smem:[#allocation65_spill]] }
 0x196   :  { %4605 = vmatprep.subr.mxu1 %v544_v24  ;;  %s6608_s7 = sld [smem:[#allocation66_spill]] }
 0x197   :  { %s6609_s10 = sld [smem:[#allocation67_spill]] }
 0x198   :  { %s6610_s11 = sld [smem:[#allocation86_spill]] }
 0x199   :  { %s6611_s30 = sld [smem:[#allocation77_spill]] }
 0x19a   :  { %s6612_s24 = sld [smem:[#allocation69_spill]] }
 0x19b   :  { %s6613_s8 = sld [smem:[#allocation87_spill]] }
 0x19c   :  { %s6614_s15 = sld [smem:[#allocation70_spill]] }
 0x19d   :  { %s6615_s14 = sld [smem:[#allocation71_spill]] }
 0x19e   :  { %s6616_s6 = sld [smem:[#allocation85_spill]] }
 0x19f   :  { %s6617_s19 = sld [smem:[#allocation78_spill]] }
 0x1a0   :  { %s6618_s16 = sld [smem:[#allocation88_spill]] }
 0x1a1   :  { %s6620_s18 = sld [smem:[#allocation79_spill]] }
 0x1a2   :  { %s6621_s21 = sld [smem:[#allocation80_spill]] }
 0x1ff   :  { %v531_v17 = vpop.permute.xlu0 %530 }
 0x200   :  { %vm535_vm3 = vcmp.eq.s32.totalorder %v526_v16, %v531_v17  ;;  %v548_v17 = vld [vmem:[%s6591_s29] sm:$0xff]  ;;  %s6619_s29 = sld [smem:[#allocation82_spill]] }
 0x201   :  { %v6139_v18 = vsel %vm535_vm3, 1.0, %v5698_v1 }
 0x202   :  { %4558 = vmatprep.mubr.msk.f32.mxu0 %vm573_vm2, %v6139_v18 }
 0x203   :  { %v534_v19 = vpop.permute.xlu0 %533 }
 0x204   :  { %vm536_vm4 = vcmp.eq.s32.totalorder %v526_v16, %v534_v19 }
 0x205   :  { %v6145_v21 = vsel %vm536_vm4, 1.0, %v5698_v1 }
 0x206   :  { %4559 = vmatmul.mubr.msk.f32.vlgmr.msra.gmra.mxu0 %vm573_vm2, %v6145_v21 }
 0x207   :  { %4573 = vmatpush3.msra.mxu0 %v558_v20  ;;  %4580 = vmatprep.mubr.msk.f32.mxu0 %vm5699_vm0, %v5698_v1 }
 0x208   :  { %4574 = vmatprep.subr.mxu0 %v5698_v1 }
 0x209   :  { %4575 = vmatpush3.msra.mxu0 %v557_v22 }
 0x20a   :  { %4576 = vmatprep.subr.mxu0 %v5698_v1 }
 0x20b   :  { %4577 = vmatpush3.msra.mxu0 %v556_v23 }
 0x20c   :  { %4578 = vmatprep.subr.mxu0 %v5698_v1 }
 0x20d   :  { %4579 = vmatpush3.msra.mxu0 %v555_v25 }
 0x20e   :  { %4594 = vmatprep.subr.mxu0 %v5698_v1 }
 0x24e   :  { %v725_v26 = vpop.f32.mrf.mxu1 }
 0x250   :  { %v4571_v27 = vpop.f32.mrf.mxu1 }
 0x251   :  { %v4268_v27 = vld [vmem:[%s6595_s9] ss:$0 sm:$0xff]  ;;  %s6623_s9 = sld [smem:[#allocation92_spill]] }
 0x2c6   :  { %v4560_v28 = vpop.f32.mrf.mxu0 }
 0x2c7   :  { %4592 = vmatmul.mubr.msk.f32.vlgmr.msra.gmra.mxu1 %vm655_vm1, %v4560_v28 }
 0x2c8   :  { %4606 = vmatpush3.msra.mxu1 %v544_v24  ;;  %v646_v30 = vpop.f32.mrf.mxu0  ;;  %4613 = vmatprep.mubr.msk.f32.mxu1 %vm655_vm1, %v6110_v4  ;;  %v4267_v24 = vld [vmem:[%s6594_s22] ss:$0 sm:$0xff]  ;;  %s6622_s22 = sld [smem:[#allocation81_spill]] }
 0x2c9   :  { %4607 = vmatprep.subr.mxu1 %v543_v29  ;;  %4581 = vmatmul.mubr.msk.f32.vlgmr.msra.gmra.mxu0 %vm655_vm1, %v646_v30 }
 0x2ca   :  { %4608 = vmatpush3.msra.mxu1 %v543_v29  ;;  %4602 = vmatprep.mubr.msk.f32.mxu0 %vm5699_vm0, %v5698_v1 }
 0x2cb   :  { %4609 = vmatprep.subr.mxu1 %v542_v31  ;;  %4595 = vmatpush3.msra.mxu0 %v571_v33 }
 0x2cc   :  { %4610 = vmatpush3.msra.mxu1 %v542_v31  ;;  %4596 = vmatprep.subr.mxu0 %v5698_v1 }
 0x2cd   :  { %4611 = vmatprep.subr.mxu1 %v541_v32  ;;  %4597 = vmatpush3.msra.mxu0 %v570_v34 }
 0x2ce   :  { %4612 = vmatpush3.msra.mxu1 %v541_v32  ;;  %4598 = vmatprep.subr.mxu0 %v5698_v1 }
 0x2cf   :  { %4614 = vmatmul.mubr.msk.f32.vlgmr.msra.gmra.mxu1 %vm655_vm1, %v6106_v3  ;;  %4599 = vmatpush3.msra.mxu0 %v569_v35 }
 0x2d0   :  { %4631 = vmatprep.mubr.msk.f32.mxu1 %vm573_vm2, %v6139_v18  ;;  %4600 = vmatprep.subr.mxu0 %v5698_v1 }
 0x2d1   :  { %4601 = vmatpush3.msra.mxu0 %v568_v36 }
 0x2d2   :  { %4616 = vmatprep.subr.mxu0 %v551_v37 }
 0x387   :  { %v871_v38 = vpop.f32.mrf.mxu1 }
 0x389   :  { %v798_v39 = vpop.f32.mrf.mxu0  ;;  %v4593_v40 = vpop.f32.mrf.mxu1 }
 0x38a   :  { %v799_v41 = vadd.f32 %v798_v39, %v725_v26 }
 0x38b   :  { %v4582_v43 = vpop.f32.mrf.mxu0 }
 0x38c   :  { %v875_v44 = vadd.f32 %v871_v38, %v799_v41  ;;  %v1287_v43 = vld [vmem:[%s6596_s3 + $0x10] sm:$0xff] }
 0x38e   :  { %v882_v46 = vadd.f32 %v4259_v42, %v875_v44  ;;  %v1288_v42 = vld [vmem:[%s6596_s3 + $0x18] sm:$0xff]  ;;  %v1286_v44 = vld [vmem:[%s6596_s3 + $0x8] sm:$0xff] }
 0x38f   :  { %v4615_v47 = vpop.f32.mrf.mxu1 }
 0x390   :  { %v4260_v48 = vmul.f32 -1.442695, %v882_v46  ;;  %v1060_v49 = vadd.f32 %v4615_v47, %v4264_v45 }
 0x391   :  { %v1054_v50 = vpop.f32.mrf.mxu1 }
 0x392   :  { %5020 = vpow2.f32 %v4260_v48  ;;  %v1055_v51 = vadd.f32 %v4264_v45, %v1054_v50  ;;  %v1064_v52 = vsel %vm655_vm1, %v1060_v49, 0.0  ;;  %v1285_v45 = vld [vmem:[%s6596_s3] sm:$0xff]  ;;  %s6624_s3 = sld [smem:[#allocation83_spill]] }
 0x394   :  { %v1063_v53 = vsel %vm655_vm1, %v1055_v51, 0.0 }
 0x395   :  { %v1065_v54 = vadd.f32 %v1064_v52, %v1063_v53 }
 0x397   :  { %v1066_v55 = vrot.slane %v1065_v54, 4 }
 0x399   :  { %v1067_v56 = vadd.f32 %v1066_v55, %v1065_v54  ;;  %v4271_v55 = vld [vmem:[%s6598_s5] ss:$0 sm:$0xff]  ;;  %s6626_s5 = sld [smem:[#allocation84_spill]] }
 0x39b   :  { %v1068_v57 = vrot.slane %v1067_v56, 2 }
 0x39d   :  { %v1069_v58 = vadd.f32 %v1068_v57, %v1067_v56 }
 0x39f   :  { %v5021_v59 = vpop.eup %5020  ;;  %v1070_v60 = vrot.slane %v1069_v58, 1 }
 0x3a0   :  { %v886_v61 = vadd.f32 1.0, %v5021_v59 }
 0x3a1   :  { %v1071_v62 = vadd.f32 %v1070_v60, %v1069_v58 }
 0x3a2   :  { %5022 = vrcp.f32 %v886_v61 }
 0x3a3   :  { %v1073_v63 = vmul.f32 0.0625, %v1071_v62 }
 0x3a5   :  { %v1074_v0 = vsub.f32 %v1055_v51, %v1073_v63  ;;  %v1075_v2 = vsub.f32 %v1060_v49, %v1073_v63 }
 0x3a7   :  { %v1076_v3 = vmul.f32 %v1074_v0, %v1074_v0  ;;  %v1077_v4 = vmul.f32 %v1075_v2, %v1075_v2 }
 0x3a9   :  { %v1078_v5 = vsel %vm655_vm1, %v1076_v3, 0.0  ;;  %v1079_v6 = vsel %vm655_vm1, %v1077_v4, 0.0 }
 0x3aa   :  { %v1080_v7 = vadd.f32 %v1079_v6, %v1078_v5 }
 0x3ac   :  { %v1081_v8 = vrot.slane %v1080_v7, 4 }
 0x3ae   :  { %v1082_v9 = vadd.f32 %v1081_v8, %v1080_v7 }
 0x3af   :  { %v5023_v10 = vpop.eup %5022 }
 0x3b0   :  { %v889_v11 = vmul.f32 %v5023_v10, %v882_v46  ;;  %v1083_v12 = vrot.slane %v1082_v9, 2  ;;  %v4261_v46 = vld [vmem:[%s6597_s0] ss:$0 sm:$0xff]  ;;  %s6625_s0 = sld [smem:[#allocation93_spill]] }
 0x3b2   :  { %v1084_v14 = vadd.f32 %v1083_v12, %v1082_v9  ;;  %4603 = vmatmul.mubr.msk.f32.vlgmr.msra.gmra.mxu0 %vm655_vm1, %v889_v11 }
 0x3b3   :  { %4617 = vmatpush3.msra.mxu0 %v551_v37 }
 0x3b4   :  { %v1085_v16 = vrot.slane %v1084_v14, 1  ;;  %4618 = vmatprep.subr.mxu0 %v550_v13 }
 0x3b5   :  { %4619 = vmatpush3.msra.mxu0 %v550_v13 }
 0x3b6   :  { %v1086_v19 = vadd.f32 %v1085_v16, %v1084_v14  ;;  %4620 = vmatprep.subr.mxu0 %v549_v15 }
 0x3b7   :  { %4621 = vmatpush3.msra.mxu0 %v549_v15 }
 0x3b8   :  { %v1087_v20 = vmul.f32 0.0625, %v1086_v19  ;;  %4622 = vmatprep.subr.mxu0 %v548_v17 }
 0x3b9   :  { %4623 = vmatpush3.msra.mxu0 %v548_v17 }
 0x3ba   :  { %v1088_v22 = vadd.f32 1e-05, %v1087_v20  ;;  %4634 = vmatprep.subr.mxu0 %v5698_v1  ;;  %v1292_v20 = vld [vmem:[%s6599_s23 + $0x18] sm:$0xff] }
 0x3bc   :  { %5024 = vrsqrt.f32 %v1088_v22  ;;  %v1291_v22 = vld [vmem:[%s6599_s23 + $0x10] sm:$0xff] }
 0x3c9   :  { %v5025_v23 = vpop.eup %5024 }
 0x3ca   :  { %v1090_v25 = vmul.f32 %v5025_v23, %v1074_v0  ;;  %v1091_v26 = vmul.f32 %v5025_v23, %v1075_v2 }
 0x3cc   :  { %v1098_v28 = vmul.f32 %v4267_v24, %v1090_v25  ;;  %v1099_v29 = vmul.f32 %v4267_v24, %v1091_v26  ;;  %v1290_v24 = vld [vmem:[%s6599_s23 + $0x8] sm:$0xff]  ;;  %v1289_v26 = vld [vmem:[%s6599_s23] sm:$0xff]  ;;  %s6627_s23 = sld [smem:[#allocation91_spill]] }
 0x3ce   :  { %v1106_v30 = vadd.f32 %v4268_v27, %v1098_v28  ;;  %v1107_v31 = vadd.f32 %v4268_v27, %v1099_v29  ;;  %v4274_v29 = vld [vmem:[%s6600_s26] ss:$0 sm:$0xff]  ;;  %s6628_s26 = sld [smem:[#allocation89_spill]] }
 0x3d0   :  { %v4269_v32 = vmul.f32 -1.442695, %v1106_v30  ;;  %v4270_v33 = vmul.f32 -1.442695, %v1107_v31 }
 0x3d2   :  { %5026 = vpow2.f32 %v4269_v32  ;;  %v4275_v32 = vld [vmem:[%s6601_s25] ss:$0 sm:$0xff]  ;;  %s6629_s25 = sld [smem:[#allocation94_spill]] }
 0x3d3   :  { %5028 = vpow2.f32 %v4270_v33 }
 0x3df   :  { %v5027_v34 = vpop.eup %5026 }
 0x3e0   :  { %v5029_v35 = vpop.eup %5028  ;;  %v1114_v36 = vadd.f32 1.0, %v5027_v34 }
 0x3e1   :  { %v1115_v37 = vadd.f32 1.0, %v5029_v35 }
 0x3e2   :  { %5030 = vrcp.f32 %v1114_v36 }
 0x3e3   :  { %5032 = vrcp.f32 %v1115_v37 }
 0x3ef   :  { %v5031_v38 = vpop.eup %5030 }
 0x3f0   :  { %v5033_v39 = vpop.eup %5032  ;;  %v1120_v40 = vmul.f32 %v5031_v38, %v1106_v30 }
 0x3f1   :  { %v1121_v41 = vmul.f32 %v5033_v39, %v1107_v31 }
 0x3f2   :  { %4624 = vmatprep.mubr.msk.f32.mxu0 %vm655_vm1, %v1120_v40 }
 0x3f3   :  { %4625 = vmatmul.mubr.msk.f32.vlgmr.msra.gmra.mxu0 %vm655_vm1, %v1121_v41 }
 0x3f4   :  { %4642 = vmatprep.mubr.msk.f32.mxu0 %vm5699_vm0, %v5698_v1  ;;  %4635 = vmatpush3.msra.mxu0 %v1288_v42 }
 0x3f5   :  { %4636 = vmatprep.subr.mxu0 %v5698_v1 }
 0x3f6   :  { %4637 = vmatpush3.msra.mxu0 %v1287_v43 }
 0x3f7   :  { %4638 = vmatprep.subr.mxu0 %v5698_v1 }
 0x3f8   :  { %4639 = vmatpush3.msra.mxu0 %v1286_v44 }
 0x3f9   :  { %4640 = vmatprep.subr.mxu0 %v5698_v1 }
 0x3fa   :  { %4641 = vmatpush3.msra.mxu0 %v1285_v45 }
 0x3fb   :  { %4656 = vmatprep.subr.mxu0 %v5698_v1 }
 0x472   :  { %v965_v47 = vpop.f32.mrf.mxu0 }
 0x473   :  { %v966_v48 = vadd.f32 %v4261_v46, %v965_v47  ;;  %v1284_v47 = vld [vmem:[%s6602_s28 + $0x18] sm:$0xff] }
 0x474   :  { %v4604_v49 = vpop.f32.mrf.mxu0 }
 0x475   :  { %v4263_v50 = vmul.f32 -1.442695, %v966_v48 }
 0x477   :  { %5034 = vpow2.f32 %v4263_v50 }
 0x484   :  { %v5035_v51 = vpop.eup %5034 }
 0x485   :  { %v972_v52 = vadd.f32 1.0, %v5035_v51  ;;  %v1282_v51 = vld [vmem:[%s6602_s28 + $0x8] sm:$0xff] }
 0x487   :  { %5036 = vrcp.f32 %v972_v52  ;;  %v1270_v52 = vld [vmem:[%s6603_s12 + $0x18] sm:$0xff] }
 0x494   :  { %v5037_v53 = vpop.eup %5036 }
 0x495   :  { %v975_v54 = vmul.f32 %v5037_v53, %v966_v48  ;;  %v1283_v48 = vld [vmem:[%s6602_s28 + $0x10] sm:$0xff]  ;;  %v1281_v53 = vld [vmem:[%s6602_s28] sm:$0xff]  ;;  %s6630_s28 = sld [smem:[#allocation90_spill]] }
 0x497   :  { %4643 = vmatmul.mubr.msk.f32.vlgmr.msra.gmra.mxu0 %vm655_vm1, %v975_v54 }
 0x498   :  { %4664 = vmatprep.mubr.msk.f32.mxu0 %vm5699_vm0, %v5698_v1  ;;  %4657 = vmatpush3.msra.mxu0 %v1292_v20 }
 0x499   :  { %4658 = vmatprep.subr.mxu0 %v5698_v1 }
 0x49a   :  { %4659 = vmatpush3.msra.mxu0 %v1291_v22 }
 0x49b   :  { %4660 = vmatprep.subr.mxu0 %v5698_v1 }
 0x49c   :  { %4661 = vmatpush3.msra.mxu0 %v1290_v24 }
 0x49d   :  { %4662 = vmatprep.subr.mxu0 %v5698_v1 }
 0x49e   :  { %4663 = vmatpush3.msra.mxu0 %v1289_v26 }
 0x49f   :  { %4678 = vmatprep.subr.mxu0 %v1270_v52 }
 0x4b3   :  { %v4626_v56 = vpop.f32.mrf.mxu0 }
 0x4b4   :  { %v1206_v57 = vadd.f32 %v4626_v56, %v4271_v55 }
 0x4b5   :  { %v1200_v58 = vpop.f32.mrf.mxu0 }
 0x4b6   :  { %v1201_v59 = vadd.f32 %v4271_v55, %v1200_v58  ;;  %v1210_v60 = vsel %vm655_vm1, %v1206_v57, 0.0  ;;  %v1269_v55 = vld [vmem:[%s6603_s12 + $0x10] sm:$0xff]  ;;  %v1267_v58 = vld [vmem:[%s6603_s12] sm:$0xff] }
 0x4b8   :  { %v1209_v61 = vsel %vm655_vm1, %v1201_v59, 0.0 }
 0x4b9   :  { %v1211_v62 = vadd.f32 %v1210_v60, %v1209_v61  ;;  %v1296_v60 = vld [vmem:[%s6604_s13 + $0x10] sm:$0xff]  ;;  %v1295_v61 = vld [vmem:[%s6604_s13 + $0x8] sm:$0xff] }
 0x4bb   :  { %v1212_v63 = vrot.slane %v1211_v62, 4 }
 0x4bd   :  { %v1213_v0 = vadd.f32 %v1212_v63, %v1211_v62  ;;  %v1294_v62 = vld [vmem:[%s6604_s13] sm:$0xff]  ;;  %v1277_v63 = vld [vmem:[%s6605_s1 + $0x18] sm:$0xff] }
 0x4bf   :  { %v1214_v2 = vrot.slane %v1213_v0, 2 }
 0x4c1   :  { %v1215_v3 = vadd.f32 %v1214_v2, %v1213_v0 }
 0x4c3   :  { %v1216_v4 = vrot.slane %v1215_v3, 1 }
 0x4c5   :  { %v1217_v5 = vadd.f32 %v1216_v4, %v1215_v3 }
 0x4c7   :  { %v1218_v6 = vmul.f32 0.0625, %v1217_v5  ;;  %v4283_v5 = vld [vmem:[%s6606_s27] ss:$0 sm:$0xff]  ;;  %s6634_s27 = sld [smem:[#allocation96_spill]] }
 0x4c9   :  { %v1219_v7 = vsub.f32 %v1201_v59, %v1218_v6  ;;  %v1220_v8 = vsub.f32 %v1206_v57, %v1218_v6  ;;  %v1268_v57 = vld [vmem:[%s6603_s12 + $0x8] sm:$0xff]  ;;  %v1297_v59 = vld [vmem:[%s6604_s13 + $0x18] sm:$0xff]  ;;  %s6631_s12 = sld [smem:[#allocation102_spill]] }
 0x4ca   :  { %s6632_s13 = sld [smem:[#allocation103_spill]] }
 0x4cb   :  { %v1221_v9 = vmul.f32 %v1219_v7, %v1219_v7  ;;  %v1222_v10 = vmul.f32 %v1220_v8, %v1220_v8 }
 0x4cd   :  { %v1223_v11 = vsel %vm655_vm1, %v1221_v9, 0.0  ;;  %v1224_v12 = vsel %vm655_vm1, %v1222_v10, 0.0 }
 0x4ce   :  { %v1225_v13 = vadd.f32 %v1224_v12, %v1223_v11 }
 0x4d0   :  { %v1226_v14 = vrot.slane %v1225_v13, 4 }
 0x4d2   :  { %v1227_v15 = vadd.f32 %v1226_v14, %v1225_v13 }
 0x4d4   :  { %v1228_v16 = vrot.slane %v1227_v15, 2 }
 0x4d6   :  { %v1229_v17 = vadd.f32 %v1228_v16, %v1227_v15 }
 0x4d8   :  { %v1230_v19 = vrot.slane %v1229_v17, 1 }
 0x4da   :  { %v1231_v23 = vadd.f32 %v1230_v19, %v1229_v17 }
 0x4dc   :  { %v1232_v25 = vmul.f32 0.0625, %v1231_v23 }
 0x4de   :  { %v1233_v27 = vadd.f32 1e-05, %v1232_v25 }
 0x4e0   :  { %5038 = vrsqrt.f32 %v1233_v27 }
 0x4ed   :  { %v5039_v28 = vpop.eup %5038 }
 0x4ee   :  { %v1235_v30 = vmul.f32 %v5039_v28, %v1219_v7  ;;  %v1236_v31 = vmul.f32 %v5039_v28, %v1220_v8  ;;  %v4288_v8 = vld [vmem:[%s6607_s2] ss:$0 sm:$0xff]  ;;  %s6635_s2 = sld [smem:[#allocation98_spill]] }
 0x4f0   :  { %v1243_v33 = vmul.f32 %v4274_v29, %v1235_v30  ;;  %v1244_v34 = vmul.f32 %v4274_v29, %v1236_v31 }
 0x4f2   :  { %v1252_v35 = vadd.f32 %v4275_v32, %v1244_v34  ;;  %v1251_v36 = vadd.f32 %v4275_v32, %v1243_v33 }
 0x4f4   :  { %v4277_v37 = vmul.f32 -1.442695, %v1252_v35  ;;  %v4276_v38 = vmul.f32 -1.442695, %v1251_v36 }
 0x4f6   :  { %5040 = vpow2.f32 %v4277_v37 }
 0x4f7   :  { %5042 = vpow2.f32 %v4276_v38 }
 0x503   :  { %v5041_v39 = vpop.eup %5040 }
 0x504   :  { %v5043_v40 = vpop.eup %5042  ;;  %v1260_v41 = vadd.f32 1.0, %v5041_v39 }
 0x505   :  { %v1259_v42 = vadd.f32 1.0, %v5043_v40 }
 0x506   :  { %5044 = vrcp.f32 %v1260_v41  ;;  %v1276_v41 = vld [vmem:[%s6605_s1 + $0x10] sm:$0xff] }
 0x507   :  { %5046 = vrcp.f32 %v1259_v42 }
 0x513   :  { %v5045_v43 = vpop.eup %5044 }
 0x514   :  { %v5047_v44 = vpop.eup %5046  ;;  %v1266_v45 = vmul.f32 %v5045_v43, %v1252_v35  ;;  %v1275_v43 = vld [vmem:[%s6605_s1 + $0x8] sm:$0xff] }
 0x515   :  { %v1265_v46 = vmul.f32 %v5047_v44, %v1251_v36 }
 0x516   :  { %4627 = vmatprep.subr.mxu1 %v1266_v45 }
 0x517   :  { %4628 = vmatpush3.msra.mxu1 %v1266_v45 }
 0x518   :  { %4629 = vmatprep.subr.mxu1 %v1265_v46 }
 0x519   :  { %4630 = vmatpush3.msra.mxu1 %v1265_v46 }
 0x51a   :  { %4632 = vmatmul.mubr.msk.f32.vlgmr.msra.gmra.mxu1 %vm573_vm2, %v6145_v21  ;;  %4645 = vmatprep.subr.mxu1 %v5698_v1 }
 0x51b   :  { %4646 = vmatpush3.msra.mxu1 %v1284_v47  ;;  %4653 = vmatprep.mubr.msk.f32.mxu1 %vm5699_vm0, %v5698_v1 }
 0x51c   :  { %4647 = vmatprep.subr.mxu1 %v5698_v1 }
 0x51d   :  { %4648 = vmatpush3.msra.mxu1 %v1283_v48 }
 0x51e   :  { %4649 = vmatprep.subr.mxu1 %v5698_v1 }
 0x51f   :  { %4650 = vmatpush3.msra.mxu1 %v1282_v51 }
 0x520   :  { %4651 = vmatprep.subr.mxu1 %v5698_v1 }
 0x521   :  { %4652 = vmatpush3.msra.mxu1 %v1281_v53  ;;  %v4292_v53 = vld [vmem:[%s6609_s10] ss:$0 sm:$0xff] }
 0x522   :  { %4667 = vmatprep.subr.mxu1 %v5698_v1 }
 0x557   :  { %v1443_v49 = vpop.f32.mrf.mxu0 }
 0x559   :  { %v4644_v50 = vpop.f32.mrf.mxu0 }
 0x55a   :  { %v4291_v50 = vld [vmem:[%s6608_s7] ss:$0 sm:$0xff] }
 0x5da   :  { %v4633_v54 = vpop.f32.mrf.mxu1 }
 0x5db   :  { %4665 = vmatmul.mubr.msk.f32.vlgmr.msra.gmra.mxu0 %vm655_vm1, %v4633_v54 }
 0x5dc   :  { %4679 = vmatpush3.msra.mxu0 %v1270_v52  ;;  %v1365_v56 = vpop.f32.mrf.mxu1  ;;  %4686 = vmatprep.mubr.msk.f32.mxu0 %vm655_vm1, %v1265_v46 }
 0x5dd   :  { %4680 = vmatprep.subr.mxu0 %v1269_v55  ;;  %4654 = vmatmul.mubr.msk.f32.vlgmr.msra.gmra.mxu1 %vm655_vm1, %v1365_v56 }
 0x5de   :  { %4681 = vmatpush3.msra.mxu0 %v1269_v55  ;;  %4675 = vmatprep.mubr.msk.f32.mxu1 %vm5699_vm0, %v5698_v1 }
 0x5df   :  { %4682 = vmatprep.subr.mxu0 %v1268_v57  ;;  %4668 = vmatpush3.msra.mxu1 %v1297_v59 }
 0x5e0   :  { %4683 = vmatpush3.msra.mxu0 %v1268_v57  ;;  %4669 = vmatprep.subr.mxu1 %v5698_v1 }
 0x5e1   :  { %4684 = vmatprep.subr.mxu0 %v1267_v58  ;;  %4670 = vmatpush3.msra.mxu1 %v1296_v60 }
 0x5e2   :  { %4685 = vmatpush3.msra.mxu0 %v1267_v58  ;;  %4671 = vmatprep.subr.mxu1 %v5698_v1 }
 0x5e3   :  { %4687 = vmatmul.mubr.msk.f32.vlgmr.msra.gmra.mxu0 %vm655_vm1, %v1266_v45  ;;  %4672 = vmatpush3.msra.mxu1 %v1295_v61  ;;  %v1274_v45 = vld [vmem:[%s6605_s1] sm:$0xff]  ;;  %s6633_s1 = sld [smem:[#allocation101_spill]] }
 0x5e4   :  { %4704 = vmatprep.mubr.msk.f32.mxu0 %vm573_vm2, %v6139_v18  ;;  %4673 = vmatprep.subr.mxu1 %v5698_v1 }
 0x5e5   :  { %4674 = vmatpush3.msra.mxu1 %v1294_v62 }
 0x5e6   :  { %4689 = vmatprep.subr.mxu1 %v1277_v63 }
 0x69b   :  { %v1589_v0 = vpop.f32.mrf.mxu0 }
 0x69d   :  { %v1516_v2 = vpop.f32.mrf.mxu1  ;;  %v4666_v3 = vpop.f32.mrf.mxu0 }
 0x69e   :  { %v1517_v4 = vadd.f32 %v1516_v2, %v1443_v49 }
 0x69f   :  { %v4655_v6 = vpop.f32.mrf.mxu1 }
 0x6a0   :  { %v1593_v7 = vadd.f32 %v1589_v0, %v1517_v4  ;;  %v2004_v6 = vld [vmem:[%s6610_s11 + $0x10] sm:$0xff] }
 0x6a2   :  { %v1600_v9 = vadd.f32 %v4283_v5, %v1593_v7  ;;  %v2005_v5 = vld [vmem:[%s6610_s11 + $0x18] sm:$0xff]  ;;  %v2003_v7 = vld [vmem:[%s6610_s11 + $0x8] sm:$0xff] }
 0x6a3   :  { %v4688_v10 = vpop.f32.mrf.mxu0 }
 0x6a4   :  { %v4284_v11 = vmul.f32 -1.442695, %v1600_v9  ;;  %v1778_v12 = vadd.f32 %v4688_v10, %v4288_v8 }
 0x6a5   :  { %v1772_v13 = vpop.f32.mrf.mxu0 }
 0x6a6   :  { %5048 = vpow2.f32 %v4284_v11  ;;  %v1773_v14 = vadd.f32 %v4288_v8, %v1772_v13  ;;  %v1782_v15 = vsel %vm655_vm1, %v1778_v12, 0.0  ;;  %v2002_v8 = vld [vmem:[%s6610_s11] sm:$0xff] }
 0x6a8   :  { %v1781_v16 = vsel %vm655_vm1, %v1773_v14, 0.0 }
 0x6a9   :  { %v1783_v17 = vadd.f32 %v1782_v15, %v1781_v16 }
 0x6ab   :  { %v1784_v19 = vrot.slane %v1783_v17, 4 }
 0x6ad   :  { %v1785_v20 = vadd.f32 %v1784_v19, %v1783_v17  ;;  %v4295_v19 = vld [vmem:[%s6612_s24] ss:$0 sm:$0xff] }
 0x6af   :  { %v1786_v22 = vrot.slane %v1785_v20, 2 }
 0x6b1   :  { %v1787_v23 = vadd.f32 %v1786_v22, %v1785_v20 }
 0x6b3   :  { %v5049_v24 = vpop.eup %5048  ;;  %v1788_v25 = vrot.slane %v1787_v23, 1 }
 0x6b4   :  { %v1604_v26 = vadd.f32 1.0, %v5049_v24 }
 0x6b5   :  { %v1789_v27 = vadd.f32 %v1788_v25, %v1787_v23 }
 0x6b6   :  { %5050 = vrcp.f32 %v1604_v26 }
 0x6b7   :  { %v1790_v28 = vmul.f32 0.0625, %v1789_v27 }
 0x6b9   :  { %v1791_v29 = vsub.f32 %v1773_v14, %v1790_v28  ;;  %v1792_v30 = vsub.f32 %v1778_v12, %v1790_v28 }
 0x6bb   :  { %v1793_v31 = vmul.f32 %v1791_v29, %v1791_v29  ;;  %v1794_v32 = vmul.f32 %v1792_v30, %v1792_v30 }
 0x6bd   :  { %v1795_v33 = vsel %vm655_vm1, %v1793_v31, 0.0  ;;  %v1796_v34 = vsel %vm655_vm1, %v1794_v32, 0.0 }
 0x6be   :  { %v1797_v35 = vadd.f32 %v1796_v34, %v1795_v33 }
 0x6c0   :  { %v1798_v36 = vrot.slane %v1797_v35, 4 }
 0x6c2   :  { %v1799_v37 = vadd.f32 %v1798_v36, %v1797_v35 }
 0x6c3   :  { %v5051_v38 = vpop.eup %5050 }
 0x6c4   :  { %v1607_v39 = vmul.f32 %v5051_v38, %v1600_v9  ;;  %v1800_v40 = vrot.slane %v1799_v37, 2  ;;  %v4285_v9 = vld [vmem:[%s6611_s30] ss:$0 sm:$0xff] }
 0x6c6   :  { %v1801_v42 = vadd.f32 %v1800_v40, %v1799_v37  ;;  %4676 = vmatmul.mubr.msk.f32.vlgmr.msra.gmra.mxu1 %vm655_vm1, %v1607_v39 }
 0x6c7   :  { %4690 = vmatpush3.msra.mxu1 %v1277_v63 }
 0x6c8   :  { %v1802_v44 = vrot.slane %v1801_v42, 1  ;;  %4691 = vmatprep.subr.mxu1 %v1276_v41 }
 0x6c9   :  { %4692 = vmatpush3.msra.mxu1 %v1276_v41 }
 0x6ca   :  { %v1803_v46 = vadd.f32 %v1802_v44, %v1801_v42  ;;  %4693 = vmatprep.subr.mxu1 %v1275_v43 }
 0x6cb   :  { %4694 = vmatpush3.msra.mxu1 %v1275_v43 }
 0x6cc   :  { %v1804_v47 = vmul.f32 0.0625, %v1803_v46  ;;  %4695 = vmatprep.subr.mxu1 %v1274_v45 }
 0x6cd   :  { %4696 = vmatpush3.msra.mxu1 %v1274_v45 }
 0x6ce   :  { %v1805_v48 = vadd.f32 1e-05, %v1804_v47  ;;  %4707 = vmatprep.subr.mxu1 %v5698_v1  ;;  %v2009_v47 = vld [vmem:[%s6613_s8 + $0x18] sm:$0xff] }
 0x6d0   :  { %5052 = vrsqrt.f32 %v1805_v48  ;;  %v2008_v48 = vld [vmem:[%s6613_s8 + $0x10] sm:$0xff] }
 0x6dd   :  { %v5053_v49 = vpop.eup %5052 }
 0x6de   :  { %v1807_v51 = vmul.f32 %v5053_v49, %v1791_v29  ;;  %v1808_v52 = vmul.f32 %v5053_v49, %v1792_v30 }
 0x6e0   :  { %v1815_v54 = vmul.f32 %v4291_v50, %v1807_v51  ;;  %v1816_v55 = vmul.f32 %v4291_v50, %v1808_v52  ;;  %v2007_v50 = vld [vmem:[%s6613_s8 + $0x8] sm:$0xff]  ;;  %v2006_v52 = vld [vmem:[%s6613_s8] sm:$0xff] }
 0x6e2   :  { %v1823_v56 = vadd.f32 %v4292_v53, %v1815_v54  ;;  %v1824_v57 = vadd.f32 %v4292_v53, %v1816_v55  ;;  %v4298_v55 = vld [vmem:[%s6614_s15] ss:$0 sm:$0xff] }
 0x6e4   :  { %v4293_v58 = vmul.f32 -1.442695, %v1823_v56  ;;  %v4294_v59 = vmul.f32 -1.442695, %v1824_v57 }
 0x6e6   :  { %5054 = vpow2.f32 %v4293_v58  ;;  %v4299_v58 = vld [vmem:[%s6615_s14] ss:$0 sm:$0xff] }
 0x6e7   :  { %5056 = vpow2.f32 %v4294_v59 }
 0x6f3   :  { %v5055_v60 = vpop.eup %5054 }
 0x6f4   :  { %v5057_v61 = vpop.eup %5056  ;;  %v1831_v62 = vadd.f32 1.0, %v5055_v60 }
 0x6f5   :  { %v1832_v63 = vadd.f32 1.0, %v5057_v61 }
 0x6f6   :  { %5058 = vrcp.f32 %v1831_v62 }
 0x6f7   :  { %5060 = vrcp.f32 %v1832_v63 }
 0x703   :  { %v5059_v0 = vpop.eup %5058 }
 0x704   :  { %v5061_v2 = vpop.eup %5060  ;;  %v1837_v3 = vmul.f32 %v5059_v0, %v1823_v56 }
 0x705   :  { %v1838_v4 = vmul.f32 %v5061_v2, %v1824_v57 }
 0x706   :  { %4697 = vmatprep.mubr.msk.f32.mxu1 %vm655_vm1, %v1837_v3 }
 0x707   :  { %4698 = vmatmul.mubr.msk.f32.vlgmr.msra.gmra.mxu1 %vm655_vm1, %v1838_v4 }
 0x708   :  { %4715 = vmatprep.mubr.msk.f32.mxu1 %vm5699_vm0, %v5698_v1  ;;  %4708 = vmatpush3.msra.mxu1 %v2005_v5 }
 0x709   :  { %4709 = vmatprep.subr.mxu1 %v5698_v1 }
 0x70a   :  { %4710 = vmatpush3.msra.mxu1 %v2004_v6 }
 0x70b   :  { %4711 = vmatprep.subr.mxu1 %v5698_v1 }
 0x70c   :  { %4712 = vmatpush3.msra.mxu1 %v2003_v7 }
 0x70d   :  { %4713 = vmatprep.subr.mxu1 %v5698_v1 }
 0x70e   :  { %4714 = vmatpush3.msra.mxu1 %v2002_v8 }
 0x70f   :  { %4729 = vmatprep.subr.mxu1 %v5698_v1 }
 0x786   :  { %v1683_v10 = vpop.f32.mrf.mxu1 }
 0x787   :  { %v1684_v11 = vadd.f32 %v4285_v9, %v1683_v10  ;;  %v2001_v10 = vld [vmem:[%s6616_s6 + $0x18] sm:$0xff] }
 0x788   :  { %v4677_v12 = vpop.f32.mrf.mxu1 }
 0x789   :  { %v4287_v13 = vmul.f32 -1.442695, %v1684_v11 }
 0x78b   :  { %5062 = vpow2.f32 %v4287_v13 }
 0x798   :  { %v5063_v14 = vpop.eup %5062 }
 0x799   :  { %v1690_v15 = vadd.f32 1.0, %v5063_v14  ;;  %v1999_v14 = vld [vmem:[%s6616_s6 + $0x8] sm:$0xff] }
 0x79b   :  { %5064 = vrcp.f32 %v1690_v15  ;;  %v1987_v15 = vld [vmem:[%s6617_s19 + $0x18] sm:$0xff] }
 0x7a8   :  { %v5065_v16 = vpop.eup %5064 }
 0x7a9   :  { %v1693_v17 = vmul.f32 %v5065_v16, %v1684_v11  ;;  %v2000_v11 = vld [vmem:[%s6616_s6 + $0x10] sm:$0xff]  ;;  %v1998_v16 = vld [vmem:[%s6616_s6] sm:$0xff] }
 0x7ab   :  { %4716 = vmatmul.mubr.msk.f32.vlgmr.msra.gmra.mxu1 %vm655_vm1, %v1693_v17 }
 0x7ac   :  { %4737 = vmatprep.mubr.msk.f32.mxu1 %vm5699_vm0, %v5698_v1  ;;  %4730 = vmatpush3.msra.mxu1 %v2009_v47 }
 0x7ad   :  { %4731 = vmatprep.subr.mxu1 %v5698_v1 }
 0x7ae   :  { %4732 = vmatpush3.msra.mxu1 %v2008_v48 }
 0x7af   :  { %4733 = vmatprep.subr.mxu1 %v5698_v1 }
 0x7b0   :  { %4734 = vmatpush3.msra.mxu1 %v2007_v50 }
 0x7b1   :  { %4735 = vmatprep.subr.mxu1 %v5698_v1 }
 0x7b2   :  { %4736 = vmatpush3.msra.mxu1 %v2006_v52 }
 0x7b3   :  { %4751 = vmatprep.subr.mxu1 %v1987_v15 }
 0x7c7   :  { %v4699_v20 = vpop.f32.mrf.mxu1 }
 0x7c8   :  { %v1923_v22 = vadd.f32 %v4699_v20, %v4295_v19 }
 0x7c9   :  { %v1917_v23 = vpop.f32.mrf.mxu1 }
 0x7ca   :  { %v1918_v24 = vadd.f32 %v4295_v19, %v1917_v23  ;;  %v1927_v25 = vsel %vm655_vm1, %v1923_v22, 0.0  ;;  %v1986_v19 = vld [vmem:[%s6617_s19 + $0x10] sm:$0xff]  ;;  %v1984_v23 = vld [vmem:[%s6617_s19] sm:$0xff] }
 0x7cc   :  { %v1926_v26 = vsel %vm655_vm1, %v1918_v24, 0.0 }
 0x7cd   :  { %v1928_v27 = vadd.f32 %v1927_v25, %v1926_v26  ;;  %v2013_v25 = vld [vmem:[%s6618_s16 + $0x10] sm:$0xff]  ;;  %v2012_v26 = vld [vmem:[%s6618_s16 + $0x8] sm:$0xff] }
 0x7cf   :  { %v1929_v28 = vrot.slane %v1928_v27, 4 }
 0x7d1   :  { %v1930_v29 = vadd.f32 %v1929_v28, %v1928_v27  ;;  %v2011_v27 = vld [vmem:[%s6618_s16] sm:$0xff]  ;;  %v1994_v28 = vld [vmem:[%s6619_s29 + $0x18] sm:$0xff] }
 0x7d3   :  { %v1931_v30 = vrot.slane %v1930_v29, 2 }
 0x7d5   :  { %v1932_v31 = vadd.f32 %v1931_v30, %v1930_v29 }
 0x7d7   :  { %v1933_v32 = vrot.slane %v1932_v31, 1 }
 0x7d9   :  { %v1934_v33 = vadd.f32 %v1933_v32, %v1932_v31 }
 0x7db   :  { %v1935_v34 = vmul.f32 0.0625, %v1934_v33  ;;  %v4307_v33 = vld [vmem:[#allocation5] ss:$0 sm:$0xff] }
 0x7dd   :  { %v1936_v35 = vsub.f32 %v1918_v24, %v1935_v34  ;;  %v1937_v36 = vsub.f32 %v1923_v22, %v1935_v34  ;;  %v1985_v22 = vld [vmem:[%s6617_s19 + $0x8] sm:$0xff]  ;;  %v2014_v24 = vld [vmem:[%s6618_s16 + $0x18] sm:$0xff] }
 0x7df   :  { %v1938_v37 = vmul.f32 %v1936_v35, %v1936_v35  ;;  %v1939_v38 = vmul.f32 %v1937_v36, %v1937_v36 }
 0x7e1   :  { %v1940_v39 = vsel %vm655_vm1, %v1938_v37, 0.0  ;;  %v1941_v40 = vsel %vm655_vm1, %v1939_v38, 0.0 }
 0x7e2   :  { %v1942_v41 = vadd.f32 %v1941_v40, %v1940_v39 }
 0x7e4   :  { %v1943_v42 = vrot.slane %v1942_v41, 4 }
 0x7e6   :  { %v1944_v43 = vadd.f32 %v1943_v42, %v1942_v41 }
 0x7e8   :  { %v1945_v44 = vrot.slane %v1944_v43, 2 }
 0x7ea   :  { %v1946_v45 = vadd.f32 %v1945_v44, %v1944_v43 }
 0x7ec   :  { %v1947_v46 = vrot.slane %v1946_v45, 1 }
 0x7ee   :  { %v1948_v49 = vadd.f32 %v1947_v46, %v1946_v45 }
 0x7f0   :  { %v1949_v51 = vmul.f32 0.0625, %v1948_v49 }
 0x7f2   :  { %v1950_v53 = vadd.f32 1e-05, %v1949_v51 }
 0x7f4   :  { %5066 = vrsqrt.f32 %v1950_v53 }
 0x801   :  { %v5067_v54 = vpop.eup %5066 }
 0x802   :  { %v1952_v56 = vmul.f32 %v5067_v54, %v1936_v35  ;;  %v1953_v57 = vmul.f32 %v5067_v54, %v1937_v36  ;;  %v4312_v36 = vld [vmem:[%s6620_s18] ss:$0 sm:$0xff] }
 0x804   :  { %v1960_v59 = vmul.f32 %v4298_v55, %v1952_v56  ;;  %v1961_v60 = vmul.f32 %v4298_v55, %v1953_v57 }
 0x806   :  { %v1969_v61 = vadd.f32 %v4299_v58, %v1961_v60  ;;  %v1968_v62 = vadd.f32 %v4299_v58, %v1960_v59 }
 0x808   :  { %v4301_v63 = vmul.f32 -1.442695, %v1969_v61  ;;  %v4300_v0 = vmul.f32 -1.442695, %v1968_v62 }
 0x80a   :  { %5068 = vpow2.f32 %v4301_v63 }
 0x80b   :  { %5070 = vpow2.f32 %v4300_v0 }
 0x817   :  { %v5069_v2 = vpop.eup %5068 }
 0x818   :  { %v5071_v3 = vpop.eup %5070  ;;  %v1977_v4 = vadd.f32 1.0, %v5069_v2 }
 0x819   :  { %v1976_v5 = vadd.f32 1.0, %v5071_v3 }
 0x81a   :  { %5072 = vrcp.f32 %v1977_v4  ;;  %v1993_v4 = vld [vmem:[%s6619_s29 + $0x10] sm:$0xff] }
 0x81b   :  { %5074 = vrcp.f32 %v1976_v5 }
 0x827   :  { %v5073_v6 = vpop.eup %5072 }
 0x828   :  { %v5075_v7 = vpop.eup %5074  ;;  %v1983_v8 = vmul.f32 %v5073_v6, %v1969_v61  ;;  %v1992_v6 = vld [vmem:[%s6619_s29 + $0x8] sm:$0xff] }
 0x829   :  { %v1982_v9 = vmul.f32 %v5075_v7, %v1968_v62 }
 0x82a   :  { %4700 = vmatprep.subr.mxu0 %v1983_v8 }
 0x82b   :  { %4701 = vmatpush3.msra.mxu0 %v1983_v8 }
 0x82c   :  { %4702 = vmatprep.subr.mxu0 %v1982_v9 }
 0x82d   :  { %4703 = vmatpush3.msra.mxu0 %v1982_v9 }
 0x82e   :  { %4705 = vmatmul.mubr.msk.f32.vlgmr.msra.gmra.mxu0 %vm573_vm2, %v6145_v21  ;;  %4718 = vmatprep.subr.mxu0 %v5698_v1 }
 0x82f   :  { %4719 = vmatpush3.msra.mxu0 %v2001_v10  ;;  %4726 = vmatprep.mubr.msk.f32.mxu0 %vm5699_vm0, %v5698_v1 }
 0x830   :  { %4720 = vmatprep.subr.mxu0 %v5698_v1 }
 0x831   :  { %4721 = vmatpush3.msra.mxu0 %v2000_v11 }
 0x832   :  { %4722 = vmatprep.subr.mxu0 %v5698_v1 }
 0x833   :  { %4723 = vmatpush3.msra.mxu0 %v1999_v14 }
 0x834   :  { %4724 = vmatprep.subr.mxu0 %v5698_v1 }
 0x835   :  { %4725 = vmatpush3.msra.mxu0 %v1998_v16  ;;  %v4316_v16 = vld [vmem:[%s6622_s22] ss:$0 sm:$0xff] }
 0x836   :  { %4740 = vmatprep.subr.mxu0 %v5698_v1 }
 0x86b   :  { %v2160_v12 = vpop.f32.mrf.mxu1 }
 0x86d   :  { %v4717_v13 = vpop.f32.mrf.mxu1 }
 0x86e   :  { %v4315_v13 = vld [vmem:[%s6621_s21] ss:$0 sm:$0xff] }
 0x8ee   :  { %v4706_v17 = vpop.f32.mrf.mxu0 }
 0x8ef   :  { %4738 = vmatmul.mubr.msk.f32.vlgmr.msra.gmra.mxu1 %vm655_vm1, %v4706_v17 }
 0x8f0   :  { %4752 = vmatpush3.msra.mxu1 %v1987_v15  ;;  %v2082_v20 = vpop.f32.mrf.mxu0  ;;  %4759 = vmatprep.mubr.msk.f32.mxu1 %vm655_vm1, %v1982_v9 }
 0x8f1   :  { %4753 = vmatprep.subr.mxu1 %v1986_v19  ;;  %4727 = vmatmul.mubr.msk.f32.vlgmr.msra.gmra.mxu0 %vm655_vm1, %v2082_v20 }
 0x8f2   :  { %4754 = vmatpush3.msra.mxu1 %v1986_v19  ;;  %4748 = vmatprep.mubr.msk.f32.mxu0 %vm5699_vm0, %v5698_v1 }
 0x8f3   :  { %4755 = vmatprep.subr.mxu1 %v1985_v22  ;;  %4741 = vmatpush3.msra.mxu0 %v2014_v24 }
 0x8f4   :  { %4756 = vmatpush3.msra.mxu1 %v1985_v22  ;;  %4742 = vmatprep.subr.mxu0 %v5698_v1 }
 0x8f5   :  { %4757 = vmatprep.subr.mxu1 %v1984_v23  ;;  %4743 = vmatpush3.msra.mxu0 %v2013_v25 }
 0x8f6   :  { %4758 = vmatpush3.msra.mxu1 %v1984_v23  ;;  %4744 = vmatprep.subr.mxu0 %v5698_v1 }
 0x8f7   :  { %4760 = vmatmul.mubr.msk.f32.vlgmr.msra.gmra.mxu1 %vm655_vm1, %v1983_v8  ;;  %4745 = vmatpush3.msra.mxu0 %v2012_v26  ;;  %v1991_v8 = vld [vmem:[%s6619_s29] sm:$0xff] }
 0x8f8   :  { %4777 = vmatprep.mubr.msk.f32.mxu1 %vm573_vm2, %v6139_v18  ;;  %4746 = vmatprep.subr.mxu0 %v5698_v1 }
 0x8f9   :  { %4747 = vmatpush3.msra.mxu0 %v2011_v27 }
 0x8fa   :  { %4762 = vmatprep.subr.mxu0 %v1994_v28 }
 0x9af   :  { %v2306_v29 = vpop.f32.mrf.mxu1 }
 0x9b1   :  { %v2233_v30 = vpop.f32.mrf.mxu0  ;;  %v4739_v31 = vpop.f32.mrf.mxu1 }
 0x9b2   :  { %v2234_v32 = vadd.f32 %v2233_v30, %v2160_v12 }
 0x9b3   :  { %v4728_v34 = vpop.f32.mrf.mxu0 }
 0x9b4   :  { %v2310_v35 = vadd.f32 %v2306_v29, %v2234_v32  ;;  %v2721_v34 = vld [vmem:[%s6623_s9 + $0x10] sm:$0xff] }
 0x9b6   :  { %v2317_v37 = vadd.f32 %v4307_v33, %v2310_v35  ;;  %v2722_v33 = vld [vmem:[%s6623_s9 + $0x18] sm:$0xff]  ;;  %v2720_v35 = vld [vmem:[%s6623_s9 + $0x8] sm:$0xff] }
 0x9b7   :  { %v4761_v38 = vpop.f32.mrf.mxu1 }
 0x9b8   :  { %v4308_v39 = vmul.f32 -1.442695, %v2317_v37  ;;  %v2495_v40 = vadd.f32 %v4761_v38, %v4312_v36 }
 0x9b9   :  { %v2489_v41 = vpop.f32.mrf.mxu1 }
 0x9ba   :  { %5076 = vpow2.f32 %v4308_v39  ;;  %v2490_v42 = vadd.f32 %v4312_v36, %v2489_v41  ;;  %v2499_v43 = vsel %vm655_vm1, %v2495_v40, 0.0  ;;  %v2719_v36 = vld [vmem:[%s6623_s9] sm:$0xff] }
 0x9bc   :  { %v2498_v44 = vsel %vm655_vm1, %v2490_v42, 0.0 }
 0x9bd   :  { %v2500_v45 = vadd.f32 %v2499_v43, %v2498_v44 }
 0x9bf   :  { %v2501_v46 = vrot.slane %v2500_v45, 4 }
 0x9c1   :  { %v2502_v47 = vadd.f32 %v2501_v46, %v2500_v45  ;;  %v4319_v46 = vld [vmem:[%s6624_s3] ss:$0 sm:$0xff] }
 0x9c3   :  { %v2503_v48 = vrot.slane %v2502_v47, 2 }
 0x9c5   :  { %v2504_v49 = vadd.f32 %v2503_v48, %v2502_v47 }
 0x9c7   :  { %v5077_v50 = vpop.eup %5076  ;;  %v2505_v51 = vrot.slane %v2504_v49, 1 }
 0x9c8   :  { %v2321_v52 = vadd.f32 1.0, %v5077_v50 }
 0x9c9   :  { %v2506_v53 = vadd.f32 %v2505_v51, %v2504_v49 }
 0x9ca   :  { %5078 = vrcp.f32 %v2321_v52 }
 0x9cb   :  { %v2507_v54 = vmul.f32 0.0625, %v2506_v53 }
 0x9cd   :  { %v2508_v55 = vsub.f32 %v2490_v42, %v2507_v54  ;;  %v2509_v56 = vsub.f32 %v2495_v40, %v2507_v54 }
 0x9cf   :  { %v2510_v57 = vmul.f32 %v2508_v55, %v2508_v55  ;;  %v2511_v58 = vmul.f32 %v2509_v56, %v2509_v56 }
 0x9d1   :  { %v2512_v59 = vsel %vm655_vm1, %v2510_v57, 0.0  ;;  %v2513_v60 = vsel %vm655_vm1, %v2511_v58, 0.0 }
 0x9d2   :  { %v2514_v61 = vadd.f32 %v2513_v60, %v2512_v59 }
 0x9d4   :  { %v2515_v62 = vrot.slane %v2514_v61, 4 }
 0x9d6   :  { %v2516_v63 = vadd.f32 %v2515_v62, %v2514_v61 }
 0x9d7   :  { %v5079_v0 = vpop.eup %5078 }
 0x9d8   :  { %v2324_v2 = vmul.f32 %v5079_v0, %v2317_v37  ;;  %v2517_v3 = vrot.slane %v2516_v63, 2  ;;  %v4309_v37 = vld [vmem:[#allocation7] ss:$0 sm:$0xff] }
 0x9da   :  { %v2518_v5 = vadd.f32 %v2517_v3, %v2516_v63  ;;  %4749 = vmatmul.mubr.msk.f32.vlgmr.msra.gmra.mxu0 %vm655_vm1, %v2324_v2 }
 0x9db   :  { %4763 = vmatpush3.msra.mxu0 %v1994_v28 }
 0x9dc   :  { %v2519_v7 = vrot.slane %v2518_v5, 1  ;;  %4764 = vmatprep.subr.mxu0 %v1993_v4 }
 0x9dd   :  { %4765 = vmatpush3.msra.mxu0 %v1993_v4 }
 0x9de   :  { %v2520_v9 = vadd.f32 %v2519_v7, %v2518_v5  ;;  %4766 = vmatprep.subr.mxu0 %v1992_v6 }
 0x9df   :  { %4767 = vmatpush3.msra.mxu0 %v1992_v6 }
 0x9e0   :  { %v2521_v10 = vmul.f32 0.0625, %v2520_v9  ;;  %4768 = vmatprep.subr.mxu0 %v1991_v8 }
 0x9e1   :  { %4769 = vmatpush3.msra.mxu0 %v1991_v8 }
 0x9e2   :  { %v2522_v11 = vadd.f32 1e-05, %v2521_v10  ;;  %4780 = vmatprep.subr.mxu0 %v5698_v1  ;;  %v2726_v10 = vld [vmem:[%s6625_s0 + $0x18] sm:$0xff] }
 0x9e4   :  { %5080 = vrsqrt.f32 %v2522_v11  ;;  %v2725_v11 = vld [vmem:[%s6625_s0 + $0x10] sm:$0xff] }
 0x9f1   :  { %v5081_v12 = vpop.eup %5080 }
 0x9f2   :  { %v2524_v14 = vmul.f32 %v5081_v12, %v2508_v55  ;;  %v2525_v15 = vmul.f32 %v5081_v12, %v2509_v56 }
 0x9f4   :  { %v2532_v17 = vmul.f32 %v4315_v13, %v2524_v14  ;;  %v2533_v19 = vmul.f32 %v4315_v13, %v2525_v15  ;;  %v2724_v13 = vld [vmem:[%s6625_s0 + $0x8] sm:$0xff]  ;;  %v2723_v15 = vld [vmem:[%s6625_s0] sm:$0xff] }
 0x9f6   :  { %v2540_v20 = vadd.f32 %v4316_v16, %v2532_v17  ;;  %v2541_v22 = vadd.f32 %v4316_v16, %v2533_v19  ;;  %v4322_v19 = vld [vmem:[%s6626_s5] ss:$0 sm:$0xff] }
 0x9f8   :  { %v4317_v23 = vmul.f32 -1.442695, %v2540_v20  ;;  %v4318_v24 = vmul.f32 -1.442695, %v2541_v22 }
 0x9fa   :  { %5082 = vpow2.f32 %v4317_v23  ;;  %v4323_v23 = vld [vmem:[#allocation2] ss:$0 sm:$0xff] }
 0x9fb   :  { %5084 = vpow2.f32 %v4318_v24 }
 0xa07   :  { %v5083_v25 = vpop.eup %5082 }
 0xa08   :  { %v5085_v26 = vpop.eup %5084  ;;  %v2548_v27 = vadd.f32 1.0, %v5083_v25 }
 0xa09   :  { %v2549_v28 = vadd.f32 1.0, %v5085_v26 }
 0xa0a   :  { %5086 = vrcp.f32 %v2548_v27 }
 0xa0b   :  { %5088 = vrcp.f32 %v2549_v28 }
 0xa17   :  { %v5087_v29 = vpop.eup %5086 }
 0xa18   :  { %v5089_v30 = vpop.eup %5088  ;;  %v2554_v31 = vmul.f32 %v5087_v29, %v2540_v20 }
 0xa19   :  { %v2555_v32 = vmul.f32 %v5089_v30, %v2541_v22 }
 0xa1a   :  { %4770 = vmatprep.mubr.msk.f32.mxu0 %vm655_vm1, %v2554_v31 }
 0xa1b   :  { %4771 = vmatmul.mubr.msk.f32.vlgmr.msra.gmra.mxu0 %vm655_vm1, %v2555_v32 }
 0xa1c   :  { %4788 = vmatprep.mubr.msk.f32.mxu0 %vm5699_vm0, %v5698_v1  ;;  %4781 = vmatpush3.msra.mxu0 %v2722_v33 }
 0xa1d   :  { %4782 = vmatprep.subr.mxu0 %v5698_v1 }
 0xa1e   :  { %4783 = vmatpush3.msra.mxu0 %v2721_v34 }
 0xa1f   :  { %4784 = vmatprep.subr.mxu0 %v5698_v1 }
 0xa20   :  { %4785 = vmatpush3.msra.mxu0 %v2720_v35 }
 0xa21   :  { %4786 = vmatprep.subr.mxu0 %v5698_v1 }
 0xa22   :  { %4787 = vmatpush3.msra.mxu0 %v2719_v36 }
 0xa23   :  { %4802 = vmatprep.subr.mxu0 %v5698_v1 }
 0xa9a   :  { %v2400_v38 = vpop.f32.mrf.mxu0 }
 0xa9b   :  { %v2401_v39 = vadd.f32 %v4309_v37, %v2400_v38  ;;  %v2718_v38 = vld [vmem:[%s6627_s23 + $0x18] sm:$0xff] }
 0xa9c   :  { %v4750_v40 = vpop.f32.mrf.mxu0 }
 0xa9d   :  { %v4311_v41 = vmul.f32 -1.442695, %v2401_v39 }
 0xa9f   :  { %5090 = vpow2.f32 %v4311_v41 }
 0xaac   :  { %v5091_v42 = vpop.eup %5090 }
 0xaad   :  { %v2407_v43 = vadd.f32 1.0, %v5091_v42  ;;  %v2716_v42 = vld [vmem:[%s6627_s23 + $0x8] sm:$0xff] }
 0xaaf   :  { %5092 = vrcp.f32 %v2407_v43  ;;  %v2704_v43 = vld [vmem:[%s6628_s26 + $0x18] sm:$0xff] }
 0xabc   :  { %v5093_v44 = vpop.eup %5092 }
 0xabd   :  { %v2410_v45 = vmul.f32 %v5093_v44, %v2401_v39  ;;  %v2717_v39 = vld [vmem:[%s6627_s23 + $0x10] sm:$0xff]  ;;  %v2715_v44 = vld [vmem:[%s6627_s23] sm:$0xff] }
 0xabf   :  { %4789 = vmatmul.mubr.msk.f32.vlgmr.msra.gmra.mxu0 %vm655_vm1, %v2410_v45 }
 0xac0   :  { %4810 = vmatprep.mubr.msk.f32.mxu0 %vm5699_vm0, %v5698_v1  ;;  %4803 = vmatpush3.msra.mxu0 %v2726_v10 }
 0xac1   :  { %4804 = vmatprep.subr.mxu0 %v5698_v1 }
 0xac2   :  { %4805 = vmatpush3.msra.mxu0 %v2725_v11 }
 0xac3   :  { %4806 = vmatprep.subr.mxu0 %v5698_v1 }
 0xac4   :  { %4807 = vmatpush3.msra.mxu0 %v2724_v13 }
 0xac5   :  { %4808 = vmatprep.subr.mxu0 %v5698_v1 }
 0xac6   :  { %4809 = vmatpush3.msra.mxu0 %v2723_v15 }
 0xac7   :  { %4824 = vmatprep.subr.mxu0 %v2704_v43 }
 0xadb   :  { %v4772_v47 = vpop.f32.mrf.mxu0 }
 0xadc   :  { %v2640_v48 = vadd.f32 %v4772_v47, %v4319_v46 }
 0xadd   :  { %v2634_v49 = vpop.f32.mrf.mxu0 }
 0xade   :  { %v2635_v50 = vadd.f32 %v4319_v46, %v2634_v49  ;;  %v2644_v51 = vsel %vm655_vm1, %v2640_v48, 0.0  ;;  %v2703_v46 = vld [vmem:[%s6628_s26 + $0x10] sm:$0xff]  ;;  %v2701_v49 = vld [vmem:[%s6628_s26] sm:$0xff] }
 0xae0   :  { %v2643_v52 = vsel %vm655_vm1, %v2635_v50, 0.0 }
 0xae1   :  { %v2645_v53 = vadd.f32 %v2644_v51, %v2643_v52  ;;  %v2730_v51 = vld [vmem:[%s6629_s25 + $0x10] sm:$0xff]  ;;  %v2729_v52 = vld [vmem:[%s6629_s25 + $0x8] sm:$0xff] }
 0xae3   :  { %v2646_v54 = vrot.slane %v2645_v53, 4 }
 0xae5   :  { %v2647_v55 = vadd.f32 %v2646_v54, %v2645_v53  ;;  %v2728_v53 = vld [vmem:[%s6629_s25] sm:$0xff]  ;;  %v2711_v54 = vld [vmem:[%s6630_s28 + $0x18] sm:$0xff] }
 0xae7   :  { %v2648_v56 = vrot.slane %v2647_v55, 2 }
 0xae9   :  { %v2649_v57 = vadd.f32 %v2648_v56, %v2647_v55 }
 0xaeb   :  { %v2650_v58 = vrot.slane %v2649_v57, 1 }
 0xaed   :  { %v2651_v59 = vadd.f32 %v2650_v58, %v2649_v57  ;;  %v4331_v58 = vld [vmem:[#allocation17] ss:$0 sm:$0xff] }
 0xaef   :  { %v2652_v60 = vmul.f32 0.0625, %v2651_v59 }
 0xaf1   :  { %v2653_v61 = vsub.f32 %v2635_v50, %v2652_v60  ;;  %v2654_v62 = vsub.f32 %v2640_v48, %v2652_v60  ;;  %v2702_v48 = vld [vmem:[%s6628_s26 + $0x8] sm:$0xff]  ;;  %v2731_v50 = vld [vmem:[%s6629_s25 + $0x18] sm:$0xff] }
 0xaf3   :  { %v2655_v63 = vmul.f32 %v2653_v61, %v2653_v61  ;;  %v2656_v0 = vmul.f32 %v2654_v62, %v2654_v62 }
 0xaf5   :  { %v2657_v2 = vsel %vm655_vm1, %v2655_v63, 0.0  ;;  %v2658_v3 = vsel %vm655_vm1, %v2656_v0, 0.0 }
 0xaf6   :  { %v2659_v4 = vadd.f32 %v2658_v3, %v2657_v2 }
 0xaf8   :  { %v2660_v5 = vrot.slane %v2659_v4, 4 }
 0xafa   :  { %v2661_v6 = vadd.f32 %v2660_v5, %v2659_v4 }
 0xafc   :  { %v2662_v7 = vrot.slane %v2661_v6, 2 }
 0xafe   :  { %v2663_v8 = vadd.f32 %v2662_v7, %v2661_v6 }
 0xb00   :  { %v2664_v9 = vrot.slane %v2663_v8, 1 }
 0xb02   :  { %v2665_v12 = vadd.f32 %v2664_v9, %v2663_v8 }
 0xb04   :  { %v2666_v14 = vmul.f32 0.0625, %v2665_v12 }
 0xb06   :  { %v2667_v16 = vadd.f32 1e-05, %v2666_v14 }
 0xb08   :  { %5094 = vrsqrt.f32 %v2667_v16 }
 0xb15   :  { %v5095_v17 = vpop.eup %5094 }
 0xb16   :  { %v2669_v20 = vmul.f32 %v5095_v17, %v2653_v61  ;;  %v2670_v22 = vmul.f32 %v5095_v17, %v2654_v62  ;;  %v4336_v61 = vld [vmem:[#allocation8] ss:$0 sm:$0xff] }
 0xb18   :  { %v2677_v24 = vmul.f32 %v4322_v19, %v2669_v20  ;;  %v2678_v25 = vmul.f32 %v4322_v19, %v2670_v22 }
 0xb1a   :  { %v2686_v26 = vadd.f32 %v4323_v23, %v2678_v25  ;;  %v2685_v27 = vadd.f32 %v4323_v23, %v2677_v24 }
 0xb1c   :  { %v4325_v28 = vmul.f32 -1.442695, %v2686_v26  ;;  %v4324_v29 = vmul.f32 -1.442695, %v2685_v27 }
 0xb1e   :  { %5096 = vpow2.f32 %v4325_v28 }
 0xb1f   :  { %5098 = vpow2.f32 %v4324_v29 }
 0xb2b   :  { %v5097_v30 = vpop.eup %5096 }
 0xb2c   :  { %v5099_v31 = vpop.eup %5098  ;;  %v2694_v32 = vadd.f32 1.0, %v5097_v30 }
 0xb2d   :  { %v2693_v33 = vadd.f32 1.0, %v5099_v31  ;;  %v2710_v31 = vld [vmem:[%s6630_s28 + $0x10] sm:$0xff] }
 0xb2e   :  { %5100 = vrcp.f32 %v2694_v32 }
 0xb2f   :  { %5102 = vrcp.f32 %v2693_v33  ;;  %v2709_v33 = vld [vmem:[%s6630_s28 + $0x8] sm:$0xff] }
 0xb3b   :  { %v5101_v34 = vpop.eup %5100 }
 0xb3c   :  { %v5103_v35 = vpop.eup %5102  ;;  %v2700_v36 = vmul.f32 %v5101_v34, %v2686_v26 }
 0xb3d   :  { %v2699_v37 = vmul.f32 %v5103_v35, %v2685_v27  ;;  %v2708_v35 = vld [vmem:[%s6630_s28] sm:$0xff] }
 0xb3e   :  { %4773 = vmatprep.subr.mxu1 %v2700_v36 }
 0xb3f   :  { %4774 = vmatpush3.msra.mxu1 %v2700_v36 }
 0xb40   :  { %4775 = vmatprep.subr.mxu1 %v2699_v37 }
 0xb41   :  { %4776 = vmatpush3.msra.mxu1 %v2699_v37 }
 0xb42   :  { %4778 = vmatmul.mubr.msk.f32.vlgmr.msra.gmra.mxu1 %vm573_vm2, %v6145_v21  ;;  %4791 = vmatprep.subr.mxu1 %v5698_v1 }
 0xb43   :  { %4792 = vmatpush3.msra.mxu1 %v2718_v38  ;;  %4799 = vmatprep.mubr.msk.f32.mxu1 %vm5699_vm0, %v5698_v1 }
 0xb44   :  { %4793 = vmatprep.subr.mxu1 %v5698_v1 }
 0xb45   :  { %4794 = vmatpush3.msra.mxu1 %v2717_v39 }
 0xb46   :  { %4795 = vmatprep.subr.mxu1 %v5698_v1 }
 0xb47   :  { %4796 = vmatpush3.msra.mxu1 %v2716_v42 }
 0xb48   :  { %4797 = vmatprep.subr.mxu1 %v5698_v1 }
 0xb49   :  { %4798 = vmatpush3.msra.mxu1 %v2715_v44 }
 0xb4a   :  { %4813 = vmatprep.subr.mxu1 %v5698_v1 }
 0xb7f   :  { %v2877_v40 = vpop.f32.mrf.mxu0 }
 0xb81   :  { %v4790_v41 = vpop.f32.mrf.mxu0 }
 0xc02   :  { %v4779_v45 = vpop.f32.mrf.mxu1 }
 0xc03   :  { %4811 = vmatmul.mubr.msk.f32.vlgmr.msra.gmra.mxu0 %vm655_vm1, %v4779_v45 }
 0xc04   :  { %4825 = vmatpush3.msra.mxu0 %v2704_v43  ;;  %v2799_v47 = vpop.f32.mrf.mxu1  ;;  %4832 = vmatprep.mubr.msk.f32.mxu0 %vm655_vm1, %v2699_v37  ;;  %v4340_v43 = vld [vmem:[#allocation11] ss:$0 sm:$0xff] }
 0xc05   :  { %4826 = vmatprep.subr.mxu0 %v2703_v46  ;;  %4800 = vmatmul.mubr.msk.f32.vlgmr.msra.gmra.mxu1 %vm655_vm1, %v2799_v47 }
 0xc06   :  { %4827 = vmatpush3.msra.mxu0 %v2703_v46  ;;  %4821 = vmatprep.mubr.msk.f32.mxu1 %vm5699_vm0, %v5698_v1 }
 0xc07   :  { %4828 = vmatprep.subr.mxu0 %v2702_v48  ;;  %4814 = vmatpush3.msra.mxu1 %v2731_v50 }
 0xc08   :  { %4829 = vmatpush3.msra.mxu0 %v2702_v48  ;;  %4815 = vmatprep.subr.mxu1 %v5698_v1 }
 0xc09   :  { %4830 = vmatprep.subr.mxu0 %v2701_v49  ;;  %4816 = vmatpush3.msra.mxu1 %v2730_v51 }
 0xc0a   :  { %4831 = vmatpush3.msra.mxu0 %v2701_v49  ;;  %4817 = vmatprep.subr.mxu1 %v5698_v1 }
 0xc0b   :  { %4833 = vmatmul.mubr.msk.f32.vlgmr.msra.gmra.mxu0 %vm655_vm1, %v2700_v36  ;;  %4818 = vmatpush3.msra.mxu1 %v2729_v52 }
 0xc0c   :  { %4850 = vmatprep.mubr.msk.f32.mxu0 %vm573_vm2, %v6139_v18  ;;  %4819 = vmatprep.subr.mxu1 %v5698_v1 }
 0xc0d   :  { %4820 = vmatpush3.msra.mxu1 %v2728_v53 }
 0xc0e   :  { %4835 = vmatprep.subr.mxu1 %v2711_v54 }
 0xcc3   :  { %v3023_v55 = vpop.f32.mrf.mxu0 }
 0xcc5   :  { %v2950_v56 = vpop.f32.mrf.mxu1  ;;  %v4812_v57 = vpop.f32.mrf.mxu0 }
 0xcc6   :  { %v2951_v18 = vadd.f32 %v2950_v56, %v2877_v40  ;;  %v4339_v40 = vld [vmem:[#allocation10] ss:$0 sm:$0xff] }
 0xcc7   :  { %v4801_v59 = vpop.f32.mrf.mxu1 }
 0xcc8   :  { %v3027_v60 = vadd.f32 %v3023_v55, %v2951_v18  ;;  %v3439_v18 = vld [vmem:[%s6631_s12 + $0x18] sm:$0xff]  ;;  %v3437_v59 = vld [vmem:[%s6631_s12 + $0x8] sm:$0xff] }
 0xcca   :  { %v3034_v62 = vadd.f32 %v4331_v58, %v3027_v60  ;;  %v3438_v58 = vld [vmem:[%s6631_s12 + $0x10] sm:$0xff]  ;;  %v3436_v60 = vld [vmem:[%s6631_s12] sm:$0xff] }
 0xccb   :  { %v4834_v63 = vpop.f32.mrf.mxu0 }
 0xccc   :  { %v4332_v0 = vmul.f32 -1.442695, %v3034_v62  ;;  %v3212_v2 = vadd.f32 %v4834_v63, %v4336_v61 }
 0xccd   :  { %v3206_v3 = vpop.f32.mrf.mxu0 }
 0xcce   :  { %5104 = vpow2.f32 %v4332_v0  ;;  %v3207_v4 = vadd.f32 %v4336_v61, %v3206_v3  ;;  %v3216_v5 = vsel %vm655_vm1, %v3212_v2, 0.0  ;;  %v4333_v61 = vld [vmem:[#allocation19] ss:$0 sm:$0xff] }
 0xcd0   :  { %v3215_v6 = vsel %vm655_vm1, %v3207_v4, 0.0 }
 0xcd1   :  { %v3217_v7 = vadd.f32 %v3216_v5, %v3215_v6 }
 0xcd3   :  { %v3218_v8 = vrot.slane %v3217_v7, 4 }
 0xcd5   :  { %v3219_v9 = vadd.f32 %v3218_v8, %v3217_v7  ;;  %v4343_v7 = vld [vmem:[#allocation13] ss:$0 sm:$0xff] }
 0xcd7   :  { %v3220_v10 = vrot.slane %v3219_v9, 2 }
 0xcd9   :  { %v3221_v11 = vadd.f32 %v3220_v10, %v3219_v9 }
 0xcdb   :  { %v5105_v12 = vpop.eup %5104  ;;  %v3222_v13 = vrot.slane %v3221_v11, 1 }
 0xcdc   :  { %v3038_v14 = vadd.f32 1.0, %v5105_v12 }
 0xcdd   :  { %v3223_v15 = vadd.f32 %v3222_v13, %v3221_v11 }
 0xcde   :  { %5106 = vrcp.f32 %v3038_v14 }
 0xcdf   :  { %v3224_v16 = vmul.f32 0.0625, %v3223_v15 }
 0xce1   :  { %v3225_v17 = vsub.f32 %v3207_v4, %v3224_v16  ;;  %v3226_v19 = vsub.f32 %v3212_v2, %v3224_v16 }
 0xce3   :  { %v3227_v20 = vmul.f32 %v3225_v17, %v3225_v17  ;;  %v3228_v22 = vmul.f32 %v3226_v19, %v3226_v19 }
 0xce5   :  { %v3229_v23 = vsel %vm655_vm1, %v3227_v20, 0.0  ;;  %v3230_v24 = vsel %vm655_vm1, %v3228_v22, 0.0 }
 0xce6   :  { %v3231_v25 = vadd.f32 %v3230_v24, %v3229_v23 }
 0xce8   :  { %v3232_v26 = vrot.slane %v3231_v25, 4 }
 0xcea   :  { %v3233_v27 = vadd.f32 %v3232_v26, %v3231_v25 }
 0xceb   :  { %v5107_v28 = vpop.eup %5106 }
 0xcec   :  { %v3041_v29 = vmul.f32 %v5107_v28, %v3034_v62  ;;  %v3234_v30 = vrot.slane %v3233_v27, 2 }
 0xcee   :  { %v3235_v32 = vadd.f32 %v3234_v30, %v3233_v27  ;;  %4822 = vmatmul.mubr.msk.f32.vlgmr.msra.gmra.mxu1 %vm655_vm1, %v3041_v29 }
 0xcef   :  { %4836 = vmatpush3.msra.mxu1 %v2711_v54 }
 0xcf0   :  { %v3236_v34 = vrot.slane %v3235_v32, 1  ;;  %4837 = vmatprep.subr.mxu1 %v2710_v31 }
 0xcf1   :  { %4838 = vmatpush3.msra.mxu1 %v2710_v31 }
 0xcf2   :  { %v3237_v36 = vadd.f32 %v3236_v34, %v3235_v32  ;;  %4839 = vmatprep.subr.mxu1 %v2709_v33 }
 0xcf3   :  { %4840 = vmatpush3.msra.mxu1 %v2709_v33 }
 0xcf4   :  { %v3238_v37 = vmul.f32 0.0625, %v3237_v36  ;;  %4841 = vmatprep.subr.mxu1 %v2708_v35  ;;  %v3443_v36 = vld [vmem:[%s6632_s13 + $0x18] sm:$0xff] }
 0xcf5   :  { %4842 = vmatpush3.msra.mxu1 %v2708_v35 }
 0xcf6   :  { %v3239_v38 = vadd.f32 1e-05, %v3238_v37  ;;  %4853 = vmatprep.subr.mxu1 %v5698_v1  ;;  %v3442_v37 = vld [vmem:[%s6632_s13 + $0x10] sm:$0xff] }
 0xcf8   :  { %5108 = vrsqrt.f32 %v3239_v38 }
 0xd05   :  { %v5109_v39 = vpop.eup %5108 }
 0xd06   :  { %v3241_v41 = vmul.f32 %v5109_v39, %v3225_v17  ;;  %v3242_v42 = vmul.f32 %v5109_v39, %v3226_v19  ;;  %v3441_v39 = vld [vmem:[%s6632_s13 + $0x8] sm:$0xff] }
 0xd08   :  { %v3249_v44 = vmul.f32 %v4339_v40, %v3241_v41  ;;  %v3250_v45 = vmul.f32 %v4339_v40, %v3242_v42  ;;  %v3440_v41 = vld [vmem:[%s6632_s13] sm:$0xff] }
 0xd0a   :  { %v3257_v46 = vadd.f32 %v4340_v43, %v3249_v44  ;;  %v3258_v47 = vadd.f32 %v4340_v43, %v3250_v45  ;;  %v4346_v44 = vld [vmem:[#allocation14] ss:$0 sm:$0xff] }
 0xd0c   :  { %v4341_v48 = vmul.f32 -1.442695, %v3257_v46  ;;  %v4342_v49 = vmul.f32 -1.442695, %v3258_v47 }
 0xd0e   :  { %5110 = vpow2.f32 %v4341_v48 }
 0xd0f   :  { %5112 = vpow2.f32 %v4342_v49 }
 0xd1b   :  { %v5111_v50 = vpop.eup %5110 }
 0xd1c   :  { %v5113_v51 = vpop.eup %5112  ;;  %v3265_v52 = vadd.f32 1.0, %v5111_v50 }
 0xd1d   :  { %v3266_v53 = vadd.f32 1.0, %v5113_v51 }
 0xd1e   :  { %5114 = vrcp.f32 %v3265_v52 }
 0xd1f   :  { %5116 = vrcp.f32 %v3266_v53 }
 0xd2b   :  { %v5115_v54 = vpop.eup %5114 }
 0xd2c   :  { %v5117_v55 = vpop.eup %5116  ;;  %v3271_v56 = vmul.f32 %v5115_v54, %v3257_v46 }
 0xd2d   :  { %v3272_v57 = vmul.f32 %v5117_v55, %v3258_v47  ;;  %v4347_v47 = vld [vmem:[#allocation16] ss:$0 sm:$0xff] }
 0xd2e   :  { %4843 = vmatprep.mubr.msk.f32.mxu1 %vm655_vm1, %v3271_v56 }
 0xd2f   :  { %4844 = vmatmul.mubr.msk.f32.vlgmr.msra.gmra.mxu1 %vm655_vm1, %v3272_v57 }
 0xd30   :  { %4861 = vmatprep.mubr.msk.f32.mxu1 %vm5699_vm0, %v5698_v1  ;;  %4854 = vmatpush3.msra.mxu1 %v3439_v18 }
 0xd31   :  { %4855 = vmatprep.subr.mxu1 %v5698_v1 }
 0xd32   :  { %4856 = vmatpush3.msra.mxu1 %v3438_v58 }
 0xd33   :  { %4857 = vmatprep.subr.mxu1 %v5698_v1 }
 0xd34   :  { %4858 = vmatpush3.msra.mxu1 %v3437_v59 }
 0xd35   :  { %4859 = vmatprep.subr.mxu1 %v5698_v1 }
 0xd36   :  { %4860 = vmatpush3.msra.mxu1 %v3436_v60 }
 0xd37   :  { %4875 = vmatprep.subr.mxu1 %v5698_v1 }
 0xdae   :  { %v3117_v62 = vpop.f32.mrf.mxu1 }
 0xdaf   :  { %v3118_v63 = vadd.f32 %v4333_v61, %v3117_v62  ;;  %v3435_v61 = vld [vmem:[%s6633_s1 + $0x18] sm:$0xff]  ;;  %v3434_v62 = vld [vmem:[%s6633_s1 + $0x10] sm:$0xff] }
 0xdb0   :  { %v4823_v0 = vpop.f32.mrf.mxu1 }
 0xdb1   :  { %v4335_v2 = vmul.f32 -1.442695, %v3118_v63 }
 0xdb3   :  { %5118 = vpow2.f32 %v4335_v2  ;;  %v3433_v2 = vld [vmem:[%s6633_s1 + $0x8] sm:$0xff] }
 0xdc0   :  { %v5119_v3 = vpop.eup %5118 }
 0xdc1   :  { %v3124_v4 = vadd.f32 1.0, %v5119_v3  ;;  %v3421_v3 = vld [vmem:[%s6634_s27 + $0x18] sm:$0xff] }
 0xdc3   :  { %5120 = vrcp.f32 %v3124_v4 }
 0xdd0   :  { %v5121_v5 = vpop.eup %5120 }
 0xdd1   :  { %v3127_v6 = vmul.f32 %v5121_v5, %v3118_v63  ;;  %v3420_v5 = vld [vmem:[%s6634_s27 + $0x10] sm:$0xff] }
 0xdd3   :  { %4862 = vmatmul.mubr.msk.f32.vlgmr.msra.gmra.mxu1 %vm655_vm1, %v3127_v6 }
 0xdd4   :  { %4883 = vmatprep.mubr.msk.f32.mxu1 %vm5699_vm0, %v5698_v1  ;;  %4876 = vmatpush3.msra.mxu1 %v3443_v36 }
 0xdd5   :  { %4877 = vmatprep.subr.mxu1 %v5698_v1 }
 0xdd6   :  { %4878 = vmatpush3.msra.mxu1 %v3442_v37 }
 0xdd7   :  { %4879 = vmatprep.subr.mxu1 %v5698_v1 }
 0xdd8   :  { %4880 = vmatpush3.msra.mxu1 %v3441_v39 }
 0xdd9   :  { %4881 = vmatprep.subr.mxu1 %v5698_v1 }
 0xdda   :  { %4882 = vmatpush3.msra.mxu1 %v3440_v41 }
 0xddb   :  { %4897 = vmatprep.subr.mxu1 %v3421_v3 }
 0xdef   :  { %v4845_v8 = vpop.f32.mrf.mxu1 }
 0xdf0   :  { %v3357_v9 = vadd.f32 %v4845_v8, %v4343_v7  ;;  %v3418_v8 = vld [vmem:[%s6634_s27] sm:$0xff] }
 0xdf1   :  { %v3351_v10 = vpop.f32.mrf.mxu1 }
 0xdf2   :  { %v3352_v11 = vadd.f32 %v4343_v7, %v3351_v10  ;;  %v3361_v12 = vsel %vm655_vm1, %v3357_v9, 0.0  ;;  %v3419_v7 = vld [vmem:[%s6634_s27 + $0x8] sm:$0xff]  ;;  %v3447_v10 = vld [vmem:[%s6067_s17 + $0x10] sm:$0xff] }
 0xdf4   :  { %v3360_v13 = vsel %vm655_vm1, %v3352_v11, 0.0 }
 0xdf5   :  { %v3362_v14 = vadd.f32 %v3361_v12, %v3360_v13  ;;  %v3445_v12 = vld [vmem:[%s6067_s17] sm:$0xff]  ;;  %v3428_v13 = vld [vmem:[%s6635_s2 + $0x18] sm:$0xff] }
 0xdf7   :  { %v3363_v15 = vrot.slane %v3362_v14, 4 }
 0xdf9   :  { %v3364_v16 = vadd.f32 %v3363_v15, %v3362_v14 }
 0xdfb   :  { %v3365_v17 = vrot.slane %v3364_v16, 2 }
 0xdfd   :  { %v3366_v19 = vadd.f32 %v3365_v17, %v3364_v16 }
 0xdff   :  { %v3367_v20 = vrot.slane %v3366_v19, 1 }
 0xe01   :  { %v3368_v22 = vadd.f32 %v3367_v20, %v3366_v19  ;;  %v4355_v19 = vld [vmem:[#allocation29] ss:$0 sm:$0xff] }
 0xe03   :  { %v3369_v23 = vmul.f32 0.0625, %v3368_v22 }
 0xe05   :  { %v3370_v24 = vsub.f32 %v3352_v11, %v3369_v23  ;;  %v3371_v25 = vsub.f32 %v3357_v9, %v3369_v23  ;;  %v3448_v9 = vld [vmem:[%s6067_s17 + $0x18] sm:$0xff]  ;;  %v3446_v11 = vld [vmem:[%s6067_s17 + $0x8] sm:$0xff]  ;;  %v4360_v23 = vld [vmem:[#allocation20] ss:$0 sm:$0xff]  ;;  %s5700_s17 = smov [#allocation33]  }
 0xe06   :  { %s4156_s7 = sshll.u32 %s5700_s17, 4  ;;  %s4157_s7 = int_to_ptr.vmem [resolvable:$true] %s4156_s7 }
 0xe07   :  { %v3372_v26 = vmul.f32 %v3370_v24, %v3370_v24  ;;  %v3373_v27 = vmul.f32 %v3371_v25, %v3371_v25  ;;  %s5540_s10 = scalar_lea.vmem %s4157_s7, 128  ;;  %p5545_p12 = scmp.lt.s32.totalorder %s4157_s7, %s4157_s7 }
 0xe08   :  { %p5541_p11 = scmp.ne.s32.totalorder %s4157_s7, %s5540_s10  ;;  %p5546_p13 = scmp.lt.s32.totalorder %s5540_s10, %s5540_s10 }
 0xe09   :  { %v3374_v28 = vsel %vm655_vm1, %v3372_v26, 0.0  ;;  %v3375_v29 = vsel %vm655_vm1, %v3373_v27, 0.0 }
 0xe0a   :  { %v3376_v30 = vadd.f32 %v3375_v29, %v3374_v28  ;;  %p5547_p0 = por %p5546_p13, %p5545_p12 }
 0xe0c   :  { %v3377_v31 = vrot.slane %v3376_v30, 4  ;;  %p5548_p1 = pnand %p5547_p0, %p5541_p11 }
 0xe0e   :  { %v3378_v32 = vadd.f32 %v3377_v31, %v3376_v30 }
 0xe10   :  { %v3379_v33 = vrot.slane %v3378_v32, 2 }
 0xe12   :  { %v3380_v34 = vadd.f32 %v3379_v33, %v3378_v32 }
 0xe14   :  { %v3381_v35 = vrot.slane %v3380_v34, 1 }
 0xe16   :  { %v3382_v38 = vadd.f32 %v3381_v35, %v3380_v34 }
 0xe18   :  { %v3383_v40 = vmul.f32 0.0625, %v3382_v38 }
 0xe1a   :  { %v3384_v42 = vadd.f32 1e-05, %v3383_v40 }
 0xe1c   :  { %5122 = vrsqrt.f32 %v3384_v42 }
 0xe29   :  { %v5123_v43 = vpop.eup %5122 }
 0xe2a   :  { %v3386_v45 = vmul.f32 %v5123_v43, %v3370_v24  ;;  %v3387_v46 = vmul.f32 %v5123_v43, %v3371_v25 }
 0xe2c   :  { %v3394_v48 = vmul.f32 %v4346_v44, %v3386_v45  ;;  %v3395_v49 = vmul.f32 %v4346_v44, %v3387_v46 }
 0xe2e   :  { %v3403_v50 = vadd.f32 %v4347_v47, %v3395_v49  ;;  %v3402_v51 = vadd.f32 %v4347_v47, %v3394_v48 }
 0xe30   :  { %v4349_v52 = vmul.f32 -1.442695, %v3403_v50  ;;  %v4348_v53 = vmul.f32 -1.442695, %v3402_v51 }
 0xe32   :  { %5124 = vpow2.f32 %v4349_v52 }
 0xe33   :  { %5126 = vpow2.f32 %v4348_v53  ;;  %v3427_v53 = vld [vmem:[%s6635_s2 + $0x10] sm:$0xff] }
 0xe3f   :  { %v5125_v54 = vpop.eup %5124 }
 0xe40   :  { %v5127_v55 = vpop.eup %5126  ;;  %v3411_v56 = vadd.f32 1.0, %v5125_v54 }
 0xe41   :  { %v3410_v57 = vadd.f32 1.0, %v5127_v55  ;;  %v3426_v55 = vld [vmem:[%s6635_s2 + $0x8] sm:$0xff] }
 0xe42   :  { %5128 = vrcp.f32 %v3411_v56 }
 0xe43   :  { %5130 = vrcp.f32 %v3410_v57  ;;  %v3425_v57 = vld [vmem:[%s6635_s2] sm:$0xff] }
 0xe4f   :  { %v5129_v18 = vpop.eup %5128 }
 0xe50   :  { %v5131_v58 = vpop.eup %5130  ;;  %v3417_v59 = vmul.f32 %v5129_v18, %v3403_v50 }
 0xe51   :  { %v3416_v60 = vmul.f32 %v5131_v58, %v3402_v51 }
 0xe52   :  { %4846 = vmatprep.subr.mxu0 %v3417_v59 }
 0xe53   :  { %4847 = vmatpush3.msra.mxu0 %v3417_v59 }
 0xe54   :  { %4848 = vmatprep.subr.mxu0 %v3416_v60 }
 0xe55   :  { %4849 = vmatpush3.msra.mxu0 %v3416_v60 }
 0xe56   :  { %4851 = vmatmul.mubr.msk.f32.vlgmr.msra.gmra.mxu0 %vm573_vm2, %v6145_v21  ;;  %4864 = vmatprep.subr.mxu0 %v5698_v1  ;;  %v3432_v21 = vld [vmem:[%s6633_s1] sm:$0xff] }
 0xe57   :  { %4865 = vmatpush3.msra.mxu0 %v3435_v61  ;;  %4872 = vmatprep.mubr.msk.f32.mxu0 %vm5699_vm0, %v5698_v1  ;;  %v4363_v61 = vld [vmem:[#allocation22] ss:$0 sm:$0xff] }
 0xe58   :  { %4866 = vmatprep.subr.mxu0 %v5698_v1 }
 0xe59   :  { %4867 = vmatpush3.msra.mxu0 %v3434_v62 }
 0xe5a   :  { %4868 = vmatprep.subr.mxu0 %v5698_v1 }
 0xe5b   :  { %4869 = vmatpush3.msra.mxu0 %v3433_v2 }
 0xe5c   :  { %4870 = vmatprep.subr.mxu0 %v5698_v1 }
 0xe5d   :  { %4871 = vmatpush3.msra.mxu0 %v3432_v21 }
 0xe5e   :  { %4886 = vmatprep.subr.mxu0 %v5698_v1 }
 0xe93   :  { %v3594_v63 = vpop.f32.mrf.mxu1 }
 0xe95   :  { %v4863_v0 = vpop.f32.mrf.mxu1 }
 0xe96   :  { %v4364_v0 = vld [vmem:[#allocation23] ss:$0 sm:$0xff] }
 0xf16   :  { %v4852_v4 = vpop.f32.mrf.mxu0 }
 0xf17   :  { %4884 = vmatmul.mubr.msk.f32.vlgmr.msra.gmra.mxu1 %vm655_vm1, %v4852_v4 }
 0xf18   :  { %4898 = vmatpush3.msra.mxu1 %v3421_v3  ;;  %v3516_v6 = vpop.f32.mrf.mxu0  ;;  %4905 = vmatprep.mubr.msk.f32.mxu1 %vm655_vm1, %v3416_v60 }
 0xf19   :  { %4899 = vmatprep.subr.mxu1 %v3420_v5  ;;  %4873 = vmatmul.mubr.msk.f32.vlgmr.msra.gmra.mxu0 %vm655_vm1, %v3516_v6 }
 0xf1a   :  { %4900 = vmatpush3.msra.mxu1 %v3420_v5  ;;  %4894 = vmatprep.mubr.msk.f32.mxu0 %vm5699_vm0, %v5698_v1 }
 0xf1b   :  { %4901 = vmatprep.subr.mxu1 %v3419_v7  ;;  %4887 = vmatpush3.msra.mxu0 %v3448_v9 }
 0xf1c   :  { %4902 = vmatpush3.msra.mxu1 %v3419_v7  ;;  %4888 = vmatprep.subr.mxu0 %v5698_v1 }
 0xf1d   :  { %4903 = vmatprep.subr.mxu1 %v3418_v8  ;;  %4889 = vmatpush3.msra.mxu0 %v3447_v10 }
 0xf1e   :  { %4904 = vmatpush3.msra.mxu1 %v3418_v8  ;;  %4890 = vmatprep.subr.mxu0 %v5698_v1 }
 0xf1f   :  { %4906 = vmatmul.mubr.msk.f32.vlgmr.msra.gmra.mxu1 %vm655_vm1, %v3417_v59  ;;  %4891 = vmatpush3.msra.mxu0 %v3446_v11 }
 0xf20   :  { %4892 = vmatprep.subr.mxu0 %v5698_v1 }
 0xf21   :  { %4893 = vmatpush3.msra.mxu0 %v3445_v12 }
 0xf22   :  { %4908 = vmatprep.subr.mxu0 %v3428_v13 }
 0xfd7   :  { %v3740_v14 = vpop.f32.mrf.mxu1 }
 0xfd9   :  { %v3667_v15 = vpop.f32.mrf.mxu0  ;;  %v4885_v16 = vpop.f32.mrf.mxu1 }
 0xfda   :  { %v3668_v17 = vadd.f32 %v3667_v15, %v3594_v63  ;;  %v4357_v15 = vld [vmem:[#allocation31] ss:$0 sm:$0xff] }
 0xfdb   :  { %v4874_v20 = vpop.f32.mrf.mxu0 }
 0xfdc   :  { %v3744_v22 = vadd.f32 %v3740_v14, %v3668_v17 }
 0xfde   :  { %v3751_v24 = vadd.f32 %v4355_v19, %v3744_v22 }
 0xfdf   :  { %v4907_v25 = vpop.f32.mrf.mxu1 }
 0xfe0   :  { %v4356_v26 = vmul.f32 -1.442695, %v3751_v24  ;;  %v3929_v27 = vadd.f32 %v4907_v25, %v4360_v23 }
 0xfe1   :  { %v3923_v28 = vpop.f32.mrf.mxu1 }
 0xfe2   :  { %5132 = vpow2.f32 %v4356_v26  ;;  %v3924_v29 = vadd.f32 %v4360_v23, %v3923_v28  ;;  %v3933_v1 = vsel %vm655_vm1, %v3929_v27, 0.0 }
 0xfe4   :  { %v3932_v30 = vsel %vm655_vm1, %v3924_v29, 0.0 }
 0xfe5   :  { %v3934_v31 = vadd.f32 %v3933_v1, %v3932_v30 }
 0xfe7   :  { %v3935_v32 = vrot.slane %v3934_v31, 4 }
 0xfe9   :  { %v3936_v33 = vadd.f32 %v3935_v32, %v3934_v31 }
 0xfeb   :  { %v3937_v34 = vrot.slane %v3936_v33, 2 }
 0xfed   :  { %v3938_v35 = vadd.f32 %v3937_v34, %v3936_v33 }
 0xfef   :  { %v5133_v36 = vpop.eup %5132  ;;  %v3939_v37 = vrot.slane %v3938_v35, 1 }
 0xff0   :  { %v3755_v38 = vadd.f32 1.0, %v5133_v36 }
 0xff1   :  { %v3940_v39 = vadd.f32 %v3939_v37, %v3938_v35 }
 0xff2   :  { %5134 = vrcp.f32 %v3755_v38 }
 0xff3   :  { %v3941_v40 = vmul.f32 0.0625, %v3940_v39 }
 0xff5   :  { %v3942_v41 = vsub.f32 %v3924_v29, %v3941_v40  ;;  %v3943_v42 = vsub.f32 %v3929_v27, %v3941_v40 }
 0xff7   :  { %v3944_v43 = vmul.f32 %v3942_v41, %v3942_v41  ;;  %v3945_v44 = vmul.f32 %v3943_v42, %v3943_v42 }
 0xff9   :  { %v3946_v45 = vsel %vm655_vm1, %v3944_v43, 0.0  ;;  %v3947_v46 = vsel %vm655_vm1, %v3945_v44, 0.0 }
 0xffa   :  { %v3948_v47 = vadd.f32 %v3947_v46, %v3946_v45 }
 0xffc   :  { %v3949_v48 = vrot.slane %v3948_v47, 4 }
 0xffe   :  { %v3950_v49 = vadd.f32 %v3949_v48, %v3948_v47 }
 0xfff   :  { %v5135_v50 = vpop.eup %5134 }
0x1000   :  { %v3758_v51 = vmul.f32 %v5135_v50, %v3751_v24  ;;  %v3951_v52 = vrot.slane %v3950_v49, 2 }
0x1002   :  { %v3952_v54 = vadd.f32 %v3951_v52, %v3950_v49  ;;  %4895 = vmatmul.mubr.msk.f32.vlgmr.msra.gmra.mxu0 %vm655_vm1, %v3758_v51 }
0x1003   :  { %4909 = vmatpush3.msra.mxu0 %v3428_v13 }
0x1004   :  { %v3953_v56 = vrot.slane %v3952_v54, 1  ;;  %4910 = vmatprep.subr.mxu0 %v3427_v53 }
0x1005   :  { %4911 = vmatpush3.msra.mxu0 %v3427_v53 }
0x1006   :  { %v3954_v18 = vadd.f32 %v3953_v56, %v3952_v54  ;;  %4912 = vmatprep.subr.mxu0 %v3426_v55 }
0x1007   :  { %4913 = vmatpush3.msra.mxu0 %v3426_v55 }
0x1008   :  { %v3955_v58 = vmul.f32 0.0625, %v3954_v18  ;;  %4914 = vmatprep.subr.mxu0 %v3425_v57 }
0x1009   :  { %4915 = vmatpush3.msra.mxu0 %v3425_v57 }
0x100a   :  { %v3956_v59 = vadd.f32 1e-05, %v3955_v58 }
0x100c   :  { %5136 = vrsqrt.f32 %v3956_v59 }
0x1019   :  { %v5137_v60 = vpop.eup %5136 }
0x101a   :  { %v3958_v62 = vmul.f32 %v5137_v60, %v3942_v41  ;;  %v3959_v63 = vmul.f32 %v5137_v60, %v3943_v42 }
0x101c   :  { %v3966_v2 = vmul.f32 %v4363_v61, %v3958_v62  ;;  %v3967_v3 = vmul.f32 %v4363_v61, %v3959_v63 }
0x101e   :  { %v3974_v21 = vadd.f32 %v4364_v0, %v3966_v2  ;;  %v3975_v4 = vadd.f32 %v4364_v0, %v3967_v3 }
0x1020   :  { %v4365_v5 = vmul.f32 -1.442695, %v3974_v21  ;;  %v4366_v6 = vmul.f32 -1.442695, %v3975_v4 }
0x1022   :  { %5138 = vpow2.f32 %v4365_v5 }
0x1023   :  { %5140 = vpow2.f32 %v4366_v6 }
0x102f   :  { %v5139_v7 = vpop.eup %5138 }
0x1030   :  { %v5141_v8 = vpop.eup %5140  ;;  %v3982_v9 = vadd.f32 1.0, %v5139_v7 }
0x1031   :  { %v3983_v10 = vadd.f32 1.0, %v5141_v8 }
0x1032   :  { %5142 = vrcp.f32 %v3982_v9 }
0x1033   :  { %5144 = vrcp.f32 %v3983_v10 }
0x103f   :  { %v5143_v11 = vpop.eup %5142 }
0x1040   :  { %v5145_v12 = vpop.eup %5144  ;;  %v3988_v13 = vmul.f32 %v5143_v11, %v3974_v21 }
0x1041   :  { %v3989_v14 = vmul.f32 %v5145_v12, %v3975_v4 }
0x1042   :  { %4916 = vmatprep.mubr.msk.f32.mxu0 %vm655_vm1, %v3988_v13 }
0x1043   :  { %4917 = vmatmul.mubr.msk.f32.vlgmr.msra.gmra.mxu0 %vm655_vm1, %v3989_v14 }
0x10c2   :  { %v3834_v16 = vpop.f32.mrf.mxu0 }
0x10c3   :  { %v3835_v17 = vadd.f32 %v4357_v15, %v3834_v16 }
0x10c4   :  { %v4896_v19 = vpop.f32.mrf.mxu0 }
0x10c5   :  { %v4359_v20 = vmul.f32 -1.442695, %v3835_v17 }
0x10c7   :  { %5146 = vpow2.f32 %v4359_v20 }
0x10d4   :  { %v5147_v22 = vpop.eup %5146 }
0x10d5   :  { %v3841_v23 = vadd.f32 1.0, %v5147_v22 }
0x10d7   :  { %5148 = vrcp.f32 %v3841_v23 }
0x10e4   :  { %v5149_v24 = vpop.eup %5148 }
0x10e5   :  { %v3844_v25 = vmul.f32 %v5149_v24, %v3835_v17 }
0x10e7   :  { %4137 = vst.msk [vmem:[#allocation33] sm:$0xff] %vm655_vm1, %v3844_v25 }
0x10e8   :  { %5551 = shalt.err (!%p5548_p1)
}
0x10e9   :  { %4159 = dma.vmem_to_hbm [thread:$0]  %s4157_s7, 128, %s6082_s20, [#allocation34]   ;;  %v4367_v26 = vld [vmem:[#allocation25] ss:$0 sm:$0xff]  ;;  %v4370_v56 = vld [vmem:[#allocation26] ss:$0 sm:$0xff] }
0x10ea   :  { %v4371_v58 = vld [vmem:[#allocation28] ss:$0 sm:$0xff]  ;;  %s5701_s20 = smov [#allocation32]  }
0x10eb   :  { %s4143_s11 = sshll.u32 %s5701_s20, 4  ;;  %s4144_s11 = int_to_ptr.vmem [resolvable:$true] %s4143_s11 }
0x10ec   :  { %s5560_s30 = scalar_lea.vmem %s4144_s11, 256  ;;  %p5565_p3 = scmp.lt.s32.totalorder %s4144_s11, %s4144_s11 }
0x10ed   :  { %p5561_p2 = scmp.ne.s32.totalorder %s4144_s11, %s5560_s30  ;;  %p5566_p4 = scmp.lt.s32.totalorder %s5560_s30, %s5560_s30 }
0x10ef   :  { %p5567_p5 = por %p5566_p4, %p5565_p3 }
0x10f1   :  { %p5568_p6 = pnand %p5567_p5, %p5561_p2 }
0x1103   :  { %v4918_v27 = vpop.f32.mrf.mxu0 }
0x1104   :  { %v4074_v28 = vadd.f32 %v4918_v27, %v4367_v26 }
0x1105   :  { %v4068_v29 = vpop.f32.mrf.mxu0 }
0x1106   :  { %v4069_v1 = vadd.f32 %v4367_v26, %v4068_v29  ;;  %v4078_v30 = vsel %vm655_vm1, %v4074_v28, 0.0 }
0x1108   :  { %v4077_v31 = vsel %vm655_vm1, %v4069_v1, 0.0 }
0x1109   :  { %v4079_v32 = vadd.f32 %v4078_v30, %v4077_v31 }
0x110b   :  { %v4080_v33 = vrot.slane %v4079_v32, 4 }
0x110d   :  { %v4081_v34 = vadd.f32 %v4080_v33, %v4079_v32 }
0x110f   :  { %v4082_v35 = vrot.slane %v4081_v34, 2 }
0x1111   :  { %v4083_v36 = vadd.f32 %v4082_v35, %v4081_v34 }
0x1113   :  { %v4084_v37 = vrot.slane %v4083_v36, 1 }
0x1115   :  { %v4085_v38 = vadd.f32 %v4084_v37, %v4083_v36 }
0x1117   :  { %v4086_v39 = vmul.f32 0.0625, %v4085_v38 }
0x1119   :  { %v4087_v40 = vsub.f32 %v4069_v1, %v4086_v39  ;;  %v4088_v41 = vsub.f32 %v4074_v28, %v4086_v39 }
0x111b   :  { %v4089_v42 = vmul.f32 %v4087_v40, %v4087_v40  ;;  %v4090_v43 = vmul.f32 %v4088_v41, %v4088_v41 }
0x111d   :  { %v4091_v44 = vsel %vm655_vm1, %v4089_v42, 0.0  ;;  %v4092_v45 = vsel %vm655_vm1, %v4090_v43, 0.0 }
0x111e   :  { %v4093_v46 = vadd.f32 %v4092_v45, %v4091_v44 }
0x1120   :  { %v4094_v47 = vrot.slane %v4093_v46, 4 }
0x1122   :  { %v4095_v48 = vadd.f32 %v4094_v47, %v4093_v46 }
0x1124   :  { %v4096_v49 = vrot.slane %v4095_v48, 2 }
0x1126   :  { %v4097_v50 = vadd.f32 %v4096_v49, %v4095_v48 }
0x1128   :  { %v4098_v51 = vrot.slane %v4097_v50, 1 }
0x112a   :  { %v4099_v52 = vadd.f32 %v4098_v51, %v4097_v50 }
0x112c   :  { %v4100_v53 = vmul.f32 0.0625, %v4099_v52 }
0x112e   :  { %v4101_v54 = vadd.f32 1e-05, %v4100_v53 }
0x1130   :  { %5150 = vrsqrt.f32 %v4101_v54 }
0x113d   :  { %v5151_v55 = vpop.eup %5150 }
0x113e   :  { %v4103_v57 = vmul.f32 %v5151_v55, %v4087_v40  ;;  %v4104_v18 = vmul.f32 %v5151_v55, %v4088_v41 }
0x1140   :  { %v4111_v59 = vmul.f32 %v4370_v56, %v4103_v57  ;;  %v4112_v60 = vmul.f32 %v4370_v56, %v4104_v18 }
0x1142   :  { %v4119_v61 = vadd.f32 %v4371_v58, %v4111_v59  ;;  %v4120_v62 = vadd.f32 %v4371_v58, %v4112_v60 }
0x1144   :  { %v4372_v63 = vmul.f32 -1.442695, %v4119_v61  ;;  %v4373_v0 = vmul.f32 -1.442695, %v4120_v62 }
0x1146   :  { %5152 = vpow2.f32 %v4372_v63 }
0x1147   :  { %5154 = vpow2.f32 %v4373_v0 }
0x1153   :  { %v5153_v2 = vpop.eup %5152 }
0x1154   :  { %v5155_v3 = vpop.eup %5154  ;;  %v4127_v21 = vadd.f32 1.0, %v5153_v2 }
0x1155   :  { %v4128_v4 = vadd.f32 1.0, %v5155_v3 }
0x1156   :  { %5156 = vrcp.f32 %v4127_v21 }
0x1157   :  { %5158 = vrcp.f32 %v4128_v4 }
0x1163   :  { %v5157_v5 = vpop.eup %5156 }
0x1164   :  { %v5159_v6 = vpop.eup %5158  ;;  %v4133_v7 = vmul.f32 %v5157_v5, %v4119_v61 }
0x1165   :  { %v4134_v8 = vmul.f32 %v5159_v6, %v4120_v62 }
0x1166   :  { %4135 = vst.msk [vmem:[#allocation32] sm:$0xff] %vm655_vm1, %v4133_v7 }
0x1167   :  { %4136 = vst.msk [vmem:[#allocation32 + $0x8] sm:$0xff] %vm655_vm1, %v4134_v8 }
0x1168   :  { %5571 = shalt.err (!%p5568_p6)
}
0x1169   :  { %s5702_s24 = smov 128   ;;  %s5703_s8 = smov 8  }
0x116a   :  { %4149 = dma.vmem_to_hbm [thread:$0]  %s4144_s11, 256, %s6077_s4, [#allocation4], %s5702_s24, %s5702_s24, %s5703_s8  }
0x116b   :  { %5600 = dma.done.wait [#allocation4], 256  }
0x116c   :  { %5601 = vsyncadd [#allocation4], 4294967040 }
0x116d   :  { %5602 = dma.done.wait [#allocation34], 128  }
0x116e   :  { %5603 = vsyncadd [#allocation34], 4294967168 }
0x116f   :  { %4166 = vsyncpa [#allocation3], 1 }
0x1170   :  { %4167 = vsyncpa [#allocation6], 1 }
0x1171   :  { %4168 = vsyncpa [#allocation9], 1 }
0x1172   :  { %4169 = vsyncpa [#allocation12], 1 }
0x1173   :  { %4170 = vsyncpa [#allocation15], 1 }
0x1174   :  { %4171 = vsyncpa [#allocation18], 1 }
0x1175   :  { %4172 = vsyncpa [#allocation21], 1 }
0x1176   :  { %4173 = vsyncpa [#allocation24], 1 }
0x1177   :  { %4174 = vsyncpa [#allocation27], 1 }
0x1178   :  { %4175 = vsyncpa [#allocation30], 1 }
0x1179   :  { %4176 = vsyncpa [#allocation4], 1 }
0x117a   :  { %4177 = vsyncpa [#allocation34], 1 }

</bundles_post_ra>
